<compile_context>
chip_gen: v5e
topology: v5e:2x2
jax: 0.10.0
libtpu: 0.0.40
codegen_flags: <defaults>
</compile_context>

<pallas_src>
import jax
import jax.numpy as jnp
import numpy as np
from jax.experimental import pallas as pl
from jax.experimental.pallas import tpu as pltpu

# ---- model sizes (small, deterministic test configuration) -----------------
GCN_IN, GCN_HID, GCN_OUT = 4, 16, 8
H_LSTM, L_LSTM = 32, 2
B, S, N = 2, 8, 8
D_SEQ = GCN_OUT * N  # LSTM feature dim = 64


# ============================ Pallas kernel =================================

def _gates(g, c):
    """LSTM nonlinearities (PyTorch gate order i, f, g, o).
    `g` already contains x@W_ih + h@W_hh + b.
    Lane-dense: ONE full-width sigmoid over all 4H lanes, then slice."""
    H = H_LSTM
    sg = jax.nn.sigmoid(g)                     # (M, 4H) in one EUP chain
    i_g = sg[:, 0:H]
    f_g = sg[:, H:2 * H]
    o_g = sg[:, 3 * H:4 * H]
    g_g = jnp.tanh(g[:, 2 * H:3 * H])
    c_new = f_g * c + i_g * g_g
    h_new = o_g * jnp.tanh(c_new)
    return h_new, c_new


def _model_kernel(x_ref,
                  eA1_ref, ec1_ref, eA2_ref, ec2_ref,        # fused GCN encoder
                  ewih0_ref, ewhh0_ref, eb0_ref,             # LSTM enc layer 0
                  ewih1_ref, ewhh1_ref, eb1_ref,             # LSTM enc layer 1
                  dwih0_ref, dwhh0_ref, db0_ref,             # LSTM dec layer 0
                  dwih1_ref, dwhh1_ref, db1_ref,             # LSTM dec layer 1
                  fcw_ref, fcb_ref,                          # decoder FC
                  dA1_ref, dc1_ref, dA2_ref, dc2_ref,        # fused GCN decoder
                  o_ref,
                  ydec_ref):                                 # VMEM scratch (S*Bc, H)
    H = H_LSTM
    rows = x_ref.shape[1]          # S * Bc, time-major with batch innermost
    Bc = rows // S
    f32 = jnp.float32

    def dot(a, b):
        return jnp.dot(a, b, preferred_element_type=f32)

    x = x_ref[0]                                   # (S*Bc, N*GCN_IN)

    # ---- GCN encoder: each GraphConvolution is one lane-dense matmul --------
    h = jnp.maximum(dot(x, eA1_ref[...]) + ec1_ref[...], 0.0)
    seq = dot(h, eA2_ref[...]) + ec2_ref[...]      # (S*Bc, D_SEQ) LSTM inputs

    zeros_bh = jnp.zeros((Bc, H), f32)

    # ---- LSTM encoder: 2 layers, wavefronted (layer1@t-1 overlaps layer0@t) -
    ewhh0 = ewhh0_ref[...]                          # hoisted weight loads
    ewih1 = ewih1_ref[...]
    ewhh1 = ewhh1_ref[...]
    eb1 = eb1_ref[...]
    gin0 = dot(seq, ewih0_ref[...]) + eb0_ref[...]  # hoisted x@W_ih, (S*Bc, 4H)

    h0, c0 = zeros_bh, zeros_bh
    h1, c1 = zeros_bh, zeros_bh
    for t in range(S + 1):                          # fully unrolled wavefront
        y0_in = h0                                  # layer-0 output at time t-1
        if t < S:
            g0 = gin0[t * Bc:(t + 1) * Bc] + dot(h0, ewhh0)
            h0, c0 = _gates(g0, c0)
        if t >= 1:
            g1 = dot(y0_in, ewih1) + dot(h1, ewhh1) + eb1
            h1, c1 = _gates(g1, c1)
    encoded = h1                                    # h_n[-1], (Bc, H)

    # ---- LSTM decoder: 2 layers, wavefronted ---------------------------------
    # Decoder input is flip(seq) shifted right by one with zeros:
    #   time 0 -> zeros (gate = bias + h@W_hh), time t>=1 -> seq rows of time S-t.
    dwhh0 = dwhh0_ref[...]
    dwih1 = dwih1_ref[...]
    dwhh1 = dwhh1_ref[...]
    db0 = db0_ref[...]
    db1 = db1_ref[...]
    seqproj = dot(seq, dwih0_ref[...]) + db0        # hoisted, (S*Bc, 4H)

    h0, c0 = encoded, zeros_bh                      # layer-0 h0 = encoding
    h1, c1 = zeros_bh, zeros_bh                     # layer-1 h0 = 0
    for t in range(S + 1):
        y0_in = h0
        if t < S:
            gx = db0 if t == 0 else seqproj[(S - t) * Bc:(S - t + 1) * Bc]
            g0 = gx + dot(h0, dwhh0)
            h0, c0 = _gates(g0, c0)
        if t >= 1:
            tt = t - 1                              # layer-1 processes time tt
            g1 = dot(y0_in, dwih1) + dot(h1, dwhh1) + db1
            h1, c1 = _gates(g1, c1)
            # Flip back to original time order by writing row S-1-tt directly.
            ydec_ref[(S - 1 - tt) * Bc:(S - tt) * Bc, :] = h1

    dec_seq = dot(ydec_ref[...], fcw_ref[...]) + fcb_ref[...]   # (S*Bc, D_SEQ)

    # ---- GCN decoder ----------------------------------------------------------
    h = jnp.maximum(dot(dec_seq, dA1_ref[...]) + dc1_ref[...], 0.0)
    o_ref[0] = dot(h, dA2_ref[...]) + dc2_ref[...]              # (S*Bc, N*GCN_IN)


# ============================ wrapper =======================================

def _fuse_gcn(adj, w1, b1, w2, b2):
    """Fold adj into each GraphConvolution:
       adj @ (X W + b)  ==  X_flat @ kron(adj^T, W) + rowsum(adj) (x) b
    (node-major flattening, exact math)."""
    rowsum = jnp.sum(adj, axis=1)
    A1 = jnp.kron(adj.T, w1)
    c1 = (rowsum[:, None] * b1[0][None, :]).reshape(1, -1)
    A2 = jnp.kron(adj.T, w2)
    c2 = (rowsum[:, None] * b2[0][None, :]).reshape(1, -1)
    return A1, c1, A2, c2


def forward(x, adj, p, grid_b=1):
    """grid_b=1 (default): whole batch in-body — best on single-TC v5e/v6e.
    grid_b=2 on v7x megacore maps one batch element per TensorCore."""
    Bb, Ss, Nn, Fin = x.shape
    assert Ss == S and Bb % grid_b == 0
    Bc = Bb // grid_b

    eA1, ec1, eA2, ec2 = _fuse_gcn(adj, p["enc_w1"], p["enc_b1"],
                                   p["enc_w2"], p["enc_b2"])
    dA1, dc1, dA2, dc2 = _fuse_gcn(adj, p["dec_w1"], p["dec_b1"],
                                   p["dec_w2"], p["dec_b2"])

    # Time-major, batch-innermost layout: row (t*Bc + b) of each grid block.
    xf = (x.reshape(grid_b, Bc, Ss, Nn * Fin)
           .transpose(0, 2, 1, 3)
           .reshape(grid_b, Ss * Bc, Nn * Fin))

    le0, le1 = p["lstm_enc"]
    ld0, ld1 = p["lstm_dec"]

    args = (xf,
            eA1, ec1, eA2, ec2,
            le0["wih"], le0["whh"], le0["b"],
            le1["wih"], le1["whh"], le1["b"],
            ld0["wih"], ld0["whh"], ld0["b"],
            ld1["wih"], ld1["whh"], ld1["b"],
            p["fc_w"], p["fc_b"],
            dA1, dc1, dA2, dc2)

    def _full(a):
        return pl.BlockSpec(a.shape, lambda i: (0,) * a.ndim)

    in_specs = ([pl.BlockSpec((1, Ss * Bc, Nn * Fin), lambda i: (i, 0, 0))]
                + [_full(a) for a in args[1:]])

    out = pl.pallas_call(
        _model_kernel,
        out_shape=jax.ShapeDtypeStruct((grid_b, Ss * Bc, Nn * GCN_IN), jnp.float32),
        grid=(grid_b,),
        in_specs=in_specs,
        out_specs=pl.BlockSpec((1, Ss * Bc, Nn * GCN_IN), lambda i: (i, 0, 0)),
        scratch_shapes=[pltpu.VMEM((Ss * Bc, H_LSTM), jnp.float32)],
        compiler_params=pltpu.CompilerParams(
            dimension_semantics=("parallel",)),
    )(*args)

    return (out.reshape(grid_b, Ss, Bc, Nn, GCN_IN)
               .transpose(0, 2, 1, 3, 4)
               .reshape(Bb, Ss, Nn, GCN_IN))


# ============================ parameters ====================================

def init_params(key):
    ks = iter(jax.random.split(key, 64))

    def w(shape, scale=0.1):
        return (scale * jax.random.normal(next(ks), shape)).astype(jnp.float32)

    p = {}
    # GCN encoder / decoder (Linear weights stored pre-transposed: (in, out)).
    p["enc_w1"], p["enc_b1"] = w((GCN_IN, GCN_HID)), w((1, GCN_HID))
    p["enc_w2"], p["enc_b2"] = w((GCN_HID, GCN_OUT)), w((1, GCN_OUT))
    p["dec_w1"], p["dec_b1"] = w((GCN_OUT, GCN_HID)), w((1, GCN_HID))
    p["dec_w2"], p["dec_b2"] = w((GCN_HID, GCN_IN)), w((1, GCN_IN))

    # LSTM stacks (weights pre-transposed; b = b_ih + b_hh combined).
    def lstm_params(num_layers, in_size, hidden):
        layers = []
        for l in range(num_layers):
            din = in_size if l == 0 else hidden
            layers.append(dict(wih=w((din, 4 * hidden)),
                               whh=w((hidden, 4 * hidden)),
                               b=w((1, 4 * hidden))))
        return layers

    p["lstm_enc"] = lstm_params(L_LSTM, D_SEQ, H_LSTM)
    p["lstm_dec"] = lstm_params(L_LSTM, D_SEQ, H_LSTM)
    p["fc_w"], p["fc_b"] = w((H_LSTM, D_SEQ)), w((1, D_SEQ))
    return p


# ====================== pure-JAX reference (for check) ======================

def _ref_gcn(x, adj, w1, b1, w2, b2):
    h = jnp.einsum("nm,bsmf->bsnf", adj, x @ w1 + b1[0])
    h = jnp.maximum(h, 0.0)
    return jnp.einsum("nm,bsmf->bsnf", adj, h @ w2 + b2[0])


def _ref_lstm_layer(x, h0, c0, wih, whh, b):
    H = h0.shape[1]

    def step(carry, xt):
        h, c = carry
        g = xt @ wih + h @ whh + b[0]
        i = jax.nn.sigmoid(g[:, :H])
        f = jax.nn.sigmoid(g[:, H:2 * H])
        gg = jnp.tanh(g[:, 2 * H:3 * H])
        o = jax.nn.sigmoid(g[:, 3 * H:])
        c = f * c + i * gg
        h = o * jnp.tanh(c)
        return (h, c), h

    (h, _), ys = jax.lax.scan(step, (h0, c0), jnp.transpose(x, (1, 0, 2)))
    return jnp.transpose(ys, (1, 0, 2)), h


def ref_forward(x, adj, p):
    Bb, Ss, Nn, _ = x.shape
    enc = _ref_gcn(x, adj, p["enc_w1"], p["enc_b1"], p["enc_w2"], p["enc_b2"])
    seq = enc.reshape(Bb, Ss, Nn * GCN_OUT)

    zeros_h = jnp.zeros((Bb, H_LSTM), jnp.float32)
    cur, h_last = seq, zeros_h
    for layer in p["lstm_enc"]:
        cur, h_last = _ref_lstm_layer(cur, zeros_h, zeros_h,
                                      layer["wih"], layer["whh"], layer["b"])
    lstm_encoded = h_last

    xd = jnp.flip(seq, axis=1)
    xd = jnp.concatenate([jnp.zeros_like(xd[:, :1, :]), xd[:, :-1, :]], axis=1)
    cur = xd
    for l, layer in enumerate(p["lstm_dec"]):
        h0 = lstm_encoded if l == 0 else zeros_h
        cur, _ = _ref_lstm_layer(cur, h0, zeros_h,
                                 layer["wih"], layer["whh"], layer["b"])
    dec = cur.reshape(Bb * Ss, H_LSTM) @ p["fc_w"] + p["fc_b"][0]
    dec = jnp.flip(dec.reshape(Bb, Ss, Nn * GCN_OUT), axis=1)

    return _ref_gcn(dec.reshape(Bb, Ss, Nn, GCN_OUT), adj,
                    p["dec_w1"], p["dec_b1"], p["dec_w2"], p["dec_b2"])


# ================================ main ======================================

if __name__ == "__main__":
    key = jax.random.PRNGKey(0)
    kx, ka, kp = jax.random.split(key, 3)

    x = jax.random.normal(kx, (B, S, N, GCN_IN), jnp.float32)
    adj = jax.random.uniform(ka, (N, N), jnp.float32) + jnp.eye(N, dtype=jnp.float32)
    adj = adj / jnp.sum(adj, axis=1, keepdims=True)      # row-normalized adjacency
    params = init_params(kp)

    fwd = jax.jit(forward)
    out = jax.block_until_ready(fwd(x, adj, params))

    ref = jax.block_until_ready(ref_forward(x, adj, params))
    assert out.shape == (B, S, N, GCN_IN), out.shape
    np.testing.assert_allclose(np.asarray(out), np.asarray(ref),
                               rtol=2e-2, atol=2e-2)
    print("KERNEL_OK")
</pallas_src>

<mosaic_0001>
module attributes {stable_mosaic.version = 11 : i64} {
  func.func @_model_kernel(%arg0: i32, %arg1: memref<1x16x32xf32, #tpu.memory_space<vmem>>, %arg2: memref<32x128xf32, #tpu.memory_space<vmem>>, %arg3: memref<1x128xf32, #tpu.memory_space<vmem>>, %arg4: memref<128x64xf32, #tpu.memory_space<vmem>>, %arg5: memref<1x64xf32, #tpu.memory_space<vmem>>, %arg6: memref<64x128xf32, #tpu.memory_space<vmem>>, %arg7: memref<32x128xf32, #tpu.memory_space<vmem>>, %arg8: memref<1x128xf32, #tpu.memory_space<vmem>>, %arg9: memref<32x128xf32, #tpu.memory_space<vmem>>, %arg10: memref<32x128xf32, #tpu.memory_space<vmem>>, %arg11: memref<1x128xf32, #tpu.memory_space<vmem>>, %arg12: memref<64x128xf32, #tpu.memory_space<vmem>>, %arg13: memref<32x128xf32, #tpu.memory_space<vmem>>, %arg14: memref<1x128xf32, #tpu.memory_space<vmem>>, %arg15: memref<32x128xf32, #tpu.memory_space<vmem>>, %arg16: memref<32x128xf32, #tpu.memory_space<vmem>>, %arg17: memref<1x128xf32, #tpu.memory_space<vmem>>, %arg18: memref<32x64xf32, #tpu.memory_space<vmem>>, %arg19: memref<1x64xf32, #tpu.memory_space<vmem>>, %arg20: memref<64x128xf32, #tpu.memory_space<vmem>>, %arg21: memref<1x128xf32, #tpu.memory_space<vmem>>, %arg22: memref<128x32xf32, #tpu.memory_space<vmem>>, %arg23: memref<1x32xf32, #tpu.memory_space<vmem>>, %arg24: memref<1x16x32xf32, #tpu.memory_space<vmem>>, %arg25: memref<16x32xf32, #tpu.memory_space<vmem>>) attributes {dimension_semantics = [#tpu.dimension_semantics<parallel>], iteration_bounds = array<i64: 1>, scalar_prefetch = 0 : i64, scratch_operands = 1 : i64, tpu.core_type = #tpu.core_type<tc>, window_params = [{transform_indices = @transform_0, window_bounds = array<i64: 1, 16, 32>}, {pipeline_mode = #tpu.pipeline_mode<synchronous>, transform_indices = @transform_1, window_bounds = array<i64: 32, 128>}, {pipeline_mode = #tpu.pipeline_mode<synchronous>, transform_indices = @transform_2, window_bounds = array<i64: 1, 128>}, {pipeline_mode = #tpu.pipeline_mode<synchronous>, transform_indices = @transform_3, window_bounds = array<i64: 128, 64>}, {pipeline_mode = #tpu.pipeline_mode<synchronous>, transform_indices = @transform_4, window_bounds = array<i64: 1, 64>}, {pipeline_mode = #tpu.pipeline_mode<synchronous>, transform_indices = @transform_5, window_bounds = array<i64: 64, 128>}, {pipeline_mode = #tpu.pipeline_mode<synchronous>, transform_indices = @transform_6, window_bounds = array<i64: 32, 128>}, {pipeline_mode = #tpu.pipeline_mode<synchronous>, transform_indices = @transform_7, window_bounds = array<i64: 1, 128>}, {pipeline_mode = #tpu.pipeline_mode<synchronous>, transform_indices = @transform_8, window_bounds = array<i64: 32, 128>}, {pipeline_mode = #tpu.pipeline_mode<synchronous>, transform_indices = @transform_9, window_bounds = array<i64: 32, 128>}, {pipeline_mode = #tpu.pipeline_mode<synchronous>, transform_indices = @transform_10, window_bounds = array<i64: 1, 128>}, {pipeline_mode = #tpu.pipeline_mode<synchronous>, transform_indices = @transform_11, window_bounds = array<i64: 64, 128>}, {pipeline_mode = #tpu.pipeline_mode<synchronous>, transform_indices = @transform_12, window_bounds = array<i64: 32, 128>}, {pipeline_mode = #tpu.pipeline_mode<synchronous>, transform_indices = @transform_13, window_bounds = array<i64: 1, 128>}, {pipeline_mode = #tpu.pipeline_mode<synchronous>, transform_indices = @transform_14, window_bounds = array<i64: 32, 128>}, {pipeline_mode = #tpu.pipeline_mode<synchronous>, transform_indices = @transform_15, window_bounds = array<i64: 32, 128>}, {pipeline_mode = #tpu.pipeline_mode<synchronous>, transform_indices = @transform_16, window_bounds = array<i64: 1, 128>}, {pipeline_mode = #tpu.pipeline_mode<synchronous>, transform_indices = @transform_17, window_bounds = array<i64: 32, 64>}, {pipeline_mode = #tpu.pipeline_mode<synchronous>, transform_indices = @transform_18, window_bounds = array<i64: 1, 64>}, {pipeline_mode = #tpu.pipeline_mode<synchronous>, transform_indices = @transform_19, window_bounds = array<i64: 64, 128>}, {pipeline_mode = #tpu.pipeline_mode<synchronous>, transform_indices = @transform_20, window_bounds = array<i64: 1, 128>}, {pipeline_mode = #tpu.pipeline_mode<synchronous>, transform_indices = @transform_21, window_bounds = array<i64: 128, 32>}, {pipeline_mode = #tpu.pipeline_mode<synchronous>, transform_indices = @transform_22, window_bounds = array<i64: 1, 32>}, {transform_indices = @transform_23, window_bounds = array<i64: 1, 16, 32>}]} {
    %c0 = arith.constant 0 : index
    %c0_0 = arith.constant 0 : index
    %c0_1 = arith.constant 0 : index
    %0 = vector.load %arg1[%c0, %c0_0, %c0_1] : memref<1x16x32xf32, #tpu.memory_space<vmem>>, vector<1x16x32xf32>
    %1 = vector.shape_cast %0 : vector<1x16x32xf32> to vector<16x32xf32>
    %c0_2 = arith.constant 0 : index
    %c0_3 = arith.constant 0 : index
    %2 = vector.load %arg2[%c0_2, %c0_3] : memref<32x128xf32, #tpu.memory_space<vmem>>, vector<32x128xf32>
    %cst = arith.constant dense<0.000000e+00> : vector<16x128xf32>
    %3 = tpu.matmul %1, %2, %cst {dimension_numbers = #tpu.dot_dimension_numbers<[1], [0], [0], [1], [0, 0, 1, 1], [], []>} : vector<16x32xf32>, vector<32x128xf32>, vector<16x128xf32> -> vector<16x128xf32>
    %c0_4 = arith.constant 0 : index
    %c0_5 = arith.constant 0 : index
    %4 = vector.load %arg3[%c0_4, %c0_5] : memref<1x128xf32, #tpu.memory_space<vmem>>, vector<1x128xf32>
    %5 = vector.broadcast %4 : vector<1x128xf32> to vector<16x128xf32>
    %6 = arith.addf %3, %5 : vector<16x128xf32>
    %cst_6 = arith.constant 0.000000e+00 : f32
    %7 = vector.broadcast %cst_6 : f32 to vector<16x128xf32>
    %8 = arith.maximumf %6, %7 : vector<16x128xf32>
    %c0_7 = arith.constant 0 : index
    %c0_8 = arith.constant 0 : index
    %9 = vector.load %arg4[%c0_7, %c0_8] : memref<128x64xf32, #tpu.memory_space<vmem>>, vector<128x64xf32>
    %cst_9 = arith.constant dense<0.000000e+00> : vector<16x64xf32>
    %10 = tpu.matmul %8, %9, %cst_9 {dimension_numbers = #tpu.dot_dimension_numbers<[1], [0], [0], [1], [0, 0, 1, 1], [], []>} : vector<16x128xf32>, vector<128x64xf32>, vector<16x64xf32> -> vector<16x64xf32>
    %c0_10 = arith.constant 0 : index
    %c0_11 = arith.constant 0 : index
    %11 = vector.load %arg5[%c0_10, %c0_11] : memref<1x64xf32, #tpu.memory_space<vmem>>, vector<1x64xf32>
    %12 = vector.broadcast %11 : vector<1x64xf32> to vector<16x64xf32>
    %13 = arith.addf %10, %12 : vector<16x64xf32>
    %cst_12 = arith.constant 0.000000e+00 : f32
    %14 = vector.broadcast %cst_12 : f32 to vector<2x32xf32>
    %c0_13 = arith.constant 0 : index
    %c0_14 = arith.constant 0 : index
    %15 = vector.load %arg7[%c0_13, %c0_14] : memref<32x128xf32, #tpu.memory_space<vmem>>, vector<32x128xf32>
    %c0_15 = arith.constant 0 : index
    %c0_16 = arith.constant 0 : index
    %16 = vector.load %arg9[%c0_15, %c0_16] : memref<32x128xf32, #tpu.memory_space<vmem>>, vector<32x128xf32>
    %c0_17 = arith.constant 0 : index
    %c0_18 = arith.constant 0 : index
    %17 = vector.load %arg10[%c0_17, %c0_18] : memref<32x128xf32, #tpu.memory_space<vmem>>, vector<32x128xf32>
    %c0_19 = arith.constant 0 : index
    %c0_20 = arith.constant 0 : index
    %18 = vector.load %arg11[%c0_19, %c0_20] : memref<1x128xf32, #tpu.memory_space<vmem>>, vector<1x128xf32>
    %c0_21 = arith.constant 0 : index
    %c0_22 = arith.constant 0 : index
    %19 = vector.load %arg6[%c0_21, %c0_22] : memref<64x128xf32, #tpu.memory_space<vmem>>, vector<64x128xf32>
    %cst_23 = arith.constant dense<0.000000e+00> : vector<16x128xf32>
    %20 = tpu.matmul %13, %19, %cst_23 {dimension_numbers = #tpu.dot_dimension_numbers<[1], [0], [0], [1], [0, 0, 1, 1], [], []>} : vector<16x64xf32>, vector<64x128xf32>, vector<16x128xf32> -> vector<16x128xf32>
    %c0_24 = arith.constant 0 : index
    %c0_25 = arith.constant 0 : index
    %21 = vector.load %arg8[%c0_24, %c0_25] : memref<1x128xf32, #tpu.memory_space<vmem>>, vector<1x128xf32>
    %22 = vector.broadcast %21 : vector<1x128xf32> to vector<16x128xf32>
    %23 = arith.addf %20, %22 : vector<16x128xf32>
    %24 = vector.extract_strided_slice %23 {offsets = [0, 0], sizes = [2, 128], strides = [1, 1]} : vector<16x128xf32> to vector<2x128xf32>
    %cst_26 = arith.constant dense<0.000000e+00> : vector<2x128xf32>
    %25 = tpu.matmul %14, %15, %cst_26 {dimension_numbers = #tpu.dot_dimension_numbers<[1], [0], [0], [1], [0, 0, 1, 1], [], []>} : vector<2x32xf32>, vector<32x128xf32>, vector<2x128xf32> -> vector<2x128xf32>
    %26 = arith.addf %24, %25 : vector<2x128xf32>
    %27 = arith.negf %26 : vector<2x128xf32>
    %28 = math.exp %27 : vector<2x128xf32>
    %cst_27 = arith.constant 1.000000e+00 : f32
    %29 = vector.broadcast %cst_27 : f32 to vector<2x128xf32>
    %30 = arith.addf %29, %28 : vector<2x128xf32>
    %31 = arith.divf %29, %30 : vector<2x128xf32>
    %32 = vector.extract_strided_slice %31 {offsets = [0, 0], sizes = [2, 32], strides = [1, 1]} : vector<2x128xf32> to vector<2x32xf32>
    %33 = vector.extract_strided_slice %31 {offsets = [0, 32], sizes = [2, 32], strides = [1, 1]} : vector<2x128xf32> to vector<2x32xf32>
    %34 = vector.extract_strided_slice %31 {offsets = [0, 96], sizes = [2, 32], strides = [1, 1]} : vector<2x128xf32> to vector<2x32xf32>
    %35 = vector.extract_strided_slice %26 {offsets = [0, 64], sizes = [2, 32], strides = [1, 1]} : vector<2x128xf32> to vector<2x32xf32>
    %36 = math.tanh %35 : vector<2x32xf32>
    %37 = arith.mulf %33, %14 : vector<2x32xf32>
    %38 = arith.mulf %32, %36 : vector<2x32xf32>
    %39 = arith.addf %37, %38 : vector<2x32xf32>
    %40 = math.tanh %39 : vector<2x32xf32>
    %41 = arith.mulf %34, %40 : vector<2x32xf32>
    %42 = vector.extract_strided_slice %23 {offsets = [2, 0], sizes = [2, 128], strides = [1, 1]} : vector<16x128xf32> to vector<2x128xf32>
    %cst_28 = arith.constant dense<0.000000e+00> : vector<2x128xf32>
    %43 = tpu.matmul %41, %15, %cst_28 {dimension_numbers = #tpu.dot_dimension_numbers<[1], [0], [0], [1], [0, 0, 1, 1], [], []>} : vector<2x32xf32>, vector<32x128xf32>, vector<2x128xf32> -> vector<2x128xf32>
    %44 = arith.addf %42, %43 : vector<2x128xf32>
    %45 = arith.negf %44 : vector<2x128xf32>
    %46 = math.exp %45 : vector<2x128xf32>
    %cst_29 = arith.constant 1.000000e+00 : f32
    %47 = vector.broadcast %cst_29 : f32 to vector<2x128xf32>
    %48 = arith.addf %47, %46 : vector<2x128xf32>
    %49 = arith.divf %47, %48 : vector<2x128xf32>
    %50 = vector.extract_strided_slice %49 {offsets = [0, 0], sizes = [2, 32], strides = [1, 1]} : vector<2x128xf32> to vector<2x32xf32>
    %51 = vector.extract_strided_slice %49 {offsets = [0, 32], sizes = [2, 32], strides = [1, 1]} : vector<2x128xf32> to vector<2x32xf32>
    %52 = vector.extract_strided_slice %49 {offsets = [0, 96], sizes = [2, 32], strides = [1, 1]} : vector<2x128xf32> to vector<2x32xf32>
    %53 = vector.extract_strided_slice %44 {offsets = [0, 64], sizes = [2, 32], strides = [1, 1]} : vector<2x128xf32> to vector<2x32xf32>
    %54 = math.tanh %53 : vector<2x32xf32>
    %55 = arith.mulf %51, %39 : vector<2x32xf32>
    %56 = arith.mulf %50, %54 : vector<2x32xf32>
    %57 = arith.addf %55, %56 : vector<2x32xf32>
    %58 = math.tanh %57 : vector<2x32xf32>
    %59 = arith.mulf %52, %58 : vector<2x32xf32>
    %cst_30 = arith.constant dense<0.000000e+00> : vector<2x128xf32>
    %60 = tpu.matmul %41, %16, %cst_30 {dimension_numbers = #tpu.dot_dimension_numbers<[1], [0], [0], [1], [0, 0, 1, 1], [], []>} : vector<2x32xf32>, vector<32x128xf32>, vector<2x128xf32> -> vector<2x128xf32>
    %cst_31 = arith.constant dense<0.000000e+00> : vector<2x128xf32>
    %61 = tpu.matmul %14, %17, %cst_31 {dimension_numbers = #tpu.dot_dimension_numbers<[1], [0], [0], [1], [0, 0, 1, 1], [], []>} : vector<2x32xf32>, vector<32x128xf32>, vector<2x128xf32> -> vector<2x128xf32>
    %62 = arith.addf %60, %61 : vector<2x128xf32>
    %63 = vector.broadcast %18 : vector<1x128xf32> to vector<2x128xf32>
    %64 = arith.addf %62, %63 : vector<2x128xf32>
    %65 = arith.negf %64 : vector<2x128xf32>
    %66 = math.exp %65 : vector<2x128xf32>
    %cst_32 = arith.constant 1.000000e+00 : f32
    %67 = vector.broadcast %cst_32 : f32 to vector<2x128xf32>
    %68 = arith.addf %67, %66 : vector<2x128xf32>
    %69 = arith.divf %67, %68 : vector<2x128xf32>
    %70 = vector.extract_strided_slice %69 {offsets = [0, 0], sizes = [2, 32], strides = [1, 1]} : vector<2x128xf32> to vector<2x32xf32>
    %71 = vector.extract_strided_slice %69 {offsets = [0, 32], sizes = [2, 32], strides = [1, 1]} : vector<2x128xf32> to vector<2x32xf32>
    %72 = vector.extract_strided_slice %69 {offsets = [0, 96], sizes = [2, 32], strides = [1, 1]} : vector<2x128xf32> to vector<2x32xf32>
    %73 = vector.extract_strided_slice %64 {offsets = [0, 64], sizes = [2, 32], strides = [1, 1]} : vector<2x128xf32> to vector<2x32xf32>
    %74 = math.tanh %73 : vector<2x32xf32>
    %75 = arith.mulf %71, %14 : vector<2x32xf32>
    %76 = arith.mulf %70, %74 : vector<2x32xf32>
    %77 = arith.addf %75, %76 : vector<2x32xf32>
    %78 = math.tanh %77 : vector<2x32xf32>
    %79 = arith.mulf %72, %78 : vector<2x32xf32>
    %80 = vector.extract_strided_slice %23 {offsets = [4, 0], sizes = [2, 128], strides = [1, 1]} : vector<16x128xf32> to vector<2x128xf32>
    %cst_33 = arith.constant dense<0.000000e+00> : vector<2x128xf32>
    %81 = tpu.matmul %59, %15, %cst_33 {dimension_numbers = #tpu.dot_dimension_numbers<[1], [0], [0], [1], [0, 0, 1, 1], [], []>} : vector<2x32xf32>, vector<32x128xf32>, vector<2x128xf32> -> vector<2x128xf32>
    %82 = arith.addf %80, %81 : vector<2x128xf32>
    %83 = arith.negf %82 : vector<2x128xf32>
    %84 = math.exp %83 : vector<2x128xf32>
    %cst_34 = arith.constant 1.000000e+00 : f32
    %85 = vector.broadcast %cst_34 : f32 to vector<2x128xf32>
    %86 = arith.addf %85, %84 : vector<2x128xf32>
    %87 = arith.divf %85, %86 : vector<2x128xf32>
    %88 = vector.extract_strided_slice %87 {offsets = [0, 0], sizes = [2, 32], strides = [1, 1]} : vector<2x128xf32> to vector<2x32xf32>
    %89 = vector.extract_strided_slice %87 {offsets = [0, 32], sizes = [2, 32], strides = [1, 1]} : vector<2x128xf32> to vector<2x32xf32>
    %90 = vector.extract_strided_slice %87 {offsets = [0, 96], sizes = [2, 32], strides = [1, 1]} : vector<2x128xf32> to vector<2x32xf32>
    %91 = vector.extract_strided_slice %82 {offsets = [0, 64], sizes = [2, 32], strides = [1, 1]} : vector<2x128xf32> to vector<2x32xf32>
    %92 = math.tanh %91 : vector<2x32xf32>
    %93 = arith.mulf %89, %57 : vector<2x32xf32>
    %94 = arith.mulf %88, %92 : vector<2x32xf32>
    %95 = arith.addf %93, %94 : vector<2x32xf32>
    %96 = math.tanh %95 : vector<2x32xf32>
    %97 = arith.mulf %90, %96 : vector<2x32xf32>
    %cst_35 = arith.constant dense<0.000000e+00> : vector<2x128xf32>
    %98 = tpu.matmul %59, %16, %cst_35 {dimension_numbers = #tpu.dot_dimension_numbers<[1], [0], [0], [1], [0, 0, 1, 1], [], []>} : vector<2x32xf32>, vector<32x128xf32>, vector<2x128xf32> -> vector<2x128xf32>
    %cst_36 = arith.constant dense<0.000000e+00> : vector<2x128xf32>
    %99 = tpu.matmul %79, %17, %cst_36 {dimension_numbers = #tpu.dot_dimension_numbers<[1], [0], [0], [1], [0, 0, 1, 1], [], []>} : vector<2x32xf32>, vector<32x128xf32>, vector<2x128xf32> -> vector<2x128xf32>
    %100 = arith.addf %98, %99 : vector<2x128xf32>
    %101 = vector.broadcast %18 : vector<1x128xf32> to vector<2x128xf32>
    %102 = arith.addf %100, %101 : vector<2x128xf32>
    %103 = arith.negf %102 : vector<2x128xf32>
    %104 = math.exp %103 : vector<2x128xf32>
    %cst_37 = arith.constant 1.000000e+00 : f32
    %105 = vector.broadcast %cst_37 : f32 to vector<2x128xf32>
    %106 = arith.addf %105, %104 : vector<2x128xf32>
    %107 = arith.divf %105, %106 : vector<2x128xf32>
    %108 = vector.extract_strided_slice %107 {offsets = [0, 0], sizes = [2, 32], strides = [1, 1]} : vector<2x128xf32> to vector<2x32xf32>
    %109 = vector.extract_strided_slice %107 {offsets = [0, 32], sizes = [2, 32], strides = [1, 1]} : vector<2x128xf32> to vector<2x32xf32>
    %110 = vector.extract_strided_slice %107 {offsets = [0, 96], sizes = [2, 32], strides = [1, 1]} : vector<2x128xf32> to vector<2x32xf32>
    %111 = vector.extract_strided_slice %102 {offsets = [0, 64], sizes = [2, 32], strides = [1, 1]} : vector<2x128xf32> to vector<2x32xf32>
    %112 = math.tanh %111 : vector<2x32xf32>
    %113 = arith.mulf %109, %77 : vector<2x32xf32>
    %114 = arith.mulf %108, %112 : vector<2x32xf32>
    %115 = arith.addf %113, %114 : vector<2x32xf32>
    %116 = math.tanh %115 : vector<2x32xf32>
    %117 = arith.mulf %110, %116 : vector<2x32xf32>
    %118 = vector.extract_strided_slice %23 {offsets = [6, 0], sizes = [2, 128], strides = [1, 1]} : vector<16x128xf32> to vector<2x128xf32>
    %cst_38 = arith.constant dense<0.000000e+00> : vector<2x128xf32>
    %119 = tpu.matmul %97, %15, %cst_38 {dimension_numbers = #tpu.dot_dimension_numbers<[1], [0], [0], [1], [0, 0, 1, 1], [], []>} : vector<2x32xf32>, vector<32x128xf32>, vector<2x128xf32> -> vector<2x128xf32>
    %120 = arith.addf %118, %119 : vector<2x128xf32>
    %121 = arith.negf %120 : vector<2x128xf32>
    %122 = math.exp %121 : vector<2x128xf32>
    %cst_39 = arith.constant 1.000000e+00 : f32
    %123 = vector.broadcast %cst_39 : f32 to vector<2x128xf32>
    %124 = arith.addf %123, %122 : vector<2x128xf32>
    %125 = arith.divf %123, %124 : vector<2x128xf32>
    %126 = vector.extract_strided_slice %125 {offsets = [0, 0], sizes = [2, 32], strides = [1, 1]} : vector<2x128xf32> to vector<2x32xf32>
    %127 = vector.extract_strided_slice %125 {offsets = [0, 32], sizes = [2, 32], strides = [1, 1]} : vector<2x128xf32> to vector<2x32xf32>
    %128 = vector.extract_strided_slice %125 {offsets = [0, 96], sizes = [2, 32], strides = [1, 1]} : vector<2x128xf32> to vector<2x32xf32>
    %129 = vector.extract_strided_slice %120 {offsets = [0, 64], sizes = [2, 32], strides = [1, 1]} : vector<2x128xf32> to vector<2x32xf32>
    %130 = math.tanh %129 : vector<2x32xf32>
    %131 = arith.mulf %127, %95 : vector<2x32xf32>
    %132 = arith.mulf %126, %130 : vector<2x32xf32>
    %133 = arith.addf %131, %132 : vector<2x32xf32>
    %134 = math.tanh %133 : vector<2x32xf32>
    %135 = arith.mulf %128, %134 : vector<2x32xf32>
    %cst_40 = arith.constant dense<0.000000e+00> : vector<2x128xf32>
    %136 = tpu.matmul %97, %16, %cst_40 {dimension_numbers = #tpu.dot_dimension_numbers<[1], [0], [0], [1], [0, 0, 1, 1], [], []>} : vector<2x32xf32>, vector<32x128xf32>, vector<2x128xf32> -> vector<2x128xf32>
    %cst_41 = arith.constant dense<0.000000e+00> : vector<2x128xf32>
    %137 = tpu.matmul %117, %17, %cst_41 {dimension_numbers = #tpu.dot_dimension_numbers<[1], [0], [0], [1], [0, 0, 1, 1], [], []>} : vector<2x32xf32>, vector<32x128xf32>, vector<2x128xf32> -> vector<2x128xf32>
    %138 = arith.addf %136, %137 : vector<2x128xf32>
    %139 = vector.broadcast %18 : vector<1x128xf32> to vector<2x128xf32>
    %140 = arith.addf %138, %139 : vector<2x128xf32>
    %141 = arith.negf %140 : vector<2x128xf32>
    %142 = math.exp %141 : vector<2x128xf32>
    %cst_42 = arith.constant 1.000000e+00 : f32
    %143 = vector.broadcast %cst_42 : f32 to vector<2x128xf32>
    %144 = arith.addf %143, %142 : vector<2x128xf32>
    %145 = arith.divf %143, %144 : vector<2x128xf32>
    %146 = vector.extract_strided_slice %145 {offsets = [0, 0], sizes = [2, 32], strides = [1, 1]} : vector<2x128xf32> to vector<2x32xf32>
    %147 = vector.extract_strided_slice %145 {offsets = [0, 32], sizes = [2, 32], strides = [1, 1]} : vector<2x128xf32> to vector<2x32xf32>
    %148 = vector.extract_strided_slice %145 {offsets = [0, 96], sizes = [2, 32], strides = [1, 1]} : vector<2x128xf32> to vector<2x32xf32>
    %149 = vector.extract_strided_slice %140 {offsets = [0, 64], sizes = [2, 32], strides = [1, 1]} : vector<2x128xf32> to vector<2x32xf32>
    %150 = math.tanh %149 : vector<2x32xf32>
    %151 = arith.mulf %147, %115 : vector<2x32xf32>
    %152 = arith.mulf %146, %150 : vector<2x32xf32>
    %153 = arith.addf %151, %152 : vector<2x32xf32>
    %154 = math.tanh %153 : vector<2x32xf32>
    %155 = arith.mulf %148, %154 : vector<2x32xf32>
    %156 = vector.extract_strided_slice %23 {offsets = [8, 0], sizes = [2, 128], strides = [1, 1]} : vector<16x128xf32> to vector<2x128xf32>
    %cst_43 = arith.constant dense<0.000000e+00> : vector<2x128xf32>
    %157 = tpu.matmul %135, %15, %cst_43 {dimension_numbers = #tpu.dot_dimension_numbers<[1], [0], [0], [1], [0, 0, 1, 1], [], []>} : vector<2x32xf32>, vector<32x128xf32>, vector<2x128xf32> -> vector<2x128xf32>
    %158 = arith.addf %156, %157 : vector<2x128xf32>
    %159 = arith.negf %158 : vector<2x128xf32>
    %160 = math.exp %159 : vector<2x128xf32>
    %cst_44 = arith.constant 1.000000e+00 : f32
    %161 = vector.broadcast %cst_44 : f32 to vector<2x128xf32>
    %162 = arith.addf %161, %160 : vector<2x128xf32>
    %163 = arith.divf %161, %162 : vector<2x128xf32>
    %164 = vector.extract_strided_slice %163 {offsets = [0, 0], sizes = [2, 32], strides = [1, 1]} : vector<2x128xf32> to vector<2x32xf32>
    %165 = vector.extract_strided_slice %163 {offsets = [0, 32], sizes = [2, 32], strides = [1, 1]} : vector<2x128xf32> to vector<2x32xf32>
    %166 = vector.extract_strided_slice %163 {offsets = [0, 96], sizes = [2, 32], strides = [1, 1]} : vector<2x128xf32> to vector<2x32xf32>
    %167 = vector.extract_strided_slice %158 {offsets = [0, 64], sizes = [2, 32], strides = [1, 1]} : vector<2x128xf32> to vector<2x32xf32>
    %168 = math.tanh %167 : vector<2x32xf32>
    %169 = arith.mulf %165, %133 : vector<2x32xf32>
    %170 = arith.mulf %164, %168 : vector<2x32xf32>
    %171 = arith.addf %169, %170 : vector<2x32xf32>
    %172 = math.tanh %171 : vector<2x32xf32>
    %173 = arith.mulf %166, %172 : vector<2x32xf32>
    %cst_45 = arith.constant dense<0.000000e+00> : vector<2x128xf32>
    %174 = tpu.matmul %135, %16, %cst_45 {dimension_numbers = #tpu.dot_dimension_numbers<[1], [0], [0], [1], [0, 0, 1, 1], [], []>} : vector<2x32xf32>, vector<32x128xf32>, vector<2x128xf32> -> vector<2x128xf32>
    %cst_46 = arith.constant dense<0.000000e+00> : vector<2x128xf32>
    %175 = tpu.matmul %155, %17, %cst_46 {dimension_numbers = #tpu.dot_dimension_numbers<[1], [0], [0], [1], [0, 0, 1, 1], [], []>} : vector<2x32xf32>, vector<32x128xf32>, vector<2x128xf32> -> vector<2x128xf32>
    %176 = arith.addf %174, %175 : vector<2x128xf32>
    %177 = vector.broadcast %18 : vector<1x128xf32> to vector<2x128xf32>
    %178 = arith.addf %176, %177 : vector<2x128xf32>
    %179 = arith.negf %178 : vector<2x128xf32>
    %180 = math.exp %179 : vector<2x128xf32>
    %cst_47 = arith.constant 1.000000e+00 : f32
    %181 = vector.broadcast %cst_47 : f32 to vector<2x128xf32>
    %182 = arith.addf %181, %180 : vector<2x128xf32>
    %183 = arith.divf %181, %182 : vector<2x128xf32>
    %184 = vector.extract_strided_slice %183 {offsets = [0, 0], sizes = [2, 32], strides = [1, 1]} : vector<2x128xf32> to vector<2x32xf32>
    %185 = vector.extract_strided_slice %183 {offsets = [0, 32], sizes = [2, 32], strides = [1, 1]} : vector<2x128xf32> to vector<2x32xf32>
    %186 = vector.extract_strided_slice %183 {offsets = [0, 96], sizes = [2, 32], strides = [1, 1]} : vector<2x128xf32> to vector<2x32xf32>
    %187 = vector.extract_strided_slice %178 {offsets = [0, 64], sizes = [2, 32], strides = [1, 1]} : vector<2x128xf32> to vector<2x32xf32>
    %188 = math.tanh %187 : vector<2x32xf32>
    %189 = arith.mulf %185, %153 : vector<2x32xf32>
    %190 = arith.mulf %184, %188 : vector<2x32xf32>
    %191 = arith.addf %189, %190 : vector<2x32xf32>
    %192 = math.tanh %191 : vector<2x32xf32>
    %193 = arith.mulf %186, %192 : vector<2x32xf32>
    %194 = vector.extract_strided_slice %23 {offsets = [10, 0], sizes = [2, 128], strides = [1, 1]} : vector<16x128xf32> to vector<2x128xf32>
    %cst_48 = arith.constant dense<0.000000e+00> : vector<2x128xf32>
    %195 = tpu.matmul %173, %15, %cst_48 {dimension_numbers = #tpu.dot_dimension_numbers<[1], [0], [0], [1], [0, 0, 1, 1], [], []>} : vector<2x32xf32>, vector<32x128xf32>, vector<2x128xf32> -> vector<2x128xf32>
    %196 = arith.addf %194, %195 : vector<2x128xf32>
    %197 = arith.negf %196 : vector<2x128xf32>
    %198 = math.exp %197 : vector<2x128xf32>
    %cst_49 = arith.constant 1.000000e+00 : f32
    %199 = vector.broadcast %cst_49 : f32 to vector<2x128xf32>
    %200 = arith.addf %199, %198 : vector<2x128xf32>
    %201 = arith.divf %199, %200 : vector<2x128xf32>
    %202 = vector.extract_strided_slice %201 {offsets = [0, 0], sizes = [2, 32], strides = [1, 1]} : vector<2x128xf32> to vector<2x32xf32>
    %203 = vector.extract_strided_slice %201 {offsets = [0, 32], sizes = [2, 32], strides = [1, 1]} : vector<2x128xf32> to vector<2x32xf32>
    %204 = vector.extract_strided_slice %201 {offsets = [0, 96], sizes = [2, 32], strides = [1, 1]} : vector<2x128xf32> to vector<2x32xf32>
    %205 = vector.extract_strided_slice %196 {offsets = [0, 64], sizes = [2, 32], strides = [1, 1]} : vector<2x128xf32> to vector<2x32xf32>
    %206 = math.tanh %205 : vector<2x32xf32>
    %207 = arith.mulf %203, %171 : vector<2x32xf32>
    %208 = arith.mulf %202, %206 : vector<2x32xf32>
    %209 = arith.addf %207, %208 : vector<2x32xf32>
    %210 = math.tanh %209 : vector<2x32xf32>
    %211 = arith.mulf %204, %210 : vector<2x32xf32>
    %cst_50 = arith.constant dense<0.000000e+00> : vector<2x128xf32>
    %212 = tpu.matmul %173, %16, %cst_50 {dimension_numbers = #tpu.dot_dimension_numbers<[1], [0], [0], [1], [0, 0, 1, 1], [], []>} : vector<2x32xf32>, vector<32x128xf32>, vector<2x128xf32> -> vector<2x128xf32>
    %cst_51 = arith.constant dense<0.000000e+00> : vector<2x128xf32>
    %213 = tpu.matmul %193, %17, %cst_51 {dimension_numbers = #tpu.dot_dimension_numbers<[1], [0], [0], [1], [0, 0, 1, 1], [], []>} : vector<2x32xf32>, vector<32x128xf32>, vector<2x128xf32> -> vector<2x128xf32>
    %214 = arith.addf %212, %213 : vector<2x128xf32>
    %215 = vector.broadcast %18 : vector<1x128xf32> to vector<2x128xf32>
    %216 = arith.addf %214, %215 : vector<2x128xf32>
    %217 = arith.negf %216 : vector<2x128xf32>
    %218 = math.exp %217 : vector<2x128xf32>
    %cst_52 = arith.constant 1.000000e+00 : f32
    %219 = vector.broadcast %cst_52 : f32 to vector<2x128xf32>
    %220 = arith.addf %219, %218 : vector<2x128xf32>
    %221 = arith.divf %219, %220 : vector<2x128xf32>
    %222 = vector.extract_strided_slice %221 {offsets = [0, 0], sizes = [2, 32], strides = [1, 1]} : vector<2x128xf32> to vector<2x32xf32>
    %223 = vector.extract_strided_slice %221 {offsets = [0, 32], sizes = [2, 32], strides = [1, 1]} : vector<2x128xf32> to vector<2x32xf32>
    %224 = vector.extract_strided_slice %221 {offsets = [0, 96], sizes = [2, 32], strides = [1, 1]} : vector<2x128xf32> to vector<2x32xf32>
    %225 = vector.extract_strided_slice %216 {offsets = [0, 64], sizes = [2, 32], strides = [1, 1]} : vector<2x128xf32> to vector<2x32xf32>
    %226 = math.tanh %225 : vector<2x32xf32>
    %227 = arith.mulf %223, %191 : vector<2x32xf32>
    %228 = arith.mulf %222, %226 : vector<2x32xf32>
    %229 = arith.addf %227, %228 : vector<2x32xf32>
    %230 = math.tanh %229 : vector<2x32xf32>
    %231 = arith.mulf %224, %230 : vector<2x32xf32>
    %232 = vector.extract_strided_slice %23 {offsets = [12, 0], sizes = [2, 128], strides = [1, 1]} : vector<16x128xf32> to vector<2x128xf32>
    %cst_53 = arith.constant dense<0.000000e+00> : vector<2x128xf32>
    %233 = tpu.matmul %211, %15, %cst_53 {dimension_numbers = #tpu.dot_dimension_numbers<[1], [0], [0], [1], [0, 0, 1, 1], [], []>} : vector<2x32xf32>, vector<32x128xf32>, vector<2x128xf32> -> vector<2x128xf32>
    %234 = arith.addf %232, %233 : vector<2x128xf32>
    %235 = arith.negf %234 : vector<2x128xf32>
    %236 = math.exp %235 : vector<2x128xf32>
    %cst_54 = arith.constant 1.000000e+00 : f32
    %237 = vector.broadcast %cst_54 : f32 to vector<2x128xf32>
    %238 = arith.addf %237, %236 : vector<2x128xf32>
    %239 = arith.divf %237, %238 : vector<2x128xf32>
    %240 = vector.extract_strided_slice %239 {offsets = [0, 0], sizes = [2, 32], strides = [1, 1]} : vector<2x128xf32> to vector<2x32xf32>
    %241 = vector.extract_strided_slice %239 {offsets = [0, 32], sizes = [2, 32], strides = [1, 1]} : vector<2x128xf32> to vector<2x32xf32>
    %242 = vector.extract_strided_slice %239 {offsets = [0, 96], sizes = [2, 32], strides = [1, 1]} : vector<2x128xf32> to vector<2x32xf32>
    %243 = vector.extract_strided_slice %234 {offsets = [0, 64], sizes = [2, 32], strides = [1, 1]} : vector<2x128xf32> to vector<2x32xf32>
    %244 = math.tanh %243 : vector<2x32xf32>
    %245 = arith.mulf %241, %209 : vector<2x32xf32>
    %246 = arith.mulf %240, %244 : vector<2x32xf32>
    %247 = arith.addf %245, %246 : vector<2x32xf32>
    %248 = math.tanh %247 : vector<2x32xf32>
    %249 = arith.mulf %242, %248 : vector<2x32xf32>
    %cst_55 = arith.constant dense<0.000000e+00> : vector<2x128xf32>
    %250 = tpu.matmul %211, %16, %cst_55 {dimension_numbers = #tpu.dot_dimension_numbers<[1], [0], [0], [1], [0, 0, 1, 1], [], []>} : vector<2x32xf32>, vector<32x128xf32>, vector<2x128xf32> -> vector<2x128xf32>
    %cst_56 = arith.constant dense<0.000000e+00> : vector<2x128xf32>
    %251 = tpu.matmul %231, %17, %cst_56 {dimension_numbers = #tpu.dot_dimension_numbers<[1], [0], [0], [1], [0, 0, 1, 1], [], []>} : vector<2x32xf32>, vector<32x128xf32>, vector<2x128xf32> -> vector<2x128xf32>
    %252 = arith.addf %250, %251 : vector<2x128xf32>
    %253 = vector.broadcast %18 : vector<1x128xf32> to vector<2x128xf32>
    %254 = arith.addf %252, %253 : vector<2x128xf32>
    %255 = arith.negf %254 : vector<2x128xf32>
    %256 = math.exp %255 : vector<2x128xf32>
    %cst_57 = arith.constant 1.000000e+00 : f32
    %257 = vector.broadcast %cst_57 : f32 to vector<2x128xf32>
    %258 = arith.addf %257, %256 : vector<2x128xf32>
    %259 = arith.divf %257, %258 : vector<2x128xf32>
    %260 = vector.extract_strided_slice %259 {offsets = [0, 0], sizes = [2, 32], strides = [1, 1]} : vector<2x128xf32> to vector<2x32xf32>
    %261 = vector.extract_strided_slice %259 {offsets = [0, 32], sizes = [2, 32], strides = [1, 1]} : vector<2x128xf32> to vector<2x32xf32>
    %262 = vector.extract_strided_slice %259 {offsets = [0, 96], sizes = [2, 32], strides = [1, 1]} : vector<2x128xf32> to vector<2x32xf32>
    %263 = vector.extract_strided_slice %254 {offsets = [0, 64], sizes = [2, 32], strides = [1, 1]} : vector<2x128xf32> to vector<2x32xf32>
    %264 = math.tanh %263 : vector<2x32xf32>
    %265 = arith.mulf %261, %229 : vector<2x32xf32>
    %266 = arith.mulf %260, %264 : vector<2x32xf32>
    %267 = arith.addf %265, %266 : vector<2x32xf32>
    %268 = math.tanh %267 : vector<2x32xf32>
    %269 = arith.mulf %262, %268 : vector<2x32xf32>
    %270 = vector.extract_strided_slice %23 {offsets = [14, 0], sizes = [2, 128], strides = [1, 1]} : vector<16x128xf32> to vector<2x128xf32>
    %cst_58 = arith.constant dense<0.000000e+00> : vector<2x128xf32>
    %271 = tpu.matmul %249, %15, %cst_58 {dimension_numbers = #tpu.dot_dimension_numbers<[1], [0], [0], [1], [0, 0, 1, 1], [], []>} : vector<2x32xf32>, vector<32x128xf32>, vector<2x128xf32> -> vector<2x128xf32>
    %272 = arith.addf %270, %271 : vector<2x128xf32>
    %273 = arith.negf %272 : vector<2x128xf32>
    %274 = math.exp %273 : vector<2x128xf32>
    %cst_59 = arith.constant 1.000000e+00 : f32
    %275 = vector.broadcast %cst_59 : f32 to vector<2x128xf32>
    %276 = arith.addf %275, %274 : vector<2x128xf32>
    %277 = arith.divf %275, %276 : vector<2x128xf32>
    %278 = vector.extract_strided_slice %277 {offsets = [0, 0], sizes = [2, 32], strides = [1, 1]} : vector<2x128xf32> to vector<2x32xf32>
    %279 = vector.extract_strided_slice %277 {offsets = [0, 32], sizes = [2, 32], strides = [1, 1]} : vector<2x128xf32> to vector<2x32xf32>
    %280 = vector.extract_strided_slice %277 {offsets = [0, 96], sizes = [2, 32], strides = [1, 1]} : vector<2x128xf32> to vector<2x32xf32>
    %281 = vector.extract_strided_slice %272 {offsets = [0, 64], sizes = [2, 32], strides = [1, 1]} : vector<2x128xf32> to vector<2x32xf32>
    %282 = math.tanh %281 : vector<2x32xf32>
    %283 = arith.mulf %279, %247 : vector<2x32xf32>
    %284 = arith.mulf %278, %282 : vector<2x32xf32>
    %285 = arith.addf %283, %284 : vector<2x32xf32>
    %286 = math.tanh %285 : vector<2x32xf32>
    %287 = arith.mulf %280, %286 : vector<2x32xf32>
    %cst_60 = arith.constant dense<0.000000e+00> : vector<2x128xf32>
    %288 = tpu.matmul %249, %16, %cst_60 {dimension_numbers = #tpu.dot_dimension_numbers<[1], [0], [0], [1], [0, 0, 1, 1], [], []>} : vector<2x32xf32>, vector<32x128xf32>, vector<2x128xf32> -> vector<2x128xf32>
    %cst_61 = arith.constant dense<0.000000e+00> : vector<2x128xf32>
    %289 = tpu.matmul %269, %17, %cst_61 {dimension_numbers = #tpu.dot_dimension_numbers<[1], [0], [0], [1], [0, 0, 1, 1], [], []>} : vector<2x32xf32>, vector<32x128xf32>, vector<2x128xf32> -> vector<2x128xf32>
    %290 = arith.addf %288, %289 : vector<2x128xf32>
    %291 = vector.broadcast %18 : vector<1x128xf32> to vector<2x128xf32>
    %292 = arith.addf %290, %291 : vector<2x128xf32>
    %293 = arith.negf %292 : vector<2x128xf32>
    %294 = math.exp %293 : vector<2x128xf32>
    %cst_62 = arith.constant 1.000000e+00 : f32
    %295 = vector.broadcast %cst_62 : f32 to vector<2x128xf32>
    %296 = arith.addf %295, %294 : vector<2x128xf32>
    %297 = arith.divf %295, %296 : vector<2x128xf32>
    %298 = vector.extract_strided_slice %297 {offsets = [0, 0], sizes = [2, 32], strides = [1, 1]} : vector<2x128xf32> to vector<2x32xf32>
    %299 = vector.extract_strided_slice %297 {offsets = [0, 32], sizes = [2, 32], strides = [1, 1]} : vector<2x128xf32> to vector<2x32xf32>
    %300 = vector.extract_strided_slice %297 {offsets = [0, 96], sizes = [2, 32], strides = [1, 1]} : vector<2x128xf32> to vector<2x32xf32>
    %301 = vector.extract_strided_slice %292 {offsets = [0, 64], sizes = [2, 32], strides = [1, 1]} : vector<2x128xf32> to vector<2x32xf32>
    %302 = math.tanh %301 : vector<2x32xf32>
    %303 = arith.mulf %299, %267 : vector<2x32xf32>
    %304 = arith.mulf %298, %302 : vector<2x32xf32>
    %305 = arith.addf %303, %304 : vector<2x32xf32>
    %306 = math.tanh %305 : vector<2x32xf32>
    %307 = arith.mulf %300, %306 : vector<2x32xf32>
    %cst_63 = arith.constant dense<0.000000e+00> : vector<2x128xf32>
    %308 = tpu.matmul %287, %16, %cst_63 {dimension_numbers = #tpu.dot_dimension_numbers<[1], [0], [0], [1], [0, 0, 1, 1], [], []>} : vector<2x32xf32>, vector<32x128xf32>, vector<2x128xf32> -> vector<2x128xf32>
    %cst_64 = arith.constant dense<0.000000e+00> : vector<2x128xf32>
    %309 = tpu.matmul %307, %17, %cst_64 {dimension_numbers = #tpu.dot_dimension_numbers<[1], [0], [0], [1], [0, 0, 1, 1], [], []>} : vector<2x32xf32>, vector<32x128xf32>, vector<2x128xf32> -> vector<2x128xf32>
    %310 = arith.addf %308, %309 : vector<2x128xf32>
    %311 = vector.broadcast %18 : vector<1x128xf32> to vector<2x128xf32>
    %312 = arith.addf %310, %311 : vector<2x128xf32>
    %313 = arith.negf %312 : vector<2x128xf32>
    %314 = math.exp %313 : vector<2x128xf32>
    %cst_65 = arith.constant 1.000000e+00 : f32
    %315 = vector.broadcast %cst_65 : f32 to vector<2x128xf32>
    %316 = arith.addf %315, %314 : vector<2x128xf32>
    %317 = arith.divf %315, %316 : vector<2x128xf32>
    %318 = vector.extract_strided_slice %317 {offsets = [0, 0], sizes = [2, 32], strides = [1, 1]} : vector<2x128xf32> to vector<2x32xf32>
    %319 = vector.extract_strided_slice %317 {offsets = [0, 32], sizes = [2, 32], strides = [1, 1]} : vector<2x128xf32> to vector<2x32xf32>
    %320 = vector.extract_strided_slice %317 {offsets = [0, 96], sizes = [2, 32], strides = [1, 1]} : vector<2x128xf32> to vector<2x32xf32>
    %321 = vector.extract_strided_slice %312 {offsets = [0, 64], sizes = [2, 32], strides = [1, 1]} : vector<2x128xf32> to vector<2x32xf32>
    %322 = math.tanh %321 : vector<2x32xf32>
    %323 = arith.mulf %319, %305 : vector<2x32xf32>
    %324 = arith.mulf %318, %322 : vector<2x32xf32>
    %325 = arith.addf %323, %324 : vector<2x32xf32>
    %326 = math.tanh %325 : vector<2x32xf32>
    %327 = arith.mulf %320, %326 : vector<2x32xf32>
    %c0_66 = arith.constant 0 : index
    %c0_67 = arith.constant 0 : index
    %328 = vector.load %arg13[%c0_66, %c0_67] : memref<32x128xf32, #tpu.memory_space<vmem>>, vector<32x128xf32>
    %c0_68 = arith.constant 0 : index
    %c0_69 = arith.constant 0 : index
    %329 = vector.load %arg15[%c0_68, %c0_69] : memref<32x128xf32, #tpu.memory_space<vmem>>, vector<32x128xf32>
    %c0_70 = arith.constant 0 : index
    %c0_71 = arith.constant 0 : index
    %330 = vector.load %arg16[%c0_70, %c0_71] : memref<32x128xf32, #tpu.memory_space<vmem>>, vector<32x128xf32>
    %c0_72 = arith.constant 0 : index
    %c0_73 = arith.constant 0 : index
    %331 = vector.load %arg14[%c0_72, %c0_73] : memref<1x128xf32, #tpu.memory_space<vmem>>, vector<1x128xf32>
    %c0_74 = arith.constant 0 : index
    %c0_75 = arith.constant 0 : index
    %332 = vector.load %arg17[%c0_74, %c0_75] : memref<1x128xf32, #tpu.memory_space<vmem>>, vector<1x128xf32>
    %c0_76 = arith.constant 0 : index
    %c0_77 = arith.constant 0 : index
    %333 = vector.load %arg12[%c0_76, %c0_77] : memref<64x128xf32, #tpu.memory_space<vmem>>, vector<64x128xf32>
    %cst_78 = arith.constant dense<0.000000e+00> : vector<16x128xf32>
    %334 = tpu.matmul %13, %333, %cst_78 {dimension_numbers = #tpu.dot_dimension_numbers<[1], [0], [0], [1], [0, 0, 1, 1], [], []>} : vector<16x64xf32>, vector<64x128xf32>, vector<16x128xf32> -> vector<16x128xf32>
    %335 = vector.broadcast %331 : vector<1x128xf32> to vector<16x128xf32>
    %336 = arith.addf %334, %335 : vector<16x128xf32>
    %cst_79 = arith.constant dense<0.000000e+00> : vector<2x128xf32>
    %337 = tpu.matmul %327, %328, %cst_79 {dimension_numbers = #tpu.dot_dimension_numbers<[1], [0], [0], [1], [0, 0, 1, 1], [], []>} : vector<2x32xf32>, vector<32x128xf32>, vector<2x128xf32> -> vector<2x128xf32>
    %338 = vector.broadcast %331 : vector<1x128xf32> to vector<2x128xf32>
    %339 = arith.addf %338, %337 : vector<2x128xf32>
    %340 = arith.negf %339 : vector<2x128xf32>
    %341 = math.exp %340 : vector<2x128xf32>
    %cst_80 = arith.constant 1.000000e+00 : f32
    %342 = vector.broadcast %cst_80 : f32 to vector<2x128xf32>
    %343 = arith.addf %342, %341 : vector<2x128xf32>
    %344 = arith.divf %342, %343 : vector<2x128xf32>
    %345 = vector.extract_strided_slice %344 {offsets = [0, 0], sizes = [2, 32], strides = [1, 1]} : vector<2x128xf32> to vector<2x32xf32>
    %346 = vector.extract_strided_slice %344 {offsets = [0, 32], sizes = [2, 32], strides = [1, 1]} : vector<2x128xf32> to vector<2x32xf32>
    %347 = vector.extract_strided_slice %344 {offsets = [0, 96], sizes = [2, 32], strides = [1, 1]} : vector<2x128xf32> to vector<2x32xf32>
    %348 = vector.extract_strided_slice %339 {offsets = [0, 64], sizes = [2, 32], strides = [1, 1]} : vector<2x128xf32> to vector<2x32xf32>
    %349 = math.tanh %348 : vector<2x32xf32>
    %350 = arith.mulf %346, %14 : vector<2x32xf32>
    %351 = arith.mulf %345, %349 : vector<2x32xf32>
    %352 = arith.addf %350, %351 : vector<2x32xf32>
    %353 = math.tanh %352 : vector<2x32xf32>
    %354 = arith.mulf %347, %353 : vector<2x32xf32>
    %355 = vector.extract_strided_slice %336 {offsets = [14, 0], sizes = [2, 128], strides = [1, 1]} : vector<16x128xf32> to vector<2x128xf32>
    %cst_81 = arith.constant dense<0.000000e+00> : vector<2x128xf32>
    %356 = tpu.matmul %354, %328, %cst_81 {dimension_numbers = #tpu.dot_dimension_numbers<[1], [0], [0], [1], [0, 0, 1, 1], [], []>} : vector<2x32xf32>, vector<32x128xf32>, vector<2x128xf32> -> vector<2x128xf32>
    %357 = arith.addf %355, %356 : vector<2x128xf32>
    %358 = arith.negf %357 : vector<2x128xf32>
    %359 = math.exp %358 : vector<2x128xf32>
    %cst_82 = arith.constant 1.000000e+00 : f32
    %360 = vector.broadcast %cst_82 : f32 to vector<2x128xf32>
    %361 = arith.addf %360, %359 : vector<2x128xf32>
    %362 = arith.divf %360, %361 : vector<2x128xf32>
    %363 = vector.extract_strided_slice %362 {offsets = [0, 0], sizes = [2, 32], strides = [1, 1]} : vector<2x128xf32> to vector<2x32xf32>
    %364 = vector.extract_strided_slice %362 {offsets = [0, 32], sizes = [2, 32], strides = [1, 1]} : vector<2x128xf32> to vector<2x32xf32>
    %365 = vector.extract_strided_slice %362 {offsets = [0, 96], sizes = [2, 32], strides = [1, 1]} : vector<2x128xf32> to vector<2x32xf32>
    %366 = vector.extract_strided_slice %357 {offsets = [0, 64], sizes = [2, 32], strides = [1, 1]} : vector<2x128xf32> to vector<2x32xf32>
    %367 = math.tanh %366 : vector<2x32xf32>
    %368 = arith.mulf %364, %352 : vector<2x32xf32>
    %369 = arith.mulf %363, %367 : vector<2x32xf32>
    %370 = arith.addf %368, %369 : vector<2x32xf32>
    %371 = math.tanh %370 : vector<2x32xf32>
    %372 = arith.mulf %365, %371 : vector<2x32xf32>
    %cst_83 = arith.constant dense<0.000000e+00> : vector<2x128xf32>
    %373 = tpu.matmul %354, %329, %cst_83 {dimension_numbers = #tpu.dot_dimension_numbers<[1], [0], [0], [1], [0, 0, 1, 1], [], []>} : vector<2x32xf32>, vector<32x128xf32>, vector<2x128xf32> -> vector<2x128xf32>
    %cst_84 = arith.constant dense<0.000000e+00> : vector<2x128xf32>
    %374 = tpu.matmul %14, %330, %cst_84 {dimension_numbers = #tpu.dot_dimension_numbers<[1], [0], [0], [1], [0, 0, 1, 1], [], []>} : vector<2x32xf32>, vector<32x128xf32>, vector<2x128xf32> -> vector<2x128xf32>
    %375 = arith.addf %373, %374 : vector<2x128xf32>
    %376 = vector.broadcast %332 : vector<1x128xf32> to vector<2x128xf32>
    %377 = arith.addf %375, %376 : vector<2x128xf32>
    %378 = arith.negf %377 : vector<2x128xf32>
    %379 = math.exp %378 : vector<2x128xf32>
    %cst_85 = arith.constant 1.000000e+00 : f32
    %380 = vector.broadcast %cst_85 : f32 to vector<2x128xf32>
    %381 = arith.addf %380, %379 : vector<2x128xf32>
    %382 = arith.divf %380, %381 : vector<2x128xf32>
    %383 = vector.extract_strided_slice %382 {offsets = [0, 0], sizes = [2, 32], strides = [1, 1]} : vector<2x128xf32> to vector<2x32xf32>
    %384 = vector.extract_strided_slice %382 {offsets = [0, 32], sizes = [2, 32], strides = [1, 1]} : vector<2x128xf32> to vector<2x32xf32>
    %385 = vector.extract_strided_slice %382 {offsets = [0, 96], sizes = [2, 32], strides = [1, 1]} : vector<2x128xf32> to vector<2x32xf32>
    %386 = vector.extract_strided_slice %377 {offsets = [0, 64], sizes = [2, 32], strides = [1, 1]} : vector<2x128xf32> to vector<2x32xf32>
    %387 = math.tanh %386 : vector<2x32xf32>
    %388 = arith.mulf %384, %14 : vector<2x32xf32>
    %389 = arith.mulf %383, %387 : vector<2x32xf32>
    %390 = arith.addf %388, %389 : vector<2x32xf32>
    %391 = math.tanh %390 : vector<2x32xf32>
    %392 = arith.mulf %385, %391 : vector<2x32xf32>
    %c14 = arith.constant 14 : index
    %c0_86 = arith.constant 0 : index
    %393 = vector.load %arg25[%c14, %c0_86] : memref<16x32xf32, #tpu.memory_space<vmem>>, vector<2x32xf32>
    tpu.vector_store %arg25[%c14, %c0_86], %392 {strides = array<i32>} : memref<16x32xf32, #tpu.memory_space<vmem>>, vector<2x32xf32>,
    %394 = vector.extract_strided_slice %336 {offsets = [12, 0], sizes = [2, 128], strides = [1, 1]} : vector<16x128xf32> to vector<2x128xf32>
    %cst_87 = arith.constant dense<0.000000e+00> : vector<2x128xf32>
    %395 = tpu.matmul %372, %328, %cst_87 {dimension_numbers = #tpu.dot_dimension_numbers<[1], [0], [0], [1], [0, 0, 1, 1], [], []>} : vector<2x32xf32>, vector<32x128xf32>, vector<2x128xf32> -> vector<2x128xf32>
    %396 = arith.addf %394, %395 : vector<2x128xf32>
    %397 = arith.negf %396 : vector<2x128xf32>
    %398 = math.exp %397 : vector<2x128xf32>
    %cst_88 = arith.constant 1.000000e+00 : f32
    %399 = vector.broadcast %cst_88 : f32 to vector<2x128xf32>
    %400 = arith.addf %399, %398 : vector<2x128xf32>
    %401 = arith.divf %399, %400 : vector<2x128xf32>
    %402 = vector.extract_strided_slice %401 {offsets = [0, 0], sizes = [2, 32], strides = [1, 1]} : vector<2x128xf32> to vector<2x32xf32>
    %403 = vector.extract_strided_slice %401 {offsets = [0, 32], sizes = [2, 32], strides = [1, 1]} : vector<2x128xf32> to vector<2x32xf32>
    %404 = vector.extract_strided_slice %401 {offsets = [0, 96], sizes = [2, 32], strides = [1, 1]} : vector<2x128xf32> to vector<2x32xf32>
    %405 = vector.extract_strided_slice %396 {offsets = [0, 64], sizes = [2, 32], strides = [1, 1]} : vector<2x128xf32> to vector<2x32xf32>
    %406 = math.tanh %405 : vector<2x32xf32>
    %407 = arith.mulf %403, %370 : vector<2x32xf32>
    %408 = arith.mulf %402, %406 : vector<2x32xf32>
    %409 = arith.addf %407, %408 : vector<2x32xf32>
    %410 = math.tanh %409 : vector<2x32xf32>
    %411 = arith.mulf %404, %410 : vector<2x32xf32>
    %cst_89 = arith.constant dense<0.000000e+00> : vector<2x128xf32>
    %412 = tpu.matmul %372, %329, %cst_89 {dimension_numbers = #tpu.dot_dimension_numbers<[1], [0], [0], [1], [0, 0, 1, 1], [], []>} : vector<2x32xf32>, vector<32x128xf32>, vector<2x128xf32> -> vector<2x128xf32>
    %cst_90 = arith.constant dense<0.000000e+00> : vector<2x128xf32>
    %413 = tpu.matmul %392, %330, %cst_90 {dimension_numbers = #tpu.dot_dimension_numbers<[1], [0], [0], [1], [0, 0, 1, 1], [], []>} : vector<2x32xf32>, vector<32x128xf32>, vector<2x128xf32> -> vector<2x128xf32>
    %414 = arith.addf %412, %413 : vector<2x128xf32>
    %415 = vector.broadcast %332 : vector<1x128xf32> to vector<2x128xf32>
    %416 = arith.addf %414, %415 : vector<2x128xf32>
    %417 = arith.negf %416 : vector<2x128xf32>
    %418 = math.exp %417 : vector<2x128xf32>
    %cst_91 = arith.constant 1.000000e+00 : f32
    %419 = vector.broadcast %cst_91 : f32 to vector<2x128xf32>
    %420 = arith.addf %419, %418 : vector<2x128xf32>
    %421 = arith.divf %419, %420 : vector<2x128xf32>
    %422 = vector.extract_strided_slice %421 {offsets = [0, 0], sizes = [2, 32], strides = [1, 1]} : vector<2x128xf32> to vector<2x32xf32>
    %423 = vector.extract_strided_slice %421 {offsets = [0, 32], sizes = [2, 32], strides = [1, 1]} : vector<2x128xf32> to vector<2x32xf32>
    %424 = vector.extract_strided_slice %421 {offsets = [0, 96], sizes = [2, 32], strides = [1, 1]} : vector<2x128xf32> to vector<2x32xf32>
    %425 = vector.extract_strided_slice %416 {offsets = [0, 64], sizes = [2, 32], strides = [1, 1]} : vector<2x128xf32> to vector<2x32xf32>
    %426 = math.tanh %425 : vector<2x32xf32>
    %427 = arith.mulf %423, %390 : vector<2x32xf32>
    %428 = arith.mulf %422, %426 : vector<2x32xf32>
    %429 = arith.addf %427, %428 : vector<2x32xf32>
    %430 = math.tanh %429 : vector<2x32xf32>
    %431 = arith.mulf %424, %430 : vector<2x32xf32>
    %c12 = arith.constant 12 : index
    %c0_92 = arith.constant 0 : index
    %432 = vector.load %arg25[%c12, %c0_92] : memref<16x32xf32, #tpu.memory_space<vmem>>, vector<2x32xf32>
    tpu.vector_store %arg25[%c12, %c0_92], %431 {strides = array<i32>} : memref<16x32xf32, #tpu.memory_space<vmem>>, vector<2x32xf32>,
    %433 = vector.extract_strided_slice %336 {offsets = [10, 0], sizes = [2, 128], strides = [1, 1]} : vector<16x128xf32> to vector<2x128xf32>
    %cst_93 = arith.constant dense<0.000000e+00> : vector<2x128xf32>
    %434 = tpu.matmul %411, %328, %cst_93 {dimension_numbers = #tpu.dot_dimension_numbers<[1], [0], [0], [1], [0, 0, 1, 1], [], []>} : vector<2x32xf32>, vector<32x128xf32>, vector<2x128xf32> -> vector<2x128xf32>
    %435 = arith.addf %433, %434 : vector<2x128xf32>
    %436 = arith.negf %435 : vector<2x128xf32>
    %437 = math.exp %436 : vector<2x128xf32>
    %cst_94 = arith.constant 1.000000e+00 : f32
    %438 = vector.broadcast %cst_94 : f32 to vector<2x128xf32>
    %439 = arith.addf %438, %437 : vector<2x128xf32>
    %440 = arith.divf %438, %439 : vector<2x128xf32>
    %441 = vector.extract_strided_slice %440 {offsets = [0, 0], sizes = [2, 32], strides = [1, 1]} : vector<2x128xf32> to vector<2x32xf32>
    %442 = vector.extract_strided_slice %440 {offsets = [0, 32], sizes = [2, 32], strides = [1, 1]} : vector<2x128xf32> to vector<2x32xf32>
    %443 = vector.extract_strided_slice %440 {offsets = [0, 96], sizes = [2, 32], strides = [1, 1]} : vector<2x128xf32> to vector<2x32xf32>
    %444 = vector.extract_strided_slice %435 {offsets = [0, 64], sizes = [2, 32], strides = [1, 1]} : vector<2x128xf32> to vector<2x32xf32>
    %445 = math.tanh %444 : vector<2x32xf32>
    %446 = arith.mulf %442, %409 : vector<2x32xf32>
    %447 = arith.mulf %441, %445 : vector<2x32xf32>
    %448 = arith.addf %446, %447 : vector<2x32xf32>
    %449 = math.tanh %448 : vector<2x32xf32>
    %450 = arith.mulf %443, %449 : vector<2x32xf32>
    %cst_95 = arith.constant dense<0.000000e+00> : vector<2x128xf32>
    %451 = tpu.matmul %411, %329, %cst_95 {dimension_numbers = #tpu.dot_dimension_numbers<[1], [0], [0], [1], [0, 0, 1, 1], [], []>} : vector<2x32xf32>, vector<32x128xf32>, vector<2x128xf32> -> vector<2x128xf32>
    %cst_96 = arith.constant dense<0.000000e+00> : vector<2x128xf32>
    %452 = tpu.matmul %431, %330, %cst_96 {dimension_numbers = #tpu.dot_dimension_numbers<[1], [0], [0], [1], [0, 0, 1, 1], [], []>} : vector<2x32xf32>, vector<32x128xf32>, vector<2x128xf32> -> vector<2x128xf32>
    %453 = arith.addf %451, %452 : vector<2x128xf32>
    %454 = vector.broadcast %332 : vector<1x128xf32> to vector<2x128xf32>
    %455 = arith.addf %453, %454 : vector<2x128xf32>
    %456 = arith.negf %455 : vector<2x128xf32>
    %457 = math.exp %456 : vector<2x128xf32>
    %cst_97 = arith.constant 1.000000e+00 : f32
    %458 = vector.broadcast %cst_97 : f32 to vector<2x128xf32>
    %459 = arith.addf %458, %457 : vector<2x128xf32>
    %460 = arith.divf %458, %459 : vector<2x128xf32>
    %461 = vector.extract_strided_slice %460 {offsets = [0, 0], sizes = [2, 32], strides = [1, 1]} : vector<2x128xf32> to vector<2x32xf32>
    %462 = vector.extract_strided_slice %460 {offsets = [0, 32], sizes = [2, 32], strides = [1, 1]} : vector<2x128xf32> to vector<2x32xf32>
    %463 = vector.extract_strided_slice %460 {offsets = [0, 96], sizes = [2, 32], strides = [1, 1]} : vector<2x128xf32> to vector<2x32xf32>
    %464 = vector.extract_strided_slice %455 {offsets = [0, 64], sizes = [2, 32], strides = [1, 1]} : vector<2x128xf32> to vector<2x32xf32>
    %465 = math.tanh %464 : vector<2x32xf32>
    %466 = arith.mulf %462, %429 : vector<2x32xf32>
    %467 = arith.mulf %461, %465 : vector<2x32xf32>
    %468 = arith.addf %466, %467 : vector<2x32xf32>
    %469 = math.tanh %468 : vector<2x32xf32>
    %470 = arith.mulf %463, %469 : vector<2x32xf32>
    %c10 = arith.constant 10 : index
    %c0_98 = arith.constant 0 : index
    %471 = vector.load %arg25[%c10, %c0_98] : memref<16x32xf32, #tpu.memory_space<vmem>>, vector<2x32xf32>
    tpu.vector_store %arg25[%c10, %c0_98], %470 {strides = array<i32>} : memref<16x32xf32, #tpu.memory_space<vmem>>, vector<2x32xf32>,
    %472 = vector.extract_strided_slice %336 {offsets = [8, 0], sizes = [2, 128], strides = [1, 1]} : vector<16x128xf32> to vector<2x128xf32>
    %cst_99 = arith.constant dense<0.000000e+00> : vector<2x128xf32>
    %473 = tpu.matmul %450, %328, %cst_99 {dimension_numbers = #tpu.dot_dimension_numbers<[1], [0], [0], [1], [0, 0, 1, 1], [], []>} : vector<2x32xf32>, vector<32x128xf32>, vector<2x128xf32> -> vector<2x128xf32>
    %474 = arith.addf %472, %473 : vector<2x128xf32>
    %475 = arith.negf %474 : vector<2x128xf32>
    %476 = math.exp %475 : vector<2x128xf32>
    %cst_100 = arith.constant 1.000000e+00 : f32
    %477 = vector.broadcast %cst_100 : f32 to vector<2x128xf32>
    %478 = arith.addf %477, %476 : vector<2x128xf32>
    %479 = arith.divf %477, %478 : vector<2x128xf32>
    %480 = vector.extract_strided_slice %479 {offsets = [0, 0], sizes = [2, 32], strides = [1, 1]} : vector<2x128xf32> to vector<2x32xf32>
    %481 = vector.extract_strided_slice %479 {offsets = [0, 32], sizes = [2, 32], strides = [1, 1]} : vector<2x128xf32> to vector<2x32xf32>
    %482 = vector.extract_strided_slice %479 {offsets = [0, 96], sizes = [2, 32], strides = [1, 1]} : vector<2x128xf32> to vector<2x32xf32>
    %483 = vector.extract_strided_slice %474 {offsets = [0, 64], sizes = [2, 32], strides = [1, 1]} : vector<2x128xf32> to vector<2x32xf32>
    %484 = math.tanh %483 : vector<2x32xf32>
    %485 = arith.mulf %481, %448 : vector<2x32xf32>
    %486 = arith.mulf %480, %484 : vector<2x32xf32>
    %487 = arith.addf %485, %486 : vector<2x32xf32>
    %488 = math.tanh %487 : vector<2x32xf32>
    %489 = arith.mulf %482, %488 : vector<2x32xf32>
    %cst_101 = arith.constant dense<0.000000e+00> : vector<2x128xf32>
    %490 = tpu.matmul %450, %329, %cst_101 {dimension_numbers = #tpu.dot_dimension_numbers<[1], [0], [0], [1], [0, 0, 1, 1], [], []>} : vector<2x32xf32>, vector<32x128xf32>, vector<2x128xf32> -> vector<2x128xf32>
    %cst_102 = arith.constant dense<0.000000e+00> : vector<2x128xf32>
    %491 = tpu.matmul %470, %330, %cst_102 {dimension_numbers = #tpu.dot_dimension_numbers<[1], [0], [0], [1], [0, 0, 1, 1], [], []>} : vector<2x32xf32>, vector<32x128xf32>, vector<2x128xf32> -> vector<2x128xf32>
    %492 = arith.addf %490, %491 : vector<2x128xf32>
    %493 = vector.broadcast %332 : vector<1x128xf32> to vector<2x128xf32>
    %494 = arith.addf %492, %493 : vector<2x128xf32>
    %495 = arith.negf %494 : vector<2x128xf32>
    %496 = math.exp %495 : vector<2x128xf32>
    %cst_103 = arith.constant 1.000000e+00 : f32
    %497 = vector.broadcast %cst_103 : f32 to vector<2x128xf32>
    %498 = arith.addf %497, %496 : vector<2x128xf32>
    %499 = arith.divf %497, %498 : vector<2x128xf32>
    %500 = vector.extract_strided_slice %499 {offsets = [0, 0], sizes = [2, 32], strides = [1, 1]} : vector<2x128xf32> to vector<2x32xf32>
    %501 = vector.extract_strided_slice %499 {offsets = [0, 32], sizes = [2, 32], strides = [1, 1]} : vector<2x128xf32> to vector<2x32xf32>
    %502 = vector.extract_strided_slice %499 {offsets = [0, 96], sizes = [2, 32], strides = [1, 1]} : vector<2x128xf32> to vector<2x32xf32>
    %503 = vector.extract_strided_slice %494 {offsets = [0, 64], sizes = [2, 32], strides = [1, 1]} : vector<2x128xf32> to vector<2x32xf32>
    %504 = math.tanh %503 : vector<2x32xf32>
    %505 = arith.mulf %501, %468 : vector<2x32xf32>
    %506 = arith.mulf %500, %504 : vector<2x32xf32>
    %507 = arith.addf %505, %506 : vector<2x32xf32>
    %508 = math.tanh %507 : vector<2x32xf32>
    %509 = arith.mulf %502, %508 : vector<2x32xf32>
    %c8 = arith.constant 8 : index
    %c0_104 = arith.constant 0 : index
    %510 = vector.load %arg25[%c8, %c0_104] : memref<16x32xf32, #tpu.memory_space<vmem>>, vector<2x32xf32>
    tpu.vector_store %arg25[%c8, %c0_104], %509 {strides = array<i32>} : memref<16x32xf32, #tpu.memory_space<vmem>>, vector<2x32xf32>,
    %511 = vector.extract_strided_slice %336 {offsets = [6, 0], sizes = [2, 128], strides = [1, 1]} : vector<16x128xf32> to vector<2x128xf32>
    %cst_105 = arith.constant dense<0.000000e+00> : vector<2x128xf32>
    %512 = tpu.matmul %489, %328, %cst_105 {dimension_numbers = #tpu.dot_dimension_numbers<[1], [0], [0], [1], [0, 0, 1, 1], [], []>} : vector<2x32xf32>, vector<32x128xf32>, vector<2x128xf32> -> vector<2x128xf32>
    %513 = arith.addf %511, %512 : vector<2x128xf32>
    %514 = arith.negf %513 : vector<2x128xf32>
    %515 = math.exp %514 : vector<2x128xf32>
    %cst_106 = arith.constant 1.000000e+00 : f32
    %516 = vector.broadcast %cst_106 : f32 to vector<2x128xf32>
    %517 = arith.addf %516, %515 : vector<2x128xf32>
    %518 = arith.divf %516, %517 : vector<2x128xf32>
    %519 = vector.extract_strided_slice %518 {offsets = [0, 0], sizes = [2, 32], strides = [1, 1]} : vector<2x128xf32> to vector<2x32xf32>
    %520 = vector.extract_strided_slice %518 {offsets = [0, 32], sizes = [2, 32], strides = [1, 1]} : vector<2x128xf32> to vector<2x32xf32>
    %521 = vector.extract_strided_slice %518 {offsets = [0, 96], sizes = [2, 32], strides = [1, 1]} : vector<2x128xf32> to vector<2x32xf32>
    %522 = vector.extract_strided_slice %513 {offsets = [0, 64], sizes = [2, 32], strides = [1, 1]} : vector<2x128xf32> to vector<2x32xf32>
    %523 = math.tanh %522 : vector<2x32xf32>
    %524 = arith.mulf %520, %487 : vector<2x32xf32>
    %525 = arith.mulf %519, %523 : vector<2x32xf32>
    %526 = arith.addf %524, %525 : vector<2x32xf32>
    %527 = math.tanh %526 : vector<2x32xf32>
    %528 = arith.mulf %521, %527 : vector<2x32xf32>
    %cst_107 = arith.constant dense<0.000000e+00> : vector<2x128xf32>
    %529 = tpu.matmul %489, %329, %cst_107 {dimension_numbers = #tpu.dot_dimension_numbers<[1], [0], [0], [1], [0, 0, 1, 1], [], []>} : vector<2x32xf32>, vector<32x128xf32>, vector<2x128xf32> -> vector<2x128xf32>
    %cst_108 = arith.constant dense<0.000000e+00> : vector<2x128xf32>
    %530 = tpu.matmul %509, %330, %cst_108 {dimension_numbers = #tpu.dot_dimension_numbers<[1], [0], [0], [1], [0, 0, 1, 1], [], []>} : vector<2x32xf32>, vector<32x128xf32>, vector<2x128xf32> -> vector<2x128xf32>
    %531 = arith.addf %529, %530 : vector<2x128xf32>
    %532 = vector.broadcast %332 : vector<1x128xf32> to vector<2x128xf32>
    %533 = arith.addf %531, %532 : vector<2x128xf32>
    %534 = arith.negf %533 : vector<2x128xf32>
    %535 = math.exp %534 : vector<2x128xf32>
    %cst_109 = arith.constant 1.000000e+00 : f32
    %536 = vector.broadcast %cst_109 : f32 to vector<2x128xf32>
    %537 = arith.addf %536, %535 : vector<2x128xf32>
    %538 = arith.divf %536, %537 : vector<2x128xf32>
    %539 = vector.extract_strided_slice %538 {offsets = [0, 0], sizes = [2, 32], strides = [1, 1]} : vector<2x128xf32> to vector<2x32xf32>
    %540 = vector.extract_strided_slice %538 {offsets = [0, 32], sizes = [2, 32], strides = [1, 1]} : vector<2x128xf32> to vector<2x32xf32>
    %541 = vector.extract_strided_slice %538 {offsets = [0, 96], sizes = [2, 32], strides = [1, 1]} : vector<2x128xf32> to vector<2x32xf32>
    %542 = vector.extract_strided_slice %533 {offsets = [0, 64], sizes = [2, 32], strides = [1, 1]} : vector<2x128xf32> to vector<2x32xf32>
    %543 = math.tanh %542 : vector<2x32xf32>
    %544 = arith.mulf %540, %507 : vector<2x32xf32>
    %545 = arith.mulf %539, %543 : vector<2x32xf32>
    %546 = arith.addf %544, %545 : vector<2x32xf32>
    %547 = math.tanh %546 : vector<2x32xf32>
    %548 = arith.mulf %541, %547 : vector<2x32xf32>
    %c6 = arith.constant 6 : index
    %c0_110 = arith.constant 0 : index
    %549 = vector.load %arg25[%c6, %c0_110] : memref<16x32xf32, #tpu.memory_space<vmem>>, vector<2x32xf32>
    tpu.vector_store %arg25[%c6, %c0_110], %548 {strides = array<i32>} : memref<16x32xf32, #tpu.memory_space<vmem>>, vector<2x32xf32>,
    %550 = vector.extract_strided_slice %336 {offsets = [4, 0], sizes = [2, 128], strides = [1, 1]} : vector<16x128xf32> to vector<2x128xf32>
    %cst_111 = arith.constant dense<0.000000e+00> : vector<2x128xf32>
    %551 = tpu.matmul %528, %328, %cst_111 {dimension_numbers = #tpu.dot_dimension_numbers<[1], [0], [0], [1], [0, 0, 1, 1], [], []>} : vector<2x32xf32>, vector<32x128xf32>, vector<2x128xf32> -> vector<2x128xf32>
    %552 = arith.addf %550, %551 : vector<2x128xf32>
    %553 = arith.negf %552 : vector<2x128xf32>
    %554 = math.exp %553 : vector<2x128xf32>
    %cst_112 = arith.constant 1.000000e+00 : f32
    %555 = vector.broadcast %cst_112 : f32 to vector<2x128xf32>
    %556 = arith.addf %555, %554 : vector<2x128xf32>
    %557 = arith.divf %555, %556 : vector<2x128xf32>
    %558 = vector.extract_strided_slice %557 {offsets = [0, 0], sizes = [2, 32], strides = [1, 1]} : vector<2x128xf32> to vector<2x32xf32>
    %559 = vector.extract_strided_slice %557 {offsets = [0, 32], sizes = [2, 32], strides = [1, 1]} : vector<2x128xf32> to vector<2x32xf32>
    %560 = vector.extract_strided_slice %557 {offsets = [0, 96], sizes = [2, 32], strides = [1, 1]} : vector<2x128xf32> to vector<2x32xf32>
    %561 = vector.extract_strided_slice %552 {offsets = [0, 64], sizes = [2, 32], strides = [1, 1]} : vector<2x128xf32> to vector<2x32xf32>
    %562 = math.tanh %561 : vector<2x32xf32>
    %563 = arith.mulf %559, %526 : vector<2x32xf32>
    %564 = arith.mulf %558, %562 : vector<2x32xf32>
    %565 = arith.addf %563, %564 : vector<2x32xf32>
    %566 = math.tanh %565 : vector<2x32xf32>
    %567 = arith.mulf %560, %566 : vector<2x32xf32>
    %cst_113 = arith.constant dense<0.000000e+00> : vector<2x128xf32>
    %568 = tpu.matmul %528, %329, %cst_113 {dimension_numbers = #tpu.dot_dimension_numbers<[1], [0], [0], [1], [0, 0, 1, 1], [], []>} : vector<2x32xf32>, vector<32x128xf32>, vector<2x128xf32> -> vector<2x128xf32>
    %cst_114 = arith.constant dense<0.000000e+00> : vector<2x128xf32>
    %569 = tpu.matmul %548, %330, %cst_114 {dimension_numbers = #tpu.dot_dimension_numbers<[1], [0], [0], [1], [0, 0, 1, 1], [], []>} : vector<2x32xf32>, vector<32x128xf32>, vector<2x128xf32> -> vector<2x128xf32>
    %570 = arith.addf %568, %569 : vector<2x128xf32>
    %571 = vector.broadcast %332 : vector<1x128xf32> to vector<2x128xf32>
    %572 = arith.addf %570, %571 : vector<2x128xf32>
    %573 = arith.negf %572 : vector<2x128xf32>
    %574 = math.exp %573 : vector<2x128xf32>
    %cst_115 = arith.constant 1.000000e+00 : f32
    %575 = vector.broadcast %cst_115 : f32 to vector<2x128xf32>
    %576 = arith.addf %575, %574 : vector<2x128xf32>
    %577 = arith.divf %575, %576 : vector<2x128xf32>
    %578 = vector.extract_strided_slice %577 {offsets = [0, 0], sizes = [2, 32], strides = [1, 1]} : vector<2x128xf32> to vector<2x32xf32>
    %579 = vector.extract_strided_slice %577 {offsets = [0, 32], sizes = [2, 32], strides = [1, 1]} : vector<2x128xf32> to vector<2x32xf32>
    %580 = vector.extract_strided_slice %577 {offsets = [0, 96], sizes = [2, 32], strides = [1, 1]} : vector<2x128xf32> to vector<2x32xf32>
    %581 = vector.extract_strided_slice %572 {offsets = [0, 64], sizes = [2, 32], strides = [1, 1]} : vector<2x128xf32> to vector<2x32xf32>
    %582 = math.tanh %581 : vector<2x32xf32>
    %583 = arith.mulf %579, %546 : vector<2x32xf32>
    %584 = arith.mulf %578, %582 : vector<2x32xf32>
    %585 = arith.addf %583, %584 : vector<2x32xf32>
    %586 = math.tanh %585 : vector<2x32xf32>
    %587 = arith.mulf %580, %586 : vector<2x32xf32>
    %c4 = arith.constant 4 : index
    %c0_116 = arith.constant 0 : index
    %588 = vector.load %arg25[%c4, %c0_116] : memref<16x32xf32, #tpu.memory_space<vmem>>, vector<2x32xf32>
    tpu.vector_store %arg25[%c4, %c0_116], %587 {strides = array<i32>} : memref<16x32xf32, #tpu.memory_space<vmem>>, vector<2x32xf32>,
    %589 = vector.extract_strided_slice %336 {offsets = [2, 0], sizes = [2, 128], strides = [1, 1]} : vector<16x128xf32> to vector<2x128xf32>
    %cst_117 = arith.constant dense<0.000000e+00> : vector<2x128xf32>
    %590 = tpu.matmul %567, %328, %cst_117 {dimension_numbers = #tpu.dot_dimension_numbers<[1], [0], [0], [1], [0, 0, 1, 1], [], []>} : vector<2x32xf32>, vector<32x128xf32>, vector<2x128xf32> -> vector<2x128xf32>
    %591 = arith.addf %589, %590 : vector<2x128xf32>
    %592 = arith.negf %591 : vector<2x128xf32>
    %593 = math.exp %592 : vector<2x128xf32>
    %cst_118 = arith.constant 1.000000e+00 : f32
    %594 = vector.broadcast %cst_118 : f32 to vector<2x128xf32>
    %595 = arith.addf %594, %593 : vector<2x128xf32>
    %596 = arith.divf %594, %595 : vector<2x128xf32>
    %597 = vector.extract_strided_slice %596 {offsets = [0, 0], sizes = [2, 32], strides = [1, 1]} : vector<2x128xf32> to vector<2x32xf32>
    %598 = vector.extract_strided_slice %596 {offsets = [0, 32], sizes = [2, 32], strides = [1, 1]} : vector<2x128xf32> to vector<2x32xf32>
    %599 = vector.extract_strided_slice %596 {offsets = [0, 96], sizes = [2, 32], strides = [1, 1]} : vector<2x128xf32> to vector<2x32xf32>
    %600 = vector.extract_strided_slice %591 {offsets = [0, 64], sizes = [2, 32], strides = [1, 1]} : vector<2x128xf32> to vector<2x32xf32>
    %601 = math.tanh %600 : vector<2x32xf32>
    %602 = arith.mulf %598, %565 : vector<2x32xf32>
    %603 = arith.mulf %597, %601 : vector<2x32xf32>
    %604 = arith.addf %602, %603 : vector<2x32xf32>
    %605 = math.tanh %604 : vector<2x32xf32>
    %606 = arith.mulf %599, %605 : vector<2x32xf32>
    %cst_119 = arith.constant dense<0.000000e+00> : vector<2x128xf32>
    %607 = tpu.matmul %567, %329, %cst_119 {dimension_numbers = #tpu.dot_dimension_numbers<[1], [0], [0], [1], [0, 0, 1, 1], [], []>} : vector<2x32xf32>, vector<32x128xf32>, vector<2x128xf32> -> vector<2x128xf32>
    %cst_120 = arith.constant dense<0.000000e+00> : vector<2x128xf32>
    %608 = tpu.matmul %587, %330, %cst_120 {dimension_numbers = #tpu.dot_dimension_numbers<[1], [0], [0], [1], [0, 0, 1, 1], [], []>} : vector<2x32xf32>, vector<32x128xf32>, vector<2x128xf32> -> vector<2x128xf32>
    %609 = arith.addf %607, %608 : vector<2x128xf32>
    %610 = vector.broadcast %332 : vector<1x128xf32> to vector<2x128xf32>
    %611 = arith.addf %609, %610 : vector<2x128xf32>
    %612 = arith.negf %611 : vector<2x128xf32>
    %613 = math.exp %612 : vector<2x128xf32>
    %cst_121 = arith.constant 1.000000e+00 : f32
    %614 = vector.broadcast %cst_121 : f32 to vector<2x128xf32>
    %615 = arith.addf %614, %613 : vector<2x128xf32>
    %616 = arith.divf %614, %615 : vector<2x128xf32>
    %617 = vector.extract_strided_slice %616 {offsets = [0, 0], sizes = [2, 32], strides = [1, 1]} : vector<2x128xf32> to vector<2x32xf32>
    %618 = vector.extract_strided_slice %616 {offsets = [0, 32], sizes = [2, 32], strides = [1, 1]} : vector<2x128xf32> to vector<2x32xf32>
    %619 = vector.extract_strided_slice %616 {offsets = [0, 96], sizes = [2, 32], strides = [1, 1]} : vector<2x128xf32> to vector<2x32xf32>
    %620 = vector.extract_strided_slice %611 {offsets = [0, 64], sizes = [2, 32], strides = [1, 1]} : vector<2x128xf32> to vector<2x32xf32>
    %621 = math.tanh %620 : vector<2x32xf32>
    %622 = arith.mulf %618, %585 : vector<2x32xf32>
    %623 = arith.mulf %617, %621 : vector<2x32xf32>
    %624 = arith.addf %622, %623 : vector<2x32xf32>
    %625 = math.tanh %624 : vector<2x32xf32>
    %626 = arith.mulf %619, %625 : vector<2x32xf32>
    %c2 = arith.constant 2 : index
    %c0_122 = arith.constant 0 : index
    %627 = vector.load %arg25[%c2, %c0_122] : memref<16x32xf32, #tpu.memory_space<vmem>>, vector<2x32xf32>
    tpu.vector_store %arg25[%c2, %c0_122], %626 {strides = array<i32>} : memref<16x32xf32, #tpu.memory_space<vmem>>, vector<2x32xf32>,
    %cst_123 = arith.constant dense<0.000000e+00> : vector<2x128xf32>
    %628 = tpu.matmul %606, %329, %cst_123 {dimension_numbers = #tpu.dot_dimension_numbers<[1], [0], [0], [1], [0, 0, 1, 1], [], []>} : vector<2x32xf32>, vector<32x128xf32>, vector<2x128xf32> -> vector<2x128xf32>
    %cst_124 = arith.constant dense<0.000000e+00> : vector<2x128xf32>
    %629 = tpu.matmul %626, %330, %cst_124 {dimension_numbers = #tpu.dot_dimension_numbers<[1], [0], [0], [1], [0, 0, 1, 1], [], []>} : vector<2x32xf32>, vector<32x128xf32>, vector<2x128xf32> -> vector<2x128xf32>
    %630 = arith.addf %628, %629 : vector<2x128xf32>
    %631 = vector.broadcast %332 : vector<1x128xf32> to vector<2x128xf32>
    %632 = arith.addf %630, %631 : vector<2x128xf32>
    %633 = arith.negf %632 : vector<2x128xf32>
    %634 = math.exp %633 : vector<2x128xf32>
    %cst_125 = arith.constant 1.000000e+00 : f32
    %635 = vector.broadcast %cst_125 : f32 to vector<2x128xf32>
    %636 = arith.addf %635, %634 : vector<2x128xf32>
    %637 = arith.divf %635, %636 : vector<2x128xf32>
    %638 = vector.extract_strided_slice %637 {offsets = [0, 0], sizes = [2, 32], strides = [1, 1]} : vector<2x128xf32> to vector<2x32xf32>
    %639 = vector.extract_strided_slice %637 {offsets = [0, 32], sizes = [2, 32], strides = [1, 1]} : vector<2x128xf32> to vector<2x32xf32>
    %640 = vector.extract_strided_slice %637 {offsets = [0, 96], sizes = [2, 32], strides = [1, 1]} : vector<2x128xf32> to vector<2x32xf32>
    %641 = vector.extract_strided_slice %632 {offsets = [0, 64], sizes = [2, 32], strides = [1, 1]} : vector<2x128xf32> to vector<2x32xf32>
    %642 = math.tanh %641 : vector<2x32xf32>
    %643 = arith.mulf %639, %624 : vector<2x32xf32>
    %644 = arith.mulf %638, %642 : vector<2x32xf32>
    %645 = arith.addf %643, %644 : vector<2x32xf32>
    %646 = math.tanh %645 : vector<2x32xf32>
    %647 = arith.mulf %640, %646 : vector<2x32xf32>
    %c0_126 = arith.constant 0 : index
    %c0_127 = arith.constant 0 : index
    %648 = vector.load %arg25[%c0_126, %c0_127] : memref<16x32xf32, #tpu.memory_space<vmem>>, vector<2x32xf32>
    tpu.vector_store %arg25[%c0_126, %c0_127], %647 {strides = array<i32>} : memref<16x32xf32, #tpu.memory_space<vmem>>, vector<2x32xf32>,
    %c0_128 = arith.constant 0 : index
    %c0_129 = arith.constant 0 : index
    %649 = vector.load %arg25[%c0_128, %c0_129] : memref<16x32xf32, #tpu.memory_space<vmem>>, vector<16x32xf32>
    %c0_130 = arith.constant 0 : index
    %c0_131 = arith.constant 0 : index
    %650 = vector.load %arg18[%c0_130, %c0_131] : memref<32x64xf32, #tpu.memory_space<vmem>>, vector<32x64xf32>
    %cst_132 = arith.constant dense<0.000000e+00> : vector<16x64xf32>
    %651 = tpu.matmul %649, %650, %cst_132 {dimension_numbers = #tpu.dot_dimension_numbers<[1], [0], [0], [1], [0, 0, 1, 1], [], []>} : vector<16x32xf32>, vector<32x64xf32>, vector<16x64xf32> -> vector<16x64xf32>
    %c0_133 = arith.constant 0 : index
    %c0_134 = arith.constant 0 : index
    %652 = vector.load %arg19[%c0_133, %c0_134] : memref<1x64xf32, #tpu.memory_space<vmem>>, vector<1x64xf32>
    %653 = vector.broadcast %652 : vector<1x64xf32> to vector<16x64xf32>
    %654 = arith.addf %651, %653 : vector<16x64xf32>
    %c0_135 = arith.constant 0 : index
    %c0_136 = arith.constant 0 : index
    %655 = vector.load %arg20[%c0_135, %c0_136] : memref<64x128xf32, #tpu.memory_space<vmem>>, vector<64x128xf32>
    %cst_137 = arith.constant dense<0.000000e+00> : vector<16x128xf32>
    %656 = tpu.matmul %654, %655, %cst_137 {dimension_numbers = #tpu.dot_dimension_numbers<[1], [0], [0], [1], [0, 0, 1, 1], [], []>} : vector<16x64xf32>, vector<64x128xf32>, vector<16x128xf32> -> vector<16x128xf32>
    %c0_138 = arith.constant 0 : index
    %c0_139 = arith.constant 0 : index
    %657 = vector.load %arg21[%c0_138, %c0_139] : memref<1x128xf32, #tpu.memory_space<vmem>>, vector<1x128xf32>
    %658 = vector.broadcast %657 : vector<1x128xf32> to vector<16x128xf32>
    %659 = arith.addf %656, %658 : vector<16x128xf32>
    %cst_140 = arith.constant 0.000000e+00 : f32
    %660 = vector.broadcast %cst_140 : f32 to vector<16x128xf32>
    %661 = arith.maximumf %659, %660 : vector<16x128xf32>
    %c0_141 = arith.constant 0 : index
    %c0_142 = arith.constant 0 : index
    %662 = vector.load %arg22[%c0_141, %c0_142] : memref<128x32xf32, #tpu.memory_space<vmem>>, vector<128x32xf32>
    %cst_143 = arith.constant dense<0.000000e+00> : vector<16x32xf32>
    %663 = tpu.matmul %661, %662, %cst_143 {dimension_numbers = #tpu.dot_dimension_numbers<[1], [0], [0], [1], [0, 0, 1, 1], [], []>} : vector<16x128xf32>, vector<128x32xf32>, vector<16x32xf32> -> vector<16x32xf32>
    %c0_144 = arith.constant 0 : index
    %c0_145 = arith.constant 0 : index
    %664 = vector.load %arg23[%c0_144, %c0_145] : memref<1x32xf32, #tpu.memory_space<vmem>>, vector<1x32xf32>
    %665 = vector.broadcast %664 : vector<1x32xf32> to vector<16x32xf32>
    %666 = arith.addf %663, %665 : vector<16x32xf32>
    %c0_146 = arith.constant 0 : index
    %c0_147 = arith.constant 0 : index
    %c0_148 = arith.constant 0 : index
    %667 = vector.load %arg24[%c0_146, %c0_147, %c0_148] : memref<1x16x32xf32, #tpu.memory_space<vmem>>, vector<1x16x32xf32>
    %668 = vector.shape_cast %667 : vector<1x16x32xf32> to vector<16x32xf32>
    %669 = vector.shape_cast %666 : vector<16x32xf32> to vector<1x16x32xf32>
    tpu.vector_store %arg24[%c0_146, %c0_147, %c0_148], %669 {strides = array<i32>} : memref<1x16x32xf32, #tpu.memory_space<vmem>>, vector<1x16x32xf32>,
    return
  }
  func.func @transform_0(%arg0: i32) -> (i32, i32, i32) {
    %c0_i32 = arith.constant 0 : i32
    %c0_i32_0 = arith.constant 0 : i32
    %c0_i32_1 = arith.constant 0 : i32
    return %arg0, %c0_i32, %c0_i32_0 : i32, i32, i32
  }
  func.func @transform_1(%arg0: i32) -> (i32, i32) {
    %c0_i32 = arith.constant 0 : i32
    %c0_i32_0 = arith.constant 0 : i32
    %c0_i32_1 = arith.constant 0 : i32
    return %c0_i32, %c0_i32_0 : i32, i32
  }
  func.func @transform_2(%arg0: i32) -> (i32, i32) {
    %c0_i32 = arith.constant 0 : i32
    %c0_i32_0 = arith.constant 0 : i32
    %c0_i32_1 = arith.constant 0 : i32
    return %c0_i32, %c0_i32_0 : i32, i32
  }
  func.func @transform_3(%arg0: i32) -> (i32, i32) {
    %c0_i32 = arith.constant 0 : i32
    %c0_i32_0 = arith.constant 0 : i32
    %c0_i32_1 = arith.constant 0 : i32
    return %c0_i32, %c0_i32_0 : i32, i32
  }
  func.func @transform_4(%arg0: i32) -> (i32, i32) {
    %c0_i32 = arith.constant 0 : i32
    %c0_i32_0 = arith.constant 0 : i32
    %c0_i32_1 = arith.constant 0 : i32
    return %c0_i32, %c0_i32_0 : i32, i32
  }
  func.func @transform_5(%arg0: i32) -> (i32, i32) {
    %c0_i32 = arith.constant 0 : i32
    %c0_i32_0 = arith.constant 0 : i32
    %c0_i32_1 = arith.constant 0 : i32
    return %c0_i32, %c0_i32_0 : i32, i32
  }
  func.func @transform_6(%arg0: i32) -> (i32, i32) {
    %c0_i32 = arith.constant 0 : i32
    %c0_i32_0 = arith.constant 0 : i32
    %c0_i32_1 = arith.constant 0 : i32
    return %c0_i32, %c0_i32_0 : i32, i32
  }
  func.func @transform_7(%arg0: i32) -> (i32, i32) {
    %c0_i32 = arith.constant 0 : i32
    %c0_i32_0 = arith.constant 0 : i32
    %c0_i32_1 = arith.constant 0 : i32
    return %c0_i32, %c0_i32_0 : i32, i32
  }
  func.func @transform_8(%arg0: i32) -> (i32, i32) {
    %c0_i32 = arith.constant 0 : i32
    %c0_i32_0 = arith.constant 0 : i32
    %c0_i32_1 = arith.constant 0 : i32
    return %c0_i32, %c0_i32_0 : i32, i32
  }
  func.func @transform_9(%arg0: i32) -> (i32, i32) {
    %c0_i32 = arith.constant 0 : i32
    %c0_i32_0 = arith.constant 0 : i32
    %c0_i32_1 = arith.constant 0 : i32
    return %c0_i32, %c0_i32_0 : i32, i32
  }
  func.func @transform_10(%arg0: i32) -> (i32, i32) {
    %c0_i32 = arith.constant 0 : i32
    %c0_i32_0 = arith.constant 0 : i32
    %c0_i32_1 = arith.constant 0 : i32
    return %c0_i32, %c0_i32_0 : i32, i32
  }
  func.func @transform_11(%arg0: i32) -> (i32, i32) {
    %c0_i32 = arith.constant 0 : i32
    %c0_i32_0 = arith.constant 0 : i32
    %c0_i32_1 = arith.constant 0 : i32
    return %c0_i32, %c0_i32_0 : i32, i32
  }
  func.func @transform_12(%arg0: i32) -> (i32, i32) {
    %c0_i32 = arith.constant 0 : i32
    %c0_i32_0 = arith.constant 0 : i32
    %c0_i32_1 = arith.constant 0 : i32
    return %c0_i32, %c0_i32_0 : i32, i32
  }
  func.func @transform_13(%arg0: i32) -> (i32, i32) {
    %c0_i32 = arith.constant 0 : i32
    %c0_i32_0 = arith.constant 0 : i32
    %c0_i32_1 = arith.constant 0 : i32
    return %c0_i32, %c0_i32_0 : i32, i32
  }
  func.func @transform_14(%arg0: i32) -> (i32, i32) {
    %c0_i32 = arith.constant 0 : i32
    %c0_i32_0 = arith.constant 0 : i32
    %c0_i32_1 = arith.constant 0 : i32
    return %c0_i32, %c0_i32_0 : i32, i32
  }
  func.func @transform_15(%arg0: i32) -> (i32, i32) {
    %c0_i32 = arith.constant 0 : i32
    %c0_i32_0 = arith.constant 0 : i32
    %c0_i32_1 = arith.constant 0 : i32
    return %c0_i32, %c0_i32_0 : i32, i32
  }
  func.func @transform_16(%arg0: i32) -> (i32, i32) {
    %c0_i32 = arith.constant 0 : i32
    %c0_i32_0 = arith.constant 0 : i32
    %c0_i32_1 = arith.constant 0 : i32
    return %c0_i32, %c0_i32_0 : i32, i32
  }
  func.func @transform_17(%arg0: i32) -> (i32, i32) {
    %c0_i32 = arith.constant 0 : i32
    %c0_i32_0 = arith.constant 0 : i32
    %c0_i32_1 = arith.constant 0 : i32
    return %c0_i32, %c0_i32_0 : i32, i32
  }
  func.func @transform_18(%arg0: i32) -> (i32, i32) {
    %c0_i32 = arith.constant 0 : i32
    %c0_i32_0 = arith.constant 0 : i32
    %c0_i32_1 = arith.constant 0 : i32
    return %c0_i32, %c0_i32_0 : i32, i32
  }
  func.func @transform_19(%arg0: i32) -> (i32, i32) {
    %c0_i32 = arith.constant 0 : i32
    %c0_i32_0 = arith.constant 0 : i32
    %c0_i32_1 = arith.constant 0 : i32
    return %c0_i32, %c0_i32_0 : i32, i32
  }
  func.func @transform_20(%arg0: i32) -> (i32, i32) {
    %c0_i32 = arith.constant 0 : i32
    %c0_i32_0 = arith.constant 0 : i32
    %c0_i32_1 = arith.constant 0 : i32
    return %c0_i32, %c0_i32_0 : i32, i32
  }
  func.func @transform_21(%arg0: i32) -> (i32, i32) {
    %c0_i32 = arith.constant 0 : i32
    %c0_i32_0 = arith.constant 0 : i32
    %c0_i32_1 = arith.constant 0 : i32
    return %c0_i32, %c0_i32_0 : i32, i32
  }
  func.func @transform_22(%arg0: i32) -> (i32, i32) {
    %c0_i32 = arith.constant 0 : i32
    %c0_i32_0 = arith.constant 0 : i32
    %c0_i32_1 = arith.constant 0 : i32
    return %c0_i32, %c0_i32_0 : i32, i32
  }
  func.func @transform_23(%arg0: i32) -> (i32, i32, i32) {
    %c0_i32 = arith.constant 0 : i32
    %c0_i32_0 = arith.constant 0 : i32
    %c0_i32_1 = arith.constant 0 : i32
    return %arg0, %c0_i32, %c0_i32_0 : i32, i32, i32
  }
}

</mosaic_0001>

<bundles_post_ra>
// kernel: forward.1
= control target key start
LH: loop header
LB: loop body
LE: loop exit
PB: predicated region body
PF: predicated region fallthrough
CT: control target
= control target key end

     0   :  { %vm84_vm0 = vcmask 261120   ;;  %v3200_v38 = vmov 0.0   ;;  %vm184_vm1 = vcmask 523264   ;;  %s4242_s1 = inlined_call_operand.vmem [shape: f32[32,128], index: 1, kind: input, shape index: {}]   ;;  %s4243_s3 = inlined_call_operand.vmem [shape: f32[128,64], index: 3, kind: input, shape index: {}]   ;;  %s4244_s0 = inlined_call_operand.vmem [shape: f32[1,16,32], index: 0, kind: input, shape index: {}]   ;;  %s4245_s2 = inlined_call_operand.vmem [shape: f32[1,128], index: 2, kind: input, shape index: {}]   ;;  %s4246_s4 = inlined_call_operand.vmem [shape: f32[1,64], index: 4, kind: input, shape index: {}]   ;;  %s4247_s5 = inlined_call_operand.vmem [shape: f32[64,128], index: 5, kind: input, shape index: {}]   ;;  %s4248_s6 = inlined_call_operand.vmem [shape: f32[32,128], index: 6, kind: input, shape index: {}]   ;;  %s4249_s7 = inlined_call_operand.vmem [shape: f32[1,128], index: 7, kind: input, shape index: {}]   ;;  %s4250_s8 = inlined_call_operand.vmem [shape: f32[32,128], index: 8, kind: input, shape index: {}]   ;;  %s4251_s9 = inlined_call_operand.vmem [shape: f32[32,128], index: 9, kind: input, shape index: {}]   ;;  %s4252_s10 = inlined_call_operand.vmem [shape: f32[1,128], index: 10, kind: input, shape index: {}]   ;;  %s4253_s11 = inlined_call_operand.vmem [shape: f32[64,128], index: 11, kind: input, shape index: {}]   ;;  %s4254_s13 = inlined_call_operand.vmem [shape: f32[1,128], index: 13, kind: input, shape index: {}]   ;;  %s4255_s12 = inlined_call_operand.vmem [shape: f32[32,128], index: 12, kind: input, shape index: {}]   ;;  %s4256_s14 = inlined_call_operand.vmem [shape: f32[32,128], index: 14, kind: input, shape index: {}]   ;;  %s4257_s15 = inlined_call_operand.vmem [shape: f32[32,128], index: 15, kind: input, shape index: {}]   ;;  %s4258_s16 = inlined_call_operand.vmem [shape: f32[1,128], index: 16, kind: input, shape index: {}]   ;;  %s4259_s18 = inlined_call_operand.vmem [shape: f32[1,64], index: 18, kind: input, shape index: {}]   ;;  %s4260_s17 = inlined_call_operand.vmem [shape: f32[32,64], index: 17, kind: input, shape index: {}]   ;;  %s4261_s19 = inlined_call_operand.vmem [shape: f32[64,128], index: 19, kind: input, shape index: {}]   ;;  %s4262_s20 = inlined_call_operand.vmem [shape: f32[1,128], index: 20, kind: input, shape index: {}]   ;;  %s4263_s21 = inlined_call_operand.vmem [shape: f32[128,32], index: 21, kind: input, shape index: {}]   ;;  %s4264_s22 = inlined_call_operand.vmem [shape: f32[1,32], index: 22, kind: input, shape index: {}]   ;;  %s4265_s23 = inlined_call_operand.vmem [shape: f32[1,16,32], index: 23, kind: output, shape index: {}]  }
   0x1   :  { %4271 = sst [smem:[#allocation3_spill]] %s4242_s1 }
   0x2   :  { %4272 = sst [smem:[#allocation4_spill]] %s4243_s3 }
   0x3   :  { %4273 = sst [smem:[#allocation5_spill]] %s4244_s0 }
   0x4   :  { %4274 = sst [smem:[#allocation6_spill]] %s4245_s2 }
   0x5   :  { %4275 = sst [smem:[#allocation7_spill]] %s4246_s4  ;;  %s3202_s4 = smov 32  }
   0x6   :  { %4276 = sst [smem:[#allocation8_spill]] %s4247_s5 }
   0x7   :  { %4277 = sst [smem:[#allocation9_spill]] %s4248_s6 }
   0x8   :  { %4278 = sst [smem:[#allocation10_spill]] %s4249_s7 }
   0x9   :  { %s4279_s24 = sld [smem:[#allocation3_spill]] }
   0xa   :  { %s4280_s0 = sld [smem:[#allocation4_spill]] }
   0xb   :  { %s4281_s5 = sld [smem:[#allocation5_spill]] }
   0xc   :  { %s4282_s6 = sld [smem:[#allocation8_spill]] }
   0xd   :  { %s4283_s29 = sld [smem:[#allocation9_spill]] }
   0xe   :  { %s4284_s2 = sld [smem:[#allocation6_spill]] }
   0xf   :  { %v79_v0 = vld [vmem:[%s4279_s24 + $0x18] sm:$0xff]  ;;  %v78_v1 = vld [vmem:[%s4279_s24 + $0x10] sm:$0xff]  ;;  %v77_v3 = vld [vmem:[%s4279_s24 + $0x8] sm:$0xff]  ;;  %s4285_s28 = sld [smem:[#allocation7_spill]] }
  0x10   :  { %103 = vmatpush.msra.mxu0 %v79_v0  ;;  %v131_v2 = vld [vmem:[%s4280_s0 + $0x78] sm:$0xff]  ;;  %v130_v4 = vld [vmem:[%s4280_s0 + $0x70] sm:$0xff]  ;;  %v129_v5 = vld [vmem:[%s4280_s0 + $0x68] sm:$0xff]  ;;  %s4286_s1 = sld [smem:[#allocation10_spill]] }
  0x11   :  { %136 = vmatpush.msra.mxu1 %v131_v2  ;;  %v76_v6 = vld [vmem:[%s4279_s24] sm:$0xff]  ;;  %v127_v9 = vld [vmem:[%s4280_s0 + $0x58] sm:$0xff]  ;;  %v126_v10 = vld [vmem:[%s4280_s0 + $0x50] sm:$0xff] }
  0x12   :  { %104 = vmatpush.msra.mxu0 %v78_v1  ;;  %v74_v7 = vld [vmem:[%s4281_s5] sm:$0xff]  ;;  %v125_v11 = vld [vmem:[%s4280_s0 + $0x48] sm:$0xff]  ;;  %v123_v13 = vld [vmem:[%s4280_s0 + $0x38] sm:$0xff] }
  0x13   :  { %137 = vmatpush.msra.mxu1 %v130_v4  ;;  %v128_v8 = vld [vmem:[%s4280_s0 + $0x60] sm:$0xff]  ;;  %v122_v14 = vld [vmem:[%s4280_s0 + $0x30] sm:$0xff]  ;;  %v121_v15 = vld [vmem:[%s4280_s0 + $0x28] sm:$0xff] }
  0x14   :  { %105 = vmatpush.msra.mxu0 %v77_v3  ;;  %v124_v12 = vld [vmem:[%s4280_s0 + $0x40] sm:$0xff]  ;;  %v119_v17 = vld [vmem:[%s4280_s0 + $0x18] sm:$0xff]  ;;  %v118_v18 = vld [vmem:[%s4280_s0 + $0x10] sm:$0xff] }
  0x15   :  { %138 = vmatpush.msra.mxu1 %v129_v5  ;;  %v120_v16 = vld [vmem:[%s4280_s0 + $0x20] sm:$0xff]  ;;  %v117_v19 = vld [vmem:[%s4280_s0 + $0x8] sm:$0xff]  ;;  %v179_v21 = vld [vmem:[%s4282_s6 + $0x38] sm:$0xff] }
  0x16   :  { %106 = vmatpush.msra.mxu0 %v76_v6  ;;  %v116_v20 = vld [vmem:[%s4280_s0] sm:$0xff]  ;;  %v178_v22 = vld [vmem:[%s4282_s6 + $0x30] sm:$0xff]  ;;  %199 = vmatpush.msra.mxu2 %v179_v21  ;;  %v3396_v23 = vld [vmem:[%s4283_s29 + $0x18] sm:$0xff]  ;;  %s3201_s0 = smov 64  }
  0x17   :  { %2843 = vmatmul.msk.f32.vlgmr.msra.gmra.mxu0 %vm84_vm0, %v74_v7  ;;  %139 = vmatpush.msra.mxu1 %v128_v8  ;;  %v177_v24 = vld [vmem:[%s4282_s6 + $0x28] sm:$0xff]  ;;  %v3405_v25 = vld [vmem:[%s4283_s29 + $0x10] sm:$0xff]  ;;  %v176_v26 = vld [vmem:[%s4282_s6 + $0x20] sm:$0xff] }
  0x18   :  { %229 = vmatpush.msrb.mxu0 %v3396_v23  ;;  %200 = vmatpush.msra.mxu2 %v178_v22  ;;  %v175_v27 = vld [vmem:[%s4282_s6 + $0x18] sm:$0xff]  ;;  %v174_v28 = vld [vmem:[%s4282_s6 + $0x10] sm:$0xff]  ;;  %v2933_v29 = vld [vmem:[%s4284_s2] ss:$0 sm:$0xff] }
  0x19   :  { %140 = vmatpush.msra.mxu1 %v127_v9  ;;  %v173_v33 = vld [vmem:[%s4282_s6 + $0x8] sm:$0xff]  ;;  %v172_v34 = vld [vmem:[%s4282_s6] sm:$0xff]  ;;  %v3476_v8 = vld [vmem:[%s4250_s8 + $0x18] sm:$0xff] }
  0x1a   :  { %230 = vmatpush.msrb.mxu0 %v3405_v25  ;;  %201 = vmatpush.msra.mxu2 %v177_v24  ;;  %v75_v35 = vld [vmem:[%s4281_s5 + $0x8] sm:$0xff]  ;;  %v3438_v37 = vld [vmem:[%s4283_s29] sm:$0xff]  ;;  %v3481_v9 = vld [vmem:[%s4250_s8 + $0x10] sm:$0xff] }
  0x1b   :  { %141 = vmatpush.msra.mxu1 %v126_v10  ;;  %v3433_v36 = vld [vmem:[%s4283_s29 + $0x8] sm:$0xff]  ;;  %v2934_v39 = vld [vmem:[%s4285_s28] ss:$0 sm:$0xff]  ;;  %376 = vmatpush.msra.mxu3 %v3476_v8 }
  0x1c   :  { %202 = vmatpush.msra.mxu2 %v176_v26  ;;  %231 = vmatpush.msrb.mxu0 %v3433_v36  ;;  %v3457_v45 = vld [vmem:[%s4286_s1] ss:$0 sm:$0xff]  ;;  %v3487_v10 = vld [vmem:[%s4250_s8 + $0x8] sm:$0xff] }
  0x1d   :  { %142 = vmatpush.msra.mxu1 %v125_v11  ;;  %377 = vmatpush.msra.mxu3 %v3481_v9  ;;  %v3493_v11 = vld [vmem:[%s4250_s8] sm:$0xff] }
  0x1e   :  { %203 = vmatpush.msra.mxu2 %v175_v27  ;;  %232 = vmatpush.msrb.mxu0 %v3438_v37  ;;  %v3561_v22 = vld [vmem:[%s4252_s10] ss:$0 sm:$0xff] }
  0x1f   :  { %143 = vmatpush.msra.mxu1 %v124_v12  ;;  %2844 = vmatmul.msk.f32.gmra.mxu0 %vm84_vm0, %v75_v35 }
  0x20   :  { %204 = vmatpush.msra.mxu2 %v174_v28  ;;  %292 = vmatpush.msra.mxu0 %v3396_v23 }
  0x21   :  { %144 = vmatpush.msra.mxu1 %v123_v13  ;;  %378 = vmatpush.msra.mxu3 %v3487_v10 }
  0x22   :  { %205 = vmatpush.msra.mxu2 %v173_v33  ;;  %293 = vmatpush.msra.mxu0 %v3405_v25 }
  0x23   :  { %145 = vmatpush.msra.mxu1 %v122_v14  ;;  %379 = vmatpush.msra.mxu3 %v3493_v11  ;;  %v3505_v14 = vld [vmem:[%s4251_s9 + $0x18] sm:$0xff] }
  0x24   :  { %206 = vmatpush.msra.mxu2 %v172_v34  ;;  %294 = vmatpush.msra.mxu0 %v3433_v36 }
  0x25   :  { %146 = vmatpush.msra.mxu1 %v121_v15  ;;  %532 = vmatpush.msrb.mxu3 %v3476_v8  ;;  %v3510_v15 = vld [vmem:[%s4251_s9 + $0x10] sm:$0xff] }
  0x26   :  { %295 = vmatpush.msra.mxu0 %v3438_v37  ;;  %512 = vmatpush.msrb.mxu2 %v3505_v14 }
  0x27   :  { %147 = vmatpush.msra.mxu1 %v120_v16  ;;  %233 = vmatmul.f32.vlgmr.msrb.gmra.mxu0 %v3200_v38  ;;  %v3517_v16 = vld [vmem:[%s4251_s9 + $0x8] sm:$0xff] }
  0x28   :  { %533 = vmatpush.msrb.mxu3 %v3481_v9  ;;  %356 = vmatpush.msrb.mxu0 %v3505_v14 }
  0x29   :  { %148 = vmatpush.msra.mxu1 %v119_v17  ;;  %513 = vmatpush.msrb.mxu2 %v3510_v15  ;;  %v3525_v17 = vld [vmem:[%s4251_s9] sm:$0xff] }
  0x2a   :  { %534 = vmatpush.msrb.mxu3 %v3487_v10  ;;  %357 = vmatpush.msrb.mxu0 %v3510_v15 }
  0x2b   :  { %149 = vmatpush.msra.mxu1 %v118_v18  ;;  %514 = vmatpush.msrb.mxu2 %v3517_v16 }
  0x2c   :  { %535 = vmatpush.msrb.mxu3 %v3493_v11  ;;  %358 = vmatpush.msrb.mxu0 %v3517_v16 }
  0x2d   :  { %150 = vmatpush.msra.mxu1 %v117_v19  ;;  %515 = vmatpush.msrb.mxu2 %v3525_v17 }
  0x2e   :  { %359 = vmatpush.msrb.mxu0 %v3525_v17 }
  0x2f   :  { %151 = vmatpush.msra.mxu1 %v116_v20 }
  0x31   :  { %815 = vmatpush.msrb.mxu1 %v3505_v14 }
  0x33   :  { %816 = vmatpush.msrb.mxu1 %v3510_v15 }
  0x35   :  { %817 = vmatpush.msrb.mxu1 %v3517_v16 }
  0x37   :  { %818 = vmatpush.msrb.mxu1 %v3525_v17 }
  0x94   :  { %v108_v30 = vpop.f32.mrf.mxu0 }
  0x95   :  { %v109_v31 = vadd.f32 %v2933_v29, %v108_v30 }
  0x97   :  { %v114_v32 = vmax.f32 %v109_v31, 0.0 }
  0x99   :  { %152 = vmatmul.f32.vlgmr.msra.gmra.mxu1 %v114_v32 }
  0x9a   :  { %987 = vmatpush.msra.mxu1 %v3476_v8 }
  0x9c   :  { %v111_v42 = vpop.f32.mrf.mxu0  ;;  %988 = vmatpush.msra.mxu1 %v3481_v9 }
  0x9d   :  { %v112_v43 = vadd.f32 %v2933_v29, %v111_v42 }
  0x9e   :  { %989 = vmatpush.msra.mxu1 %v3487_v10 }
  0x9f   :  { %v115_v44 = vmax.f32 %v112_v43, 0.0 }
  0xa0   :  { %990 = vmatpush.msra.mxu1 %v3493_v11 }
  0xa1   :  { %155 = vmatmul.f32.gmra.mxu1 %v115_v44 }
  0xa4   :  { %v234_v47 = vpop.f32.mrf.mxu0 }
 0x116   :  { %v153_v40 = vpop.f32.mrf.mxu1 }
 0x117   :  { %v3450_v41 = vadd.f32 %v2934_v39, %v153_v40 }
 0x119   :  { %2845 = vmatmul.msk.f32.vlgmr.msra.gmra.mxu2 %vm184_vm1, %v3450_v41 }
 0x11a   :  { %665 = vmatpush.msra.mxu2 %v3505_v14 }
 0x11c   :  { %666 = vmatpush.msra.mxu2 %v3510_v15 }
 0x11e   :  { %v156_v53 = vpop.f32.mrf.mxu1  ;;  %667 = vmatpush.msra.mxu2 %v3517_v16 }
 0x11f   :  { %v3464_v54 = vadd.f32 %v2934_v39, %v156_v53 }
 0x120   :  { %668 = vmatpush.msra.mxu2 %v3525_v17 }
 0x121   :  { %2846 = vmatmul.msk.f32.gmra.mxu2 %vm184_vm1, %v3464_v54 }
 0x19c   :  { %v208_v46 = vpop.f32.mrf.mxu2 }
 0x19d   :  { %v3460_v48 = vadd.f32 %v3457_v45, %v208_v46 }
 0x19f   :  { %v237_v49 = vadd.f32 %v234_v47, %v3460_v48 }
 0x1a1   :  { %2942 = vtanh.f32 %v237_v49  ;;  %v2847_v51 = vmul.f32 -1.442695, %v237_v49 }
 0x1a3   :  { %2944 = vpow2.f32 %v2847_v51 }
 0x1a7   :  { %v2943_v50 = vpop.eup %2942 }
 0x1a8   :  { %260 = vrot.lane.b32.xlu0 %v2943_v50, %s3201_s0 }
 0x1a9   :  { %v2945_v52 = vpop.eup %2944 }
 0x1aa   :  { %v241_v55 = vadd.f32 1.0, %v2945_v52 }
 0x1ac   :  { %2946 = vrcp.f32 %v241_v55  ;;  %v253_v61 = vand.u32 2147483648, %v241_v55  ;;  %vm247_vm3 = vweird.f32 %v241_v55  ;;  %v251_v62 = vand.u32 2147483647, %v241_v55 }
 0x1ae   :  { %v254_v0 = vor.u32 1.1754944e-38, %v253_v61  ;;  %vm252_vm5 = vcmp.eq.f32.partialorder %v251_v62, 8.507059e+37 }
 0x1b2   :  { %v2947_v56 = vpop.eup %2946 }
 0x1b3   :  { %v243_v57 = vmul.f32 %v2947_v56, %v241_v55  ;;  %vm248_vm2 = vweird.f32 %v2947_v56 }
 0x1b4   :  { %vm249_vm4 = vmor %vm247_vm3, %vm248_vm2 }
 0x1b5   :  { %v244_v58 = vsub.f32 1.0, %v243_v57 }
 0x1b7   :  { %v245_v59 = vmul.f32 %v2947_v56, %v244_v58 }
 0x1b9   :  { %v246_v60 = vadd.f32 %v2947_v56, %v245_v59 }
 0x1bb   :  { %v250_v63 = vsel %vm249_vm4, %v2947_v56, %v246_v60 }
 0x1bc   :  { %v255_v2 = vsel %vm252_vm5, %v254_v0, %v250_v63 }
 0x1bd   :  { %v258_v4 = vmul.f32 0.0, %v255_v2 }
 0x21a   :  { %v261_v1 = vpop.permute.xlu0 %260 }
 0x21b   :  { %v263_v3 = vmul.f32 %v261_v1, %v255_v2 }
 0x21d   :  { %265 = vrot.lane.b32.xlu0 %v263_v3, %s3202_s4 }
 0x28f   :  { %v266_v5 = vpop.permute.xlu0 %265 }
 0x290   :  { %v3469_v6 = vadd.f32 %v266_v5, %v258_v4 }
 0x292   :  { %2948 = vtanh.f32 %v3469_v6  ;;  %v325_v4 = vrot.slane %v3469_v6, 6 }
 0x298   :  { %v2949_v7 = vpop.eup %2948 }
 0x299   :  { %271 = vrot.lane.b32.xlu1 %v2949_v7, %s3201_s0 }
 0x30b   :  { %v272_v12 = vpop.permute.xlu1 %271 }
 0x30c   :  { %v274_v13 = vmul.f32 %v272_v12, %v255_v2 }
 0x30e   :  { %276 = vrot.lane.b32.xlu1 %v274_v13, %s3202_s4 }
 0x380   :  { %v277_v18 = vpop.permute.xlu1 %276 }
 0x381   :  { %2848 = vmatmul.msk.f32.vlgmr.msra.gmra.mxu0 %vm84_vm0, %v277_v18  ;;  %2850 = vmatmul.msk.f32.vlgmr.msra.gmra.mxu3 %vm84_vm0, %v277_v18 }
 0x382   :  { %443 = vmatpush.msra.mxu0 %v3396_v23  ;;  %685 = vmatpush.msra.mxu3 %v3476_v8 }
 0x384   :  { %444 = vmatpush.msra.mxu0 %v3405_v25  ;;  %686 = vmatpush.msra.mxu3 %v3481_v9 }
 0x386   :  { %445 = vmatpush.msra.mxu0 %v3433_v36  ;;  %687 = vmatpush.msra.mxu3 %v3487_v10 }
 0x388   :  { %446 = vmatpush.msra.mxu0 %v3438_v37  ;;  %688 = vmatpush.msra.mxu3 %v3493_v11 }
 0x389   :  { %360 = vmatmul.f32.vlgmr.msrb.gmra.mxu0 %v3200_v38 }
 0x38a   :  { %596 = vmatpush.msrb.mxu0 %v3396_v23 }
 0x38c   :  { %597 = vmatpush.msrb.mxu0 %v3405_v25 }
 0x38e   :  { %598 = vmatpush.msrb.mxu0 %v3433_v36 }
 0x390   :  { %599 = vmatpush.msrb.mxu0 %v3438_v37 }
 0x3fe   :  { %v297_v19 = vpop.f32.mrf.mxu0 }
 0x3ff   :  { %v301_v20 = vrot.slane %v297_v19, 6 }
 0x401   :  { %v303_v21 = vadd.f32 %v301_v20, %v3460_v48 }
 0x403   :  { %2950 = vtanh.f32 %v303_v21  ;;  %v2849_v31 = vmul.f32 -1.442695, %v303_v21 }
 0x404   :  { %v381_v24 = vpop.f32.mrf.mxu3 }
 0x406   :  { %v361_v26 = vpop.f32.mrf.mxu0 }
 0x407   :  { %v382_v27 = vadd.f32 %v381_v24, %v361_v26 }
 0x409   :  { %v2951_v28 = vpop.eup %2950  ;;  %v387_v29 = vadd.f32 %v3561_v22, %v382_v27 }
 0x40a   :  { %329 = vrot.lane.b32.xlu2 %v2951_v28, %s3201_s0 }
 0x40b   :  { %2952 = vtanh.f32 %v387_v29  ;;  %v2851_v32 = vmul.f32 -1.442695, %v387_v29 }
 0x40c   :  { %2954 = vpow2.f32 %v2849_v31 }
 0x40d   :  { %2956 = vpow2.f32 %v2851_v32 }
 0x411   :  { %v2953_v30 = vpop.eup %2952 }
 0x412   :  { %410 = vrot.lane.b32.xlu2 %v2953_v30, %s3201_s0  ;;  %v2955_v33 = vpop.eup %2954 }
 0x413   :  { %v307_v34 = vadd.f32 1.0, %v2955_v33  ;;  %v2957_v35 = vpop.eup %2956 }
 0x414   :  { %v391_v39 = vadd.f32 1.0, %v2957_v35 }
 0x415   :  { %2958 = vrcp.f32 %v307_v34  ;;  %v319_v51 = vand.u32 2147483648, %v307_v34  ;;  %vm313_vm7 = vweird.f32 %v307_v34  ;;  %v317_v52 = vand.u32 2147483647, %v307_v34 }
 0x416   :  { %2960 = vrcp.f32 %v391_v39  ;;  %v403_v61 = vand.u32 2147483648, %v391_v39  ;;  %vm397_vm11 = vweird.f32 %v391_v39  ;;  %v401_v62 = vand.u32 2147483647, %v391_v39 }
 0x417   :  { %v320_v56 = vor.u32 1.1754944e-38, %v319_v51  ;;  %vm318_vm9 = vcmp.eq.f32.partialorder %v317_v52, 8.507059e+37 }
 0x418   :  { %v404_v0 = vor.u32 1.1754944e-38, %v403_v61  ;;  %vm402_vm13 = vcmp.eq.f32.partialorder %v401_v62, 8.507059e+37 }
 0x41b   :  { %v2959_v40 = vpop.eup %2958 }
 0x41c   :  { %v309_v42 = vmul.f32 %v2959_v40, %v307_v34  ;;  %v2961_v44 = vpop.eup %2960  ;;  %vm314_vm6 = vweird.f32 %v2959_v40  ;;  %v3595_v34 = vpop.f32.mrf.mxu2 }
 0x41d   :  { %v393_v47 = vmul.f32 %v2961_v44, %v391_v39  ;;  %vm315_vm8 = vmor %vm313_vm7, %vm314_vm6  ;;  %vm398_vm10 = vweird.f32 %v2961_v44 }
 0x41e   :  { %v310_v43 = vsub.f32 1.0, %v309_v42  ;;  %vm399_vm12 = vmor %vm397_vm11, %vm398_vm10 }
 0x41f   :  { %v394_v50 = vsub.f32 1.0, %v393_v47 }
 0x420   :  { %v311_v46 = vmul.f32 %v2959_v40, %v310_v43 }
 0x421   :  { %v395_v55 = vmul.f32 %v2961_v44, %v394_v50 }
 0x422   :  { %v312_v49 = vadd.f32 %v2959_v40, %v311_v46 }
 0x423   :  { %v396_v60 = vadd.f32 %v2961_v44, %v395_v55 }
 0x424   :  { %v316_v53 = vsel %vm315_vm8, %v2959_v40, %v312_v49 }
 0x425   :  { %v321_v58 = vsel %vm318_vm9, %v320_v56, %v316_v53  ;;  %v400_v63 = vsel %vm399_vm12, %v2961_v44, %v396_v60 }
 0x426   :  { %v405_v1 = vsel %vm402_vm13, %v404_v0, %v400_v63  ;;  %v327_v5 = vmul.f32 %v325_v4, %v321_v58 }
 0x427   :  { %v408_v13 = vmul.f32 0.0, %v405_v1 }
 0x464   :  { %v330_v57 = vpop.permute.xlu2 %329 }
 0x465   :  { %v332_v59 = vmul.f32 %v330_v57, %v321_v58 }
 0x467   :  { %334 = vrot.lane.b32.xlu0 %v332_v59, %s3202_s4 }
 0x46c   :  { %v411_v2 = vpop.permute.xlu2 %410 }
 0x46d   :  { %v413_v3 = vmul.f32 %v411_v2, %v405_v1 }
 0x46f   :  { %415 = vrot.lane.b32.xlu1 %v413_v3, %s3202_s4 }
 0x4d9   :  { %v335_v7 = vpop.permute.xlu0 %334 }
 0x4da   :  { %v3569_v12 = vadd.f32 %v335_v7, %v327_v5 }
 0x4dc   :  { %2962 = vtanh.f32 %v3569_v12 }
 0x4e1   :  { %v416_v18 = vpop.permute.xlu1 %415 }
 0x4e2   :  { %v2963_v19 = vpop.eup %2962  ;;  %v3572_v20 = vadd.f32 %v416_v18, %v408_v13 }
 0x4e3   :  { %340 = vrot.lane.b32.xlu2 %v2963_v19, %s3201_s0 }
 0x4e4   :  { %2964 = vtanh.f32 %v3572_v20 }
 0x4ea   :  { %v2965_v21 = vpop.eup %2964 }
 0x4eb   :  { %421 = vrot.lane.b32.xlu0 %v2965_v21, %s3201_s0 }
 0x53d   :  { %v341_v24 = vpop.permute.xlu2 %340 }
 0x53e   :  { %v343_v6 = vmul.f32 %v341_v24, %v321_v58 }
 0x540   :  { %v426_v26 = vrot.slane %v343_v6, 2 }
 0x542   :  { %427 = vrot.lane.b32.xlu1 %v426_v26, %s3202_s4 }
 0x55d   :  { %v422_v27 = vpop.permute.xlu0 %421 }
 0x55e   :  { %v424_v28 = vmul.f32 %v422_v27, %v405_v1  ;;  %v476_v27 = vrot.slane %v3569_v12, 6 }
 0x560   :  { %496 = vrot.lane.b32.xlu2 %v424_v28, %s3202_s4 }
 0x5b4   :  { %v428_v29 = vpop.permute.xlu1 %427 }
 0x5b5   :  { %2852 = vmatmul.msk.f32.vlgmr.msra.gmra.mxu0 %vm84_vm0, %v428_v29  ;;  %2855 = vmatmul.msk.f32.vlgmr.msrb.gmra.mxu3 %vm84_vm0, %v428_v29 }
 0x5b6   :  { %749 = vmatpush.msra.mxu0 %v3396_v23  ;;  %898 = vmatpush.msrb.mxu3 %v3396_v23 }
 0x5b8   :  { %750 = vmatpush.msra.mxu0 %v3405_v25  ;;  %899 = vmatpush.msrb.mxu3 %v3405_v25 }
 0x5ba   :  { %v497_v30 = vpop.permute.xlu2 %496  ;;  %751 = vmatpush.msra.mxu0 %v3433_v36  ;;  %900 = vmatpush.msrb.mxu3 %v3433_v36 }
 0x5bb   :  { %2854 = vmatmul.msk.f32.vlgmr.msrb.gmra.mxu2 %vm84_vm0, %v497_v30 }
 0x5bc   :  { %835 = vmatpush.msrb.mxu2 %v3476_v8  ;;  %752 = vmatpush.msra.mxu0 %v3438_v37 }
 0x5bd   :  { %901 = vmatpush.msrb.mxu3 %v3438_v37 }
 0x5be   :  { %836 = vmatpush.msrb.mxu2 %v3481_v9 }
 0x5c0   :  { %837 = vmatpush.msrb.mxu2 %v3487_v10 }
 0x5c2   :  { %838 = vmatpush.msrb.mxu2 %v3493_v11 }
 0x632   :  { %v448_v31 = vpop.f32.mrf.mxu0 }
 0x633   :  { %v452_v32 = vrot.slane %v448_v31, 4 }
 0x635   :  { %v454_v33 = vadd.f32 %v452_v32, %v3460_v48 }
 0x637   :  { %2966 = vtanh.f32 %v454_v33  ;;  %v2853_v46 = vmul.f32 -1.442695, %v454_v33 }
 0x638   :  { %v537_v39 = vpop.f32.mrf.mxu3 }
 0x63d   :  { %v2967_v35 = vpop.eup %2966 }
 0x63e   :  { %480 = vrot.lane.b32.xlu0 %v2967_v35, %s3201_s0  ;;  %v517_v40 = vpop.f32.mrf.mxu2 }
 0x63f   :  { %v538_v42 = vadd.f32 %v537_v39, %v517_v40 }
 0x641   :  { %v540_v43 = vadd.f32 %v3561_v22, %v538_v42 }
 0x643   :  { %2968 = vtanh.f32 %v540_v43  ;;  %v2856_v49 = vmul.f32 -1.442695, %v540_v43 }
 0x644   :  { %2970 = vpow2.f32 %v2853_v46 }
 0x645   :  { %2972 = vpow2.f32 %v2856_v49 }
 0x649   :  { %v2969_v44 = vpop.eup %2968 }
 0x64a   :  { %563 = vrot.lane.b32.xlu1 %v2969_v44, %s3201_s0  ;;  %v2971_v47 = vpop.eup %2970 }
 0x64b   :  { %v458_v50 = vadd.f32 1.0, %v2971_v47  ;;  %v2973_v51 = vpop.eup %2972 }
 0x64c   :  { %v544_v53 = vadd.f32 1.0, %v2973_v51 }
 0x64d   :  { %2974 = vrcp.f32 %v458_v50  ;;  %v470_v61 = vand.u32 2147483648, %v458_v50  ;;  %vm464_vm15 = vweird.f32 %v458_v50  ;;  %v468_v62 = vand.u32 2147483647, %v458_v50 }
 0x64e   :  { %2976 = vrcp.f32 %v544_v53  ;;  %v556_v13 = vand.u32 2147483648, %v544_v53  ;;  %vm550_vm5 = vweird.f32 %v544_v53  ;;  %v554_v18 = vand.u32 2147483647, %v544_v53 }
 0x64f   :  { %v471_v1 = vor.u32 1.1754944e-38, %v470_v61  ;;  %vm469_vm3 = vcmp.eq.f32.partialorder %v468_v62, 8.507059e+37 }
 0x650   :  { %v557_v21 = vor.u32 1.1754944e-38, %v556_v13  ;;  %vm555_vm7 = vcmp.eq.f32.partialorder %v554_v18, 8.507059e+37 }
 0x653   :  { %v2975_v52 = vpop.eup %2974 }
 0x654   :  { %v460_v55 = vmul.f32 %v2975_v52, %v458_v50  ;;  %v2977_v58 = vpop.eup %2976  ;;  %vm465_vm14 = vweird.f32 %v2975_v52 }
 0x655   :  { %v546_v60 = vmul.f32 %v2977_v58, %v544_v53  ;;  %vm466_vm2 = vmor %vm464_vm15, %vm465_vm14  ;;  %vm551_vm4 = vweird.f32 %v2977_v58 }
 0x656   :  { %v461_v56 = vsub.f32 1.0, %v460_v55  ;;  %vm552_vm6 = vmor %vm550_vm5, %vm551_vm4 }
 0x657   :  { %v547_v0 = vsub.f32 1.0, %v546_v60 }
 0x658   :  { %v462_v57 = vmul.f32 %v2975_v52, %v461_v56 }
 0x659   :  { %v548_v5 = vmul.f32 %v2977_v58, %v547_v0 }
 0x65a   :  { %v463_v59 = vadd.f32 %v2975_v52, %v462_v57 }
 0x65b   :  { %v549_v7 = vadd.f32 %v2977_v58, %v548_v5 }
 0x65c   :  { %v467_v63 = vsel %vm466_vm2, %v2975_v52, %v463_v59 }
 0x65d   :  { %v472_v3 = vsel %vm469_vm3, %v471_v1, %v467_v63  ;;  %v553_v19 = vsel %vm552_vm6, %v2977_v58, %v549_v7 }
 0x65e   :  { %v558_v6 = vsel %vm555_vm7, %v557_v21, %v553_v19  ;;  %v478_v28 = vmul.f32 %v476_v27, %v472_v3 }
 0x65f   :  { %v561_v32 = vmul.f32 %v558_v6, %v3572_v20 }
 0x6b0   :  { %v481_v2 = vpop.permute.xlu0 %480 }
 0x6b1   :  { %v483_v4 = vmul.f32 %v481_v2, %v472_v3 }
 0x6b3   :  { %485 = vrot.lane.b32.xlu2 %v483_v4, %s3202_s4 }
 0x6bc   :  { %v564_v24 = vpop.permute.xlu1 %563 }
 0x6bd   :  { %v566_v26 = vmul.f32 %v564_v24, %v558_v6 }
 0x6bf   :  { %568 = vrot.lane.b32.xlu0 %v566_v26, %s3202_s4 }
 0x70d   :  { %v486_v29 = vpop.permute.xlu2 %485 }
 0x70e   :  { %v3603_v30 = vadd.f32 %v486_v29, %v478_v28 }
 0x710   :  { %2978 = vtanh.f32 %v3603_v30 }
 0x716   :  { %v2979_v31 = vpop.eup %2978 }
 0x717   :  { %491 = vrot.lane.b32.xlu1 %v2979_v31, %s3201_s0 }
 0x731   :  { %v569_v33 = vpop.permute.xlu0 %568 }
 0x732   :  { %v3608_v35 = vadd.f32 %v569_v33, %v561_v32 }
 0x734   :  { %2980 = vtanh.f32 %v3608_v35 }
 0x73a   :  { %v2981_v39 = vpop.eup %2980 }
 0x73b   :  { %574 = vrot.lane.b32.xlu2 %v2981_v39, %s3201_s0 }
 0x789   :  { %v492_v12 = vpop.permute.xlu1 %491 }
 0x78a   :  { %v494_v40 = vmul.f32 %v492_v12, %v472_v3 }
 0x78c   :  { %v579_v42 = vrot.slane %v494_v40, 4 }
 0x78e   :  { %580 = vrot.lane.b32.xlu0 %v579_v42, %s3202_s4  ;;  %v629_v42 = vrot.slane %v3603_v30, 6 }
 0x795   :  { %v575_v43 = vpop.permute.xlu2 %574 }
 0x796   :  { %v577_v44 = vmul.f32 %v575_v43, %v558_v6 }
 0x798   :  { %649 = vrot.lane.b32.xlu1 %v577_v44, %s3202_s4 }
 0x800   :  { %v581_v46 = vpop.permute.xlu0 %580 }
 0x801   :  { %2857 = vmatmul.msk.f32.vlgmr.msrb.gmra.mxu0 %vm84_vm0, %v581_v46  ;;  %2860 = vmatmul.msk.f32.vlgmr.msra.gmra.mxu3 %vm84_vm0, %v581_v46 }
 0x802   :  { %967 = vmatpush.msrb.mxu0 %v3505_v14  ;;  %1120 = vmatpush.msra.mxu3 %v3505_v14 }
 0x804   :  { %968 = vmatpush.msrb.mxu0 %v3510_v15  ;;  %1121 = vmatpush.msra.mxu3 %v3510_v15 }
 0x806   :  { %969 = vmatpush.msrb.mxu0 %v3517_v16  ;;  %1122 = vmatpush.msra.mxu3 %v3517_v16 }
 0x808   :  { %970 = vmatpush.msrb.mxu0 %v3525_v17  ;;  %1123 = vmatpush.msra.mxu3 %v3525_v17 }
 0x80a   :  { %v650_v20 = vpop.permute.xlu1 %649 }
 0x80b   :  { %2859 = vmatmul.msk.f32.vlgmr.msra.gmra.mxu2 %vm84_vm0, %v650_v20 }
 0x80c   :  { %1051 = vmatpush.msra.mxu2 %v3396_v23 }
 0x80e   :  { %1052 = vmatpush.msra.mxu2 %v3405_v25 }
 0x810   :  { %1053 = vmatpush.msra.mxu2 %v3433_v36 }
 0x812   :  { %1054 = vmatpush.msra.mxu2 %v3438_v37 }
 0x87e   :  { %v601_v47 = vpop.f32.mrf.mxu0 }
 0x87f   :  { %v605_v49 = vrot.slane %v601_v47, 2 }
 0x881   :  { %v607_v50 = vadd.f32 %v605_v49, %v3460_v48 }
 0x883   :  { %2982 = vtanh.f32 %v607_v50  ;;  %v2858_v58 = vmul.f32 -1.442695, %v607_v50 }
 0x884   :  { %v690_v52 = vpop.f32.mrf.mxu3 }
 0x889   :  { %v2983_v51 = vpop.eup %2982 }
 0x88a   :  { %633 = vrot.lane.b32.xlu2 %v2983_v51, %s3201_s0 }
 0x88e   :  { %v670_v53 = vpop.f32.mrf.mxu2 }
 0x88f   :  { %v691_v55 = vadd.f32 %v690_v52, %v670_v53 }
 0x891   :  { %v693_v56 = vadd.f32 %v3561_v22, %v691_v55 }
 0x893   :  { %2984 = vtanh.f32 %v693_v56  ;;  %v2861_v2 = vmul.f32 -1.442695, %v693_v56 }
 0x894   :  { %2986 = vpow2.f32 %v2858_v58  ;;  %v3664_v58 = vadd.f32 %v3457_v45, %v3595_v34 }
 0x899   :  { %v2985_v57 = vpop.eup %2984 }
 0x89a   :  { %716 = vrot.lane.b32.xlu0 %v2985_v57, %s3201_s0  ;;  %v2987_v59 = vpop.eup %2986 }
 0x89b   :  { %v611_v60 = vadd.f32 1.0, %v2987_v59 }
 0x89d   :  { %2988 = vrcp.f32 %v611_v60  ;;  %v623_v1 = vand.u32 2147483648, %v611_v60  ;;  %vm617_vm9 = vweird.f32 %v611_v60  ;;  %v621_v3 = vand.u32 2147483647, %v611_v60 }
 0x89e   :  { %2990 = vpow2.f32 %v2861_v2 }
 0x89f   :  { %v624_v5 = vor.u32 1.1754944e-38, %v623_v1  ;;  %vm622_vm11 = vcmp.eq.f32.partialorder %v621_v3, 8.507059e+37 }
 0x8a3   :  { %v2989_v61 = vpop.eup %2988 }
 0x8a4   :  { %v613_v48 = vmul.f32 %v2989_v61, %v611_v60  ;;  %vm618_vm8 = vweird.f32 %v2989_v61  ;;  %v2991_v19 = vpop.eup %2990 }
 0x8a5   :  { %vm619_vm10 = vmor %vm617_vm9, %vm618_vm8  ;;  %v697_v21 = vadd.f32 1.0, %v2991_v19 }
 0x8a6   :  { %v614_v62 = vsub.f32 1.0, %v613_v48 }
 0x8a7   :  { %2992 = vrcp.f32 %v697_v21  ;;  %v709_v29 = vand.u32 2147483648, %v697_v21  ;;  %vm703_vm13 = vweird.f32 %v697_v21  ;;  %v707_v31 = vand.u32 2147483647, %v697_v21 }
 0x8a8   :  { %v615_v63 = vmul.f32 %v2989_v61, %v614_v62 }
 0x8a9   :  { %v710_v33 = vor.u32 1.1754944e-38, %v709_v29  ;;  %vm708_vm15 = vcmp.eq.f32.partialorder %v707_v31, 8.507059e+37 }
 0x8aa   :  { %v616_v0 = vadd.f32 %v2989_v61, %v615_v63 }
 0x8ac   :  { %v620_v4 = vsel %vm619_vm10, %v2989_v61, %v616_v0 }
 0x8ad   :  { %v625_v7 = vsel %vm622_vm11, %v624_v5, %v620_v4  ;;  %v2993_v24 = vpop.eup %2992 }
 0x8ae   :  { %v699_v6 = vmul.f32 %v2993_v24, %v697_v21  ;;  %vm704_vm12 = vweird.f32 %v2993_v24  ;;  %v631_v43 = vmul.f32 %v629_v42, %v625_v7 }
 0x8af   :  { %vm705_vm14 = vmor %vm703_vm13, %vm704_vm12 }
 0x8b0   :  { %v700_v26 = vsub.f32 1.0, %v699_v6 }
 0x8b2   :  { %v701_v27 = vmul.f32 %v2993_v24, %v700_v26 }
 0x8b4   :  { %v702_v28 = vadd.f32 %v2993_v24, %v701_v27 }
 0x8b6   :  { %v706_v32 = vsel %vm705_vm14, %v2993_v24, %v702_v28 }
 0x8b7   :  { %v711_v12 = vsel %vm708_vm15, %v710_v33, %v706_v32 }
 0x8b8   :  { %v714_v47 = vmul.f32 %v711_v12, %v3608_v35 }
 0x8e4   :  { %v634_v13 = vpop.permute.xlu2 %633 }
 0x8e5   :  { %v636_v18 = vmul.f32 %v634_v13, %v625_v7 }
 0x8e7   :  { %638 = vrot.lane.b32.xlu1 %v636_v18, %s3202_s4 }
 0x90c   :  { %v717_v39 = vpop.permute.xlu0 %716 }
 0x90d   :  { %v719_v40 = vmul.f32 %v717_v39, %v711_v12 }
 0x90f   :  { %721 = vrot.lane.b32.xlu2 %v719_v40, %s3202_s4 }
 0x959   :  { %v639_v44 = vpop.permute.xlu1 %638 }
 0x95a   :  { %v3636_v46 = vadd.f32 %v639_v44, %v631_v43 }
 0x95c   :  { %2994 = vtanh.f32 %v3636_v46 }
 0x962   :  { %v2995_v20 = vpop.eup %2994 }
 0x963   :  { %644 = vrot.lane.b32.xlu0 %v2995_v20, %s3201_s0  ;;  %v779_v20 = vrot.slane %v3636_v46, 6 }
 0x969   :  { %v722_v49 = vpop.permute.xlu2 %721 }
 0x96a   :  { %v3641_v50 = vadd.f32 %v722_v49, %v714_v47 }
 0x96c   :  { %2996 = vtanh.f32 %v3641_v50 }
 0x972   :  { %v2997_v51 = vpop.eup %2996 }
 0x973   :  { %727 = vrot.lane.b32.xlu1 %v2997_v51, %s3201_s0 }
 0x9d5   :  { %v645_v30 = vpop.permute.xlu0 %644 }
 0x9d6   :  { %v647_v52 = vmul.f32 %v645_v30, %v625_v7 }
 0x9d8   :  { %v732_v53 = vrot.slane %v647_v52, 6 }
 0x9da   :  { %733 = vrot.lane.b32.xlu2 %v732_v53, %s3202_s4 }
 0x9e5   :  { %v728_v55 = vpop.permute.xlu1 %727 }
 0x9e6   :  { %v730_v56 = vmul.f32 %v728_v55, %v711_v12 }
 0x9e8   :  { %799 = vrot.lane.b32.xlu0 %v730_v56, %s3202_s4 }
 0xa34   :  { %v734_v57 = vpop.permute.xlu2 %733 }
 0xa35   :  { %2862 = vmatmul.msk.f32.vlgmr.msra.gmra.mxu0 %vm84_vm0, %v734_v57  ;;  %2865 = vmatmul.msk.f32.vlgmr.msrb.gmra.mxu2 %vm84_vm0, %v734_v57 }
 0xa36   :  { %1140 = vmatpush.msra.mxu0 %v3476_v8  ;;  %1273 = vmatpush.msrb.mxu2 %v3505_v14 }
 0xa38   :  { %1141 = vmatpush.msra.mxu0 %v3481_v9  ;;  %1274 = vmatpush.msrb.mxu2 %v3510_v15 }
 0xa3a   :  { %1142 = vmatpush.msra.mxu0 %v3487_v10  ;;  %1275 = vmatpush.msrb.mxu2 %v3517_v16 }
 0xa3c   :  { %1143 = vmatpush.msra.mxu0 %v3493_v11  ;;  %1276 = vmatpush.msrb.mxu2 %v3525_v17 }
 0xa5a   :  { %v800_v35 = vpop.permute.xlu0 %799 }
 0xa5b   :  { %2864 = vmatmul.msk.f32.vlgmr.msrb.gmra.mxu1 %vm84_vm0, %v800_v35 }
 0xa5c   :  { %1204 = vmatpush.msrb.mxu1 %v3396_v23 }
 0xa5e   :  { %1205 = vmatpush.msrb.mxu1 %v3405_v25 }
 0xa60   :  { %1206 = vmatpush.msrb.mxu1 %v3433_v36 }
 0xa62   :  { %1207 = vmatpush.msrb.mxu1 %v3438_v37 }
 0xab2   :  { %v754_v59 = vpop.f32.mrf.mxu0 }
 0xab3   :  { %v757_v60 = vadd.f32 %v754_v59, %v3664_v58 }
 0xab5   :  { %2998 = vtanh.f32 %v757_v60  ;;  %v2863_v37 = vmul.f32 -1.442695, %v757_v60 }
 0xab8   :  { %v840_v48 = vpop.f32.mrf.mxu2 }
 0xabb   :  { %v2999_v61 = vpop.eup %2998 }
 0xabc   :  { %783 = vrot.lane.b32.xlu1 %v2999_v61, %s3201_s0 }
 0xad8   :  { %v820_v62 = vpop.f32.mrf.mxu1 }
 0xad9   :  { %v841_v23 = vadd.f32 %v840_v48, %v820_v62 }
 0xadb   :  { %v843_v25 = vadd.f32 %v3561_v22, %v841_v23 }
 0xadd   :  { %3000 = vtanh.f32 %v843_v25  ;;  %v2866_v63 = vmul.f32 -1.442695, %v843_v25 }
 0xade   :  { %3002 = vpow2.f32 %v2863_v37 }
 0xae3   :  { %v3001_v36 = vpop.eup %3000 }
 0xae4   :  { %866 = vrot.lane.b32.xlu2 %v3001_v36, %s3201_s0  ;;  %v3003_v45 = vpop.eup %3002 }
 0xae5   :  { %v761_v34 = vadd.f32 1.0, %v3003_v45 }
 0xae7   :  { %3004 = vrcp.f32 %v761_v34  ;;  %v773_v18 = vand.u32 2147483648, %v761_v34  ;;  %vm767_vm3 = vweird.f32 %v761_v34  ;;  %v771_v19 = vand.u32 2147483647, %v761_v34 }
 0xae8   :  { %3006 = vpow2.f32 %v2866_v63 }
 0xae9   :  { %v774_v6 = vor.u32 1.1754944e-38, %v773_v18  ;;  %vm772_vm5 = vcmp.eq.f32.partialorder %v771_v19, 8.507059e+37 }
 0xaed   :  { %v3005_v0 = vpop.eup %3004 }
 0xaee   :  { %v3007_v1 = vpop.eup %3006  ;;  %v763_v2 = vmul.f32 %v3005_v0, %v761_v34  ;;  %vm768_vm2 = vweird.f32 %v3005_v0 }
 0xaef   :  { %v847_v3 = vadd.f32 1.0, %v3007_v1  ;;  %vm769_vm4 = vmor %vm767_vm3, %vm768_vm2 }
 0xaf0   :  { %v764_v4 = vsub.f32 1.0, %v763_v2 }
 0xaf1   :  { %3008 = vrcp.f32 %v847_v3  ;;  %v859_v33 = vand.u32 2147483648, %v847_v3  ;;  %vm853_vm7 = vweird.f32 %v847_v3  ;;  %v857_v39 = vand.u32 2147483647, %v847_v3 }
 0xaf2   :  { %v765_v5 = vmul.f32 %v3005_v0, %v764_v4 }
 0xaf3   :  { %v860_v40 = vor.u32 1.1754944e-38, %v859_v33  ;;  %vm858_vm9 = vcmp.eq.f32.partialorder %v857_v39, 8.507059e+37 }
 0xaf4   :  { %v766_v7 = vadd.f32 %v3005_v0, %v765_v5 }
 0xaf6   :  { %v770_v21 = vsel %vm769_vm4, %v3005_v0, %v766_v7 }
 0xaf7   :  { %v3009_v13 = vpop.eup %3008  ;;  %v775_v27 = vsel %vm772_vm5, %v774_v6, %v770_v21 }
 0xaf8   :  { %v849_v24 = vmul.f32 %v3009_v13, %v847_v3  ;;  %vm854_vm6 = vweird.f32 %v3009_v13  ;;  %v781_v47 = vmul.f32 %v779_v20, %v775_v27 }
 0xaf9   :  { %vm855_vm8 = vmor %vm853_vm7, %vm854_vm6 }
 0xafa   :  { %v850_v29 = vsub.f32 1.0, %v849_v24 }
 0xafc   :  { %v851_v31 = vmul.f32 %v3009_v13, %v850_v29 }
 0xafe   :  { %v852_v32 = vadd.f32 %v3009_v13, %v851_v31 }
 0xb00   :  { %v856_v12 = vsel %vm855_vm8, %v3009_v13, %v852_v32 }
 0xb01   :  { %v861_v43 = vsel %vm858_vm9, %v860_v40, %v856_v12 }
 0xb02   :  { %v864_v52 = vmul.f32 %v861_v43, %v3641_v50 }
 0xb2e   :  { %v784_v26 = vpop.permute.xlu1 %783 }
 0xb2f   :  { %v786_v28 = vmul.f32 %v784_v26, %v775_v27 }
 0xb31   :  { %788 = vrot.lane.b32.xlu0 %v786_v28, %s3202_s4 }
 0xb3e   :  { %v867_v42 = vpop.permute.xlu2 %866 }
 0xb3f   :  { %v869_v44 = vmul.f32 %v867_v42, %v861_v43 }
 0xb41   :  { %871 = vrot.lane.b32.xlu1 %v869_v44, %s3202_s4 }
 0xba3   :  { %v789_v49 = vpop.permute.xlu0 %788 }
 0xba4   :  { %v3673_v51 = vadd.f32 %v789_v49, %v781_v47 }
 0xba6   :  { %3010 = vtanh.f32 %v3673_v51  ;;  %v931_v12 = vrot.slane %v3673_v51, 6 }
 0xbac   :  { %v3011_v30 = vpop.eup %3010 }
 0xbad   :  { %794 = vrot.lane.b32.xlu2 %v3011_v30, %s3201_s0 }
 0xbb3   :  { %v872_v53 = vpop.permute.xlu1 %871 }
 0xbb4   :  { %v3678_v55 = vadd.f32 %v872_v53, %v864_v52 }
 0xbb6   :  { %3012 = vtanh.f32 %v3678_v55 }
 0xbbc   :  { %v3013_v56 = vpop.eup %3012 }
 0xbbd   :  { %877 = vrot.lane.b32.xlu0 %v3013_v56, %s3201_s0 }
 0xc07   :  { %v795_v46 = vpop.permute.xlu2 %794 }
 0xc08   :  { %v797_v57 = vmul.f32 %v795_v46, %v775_v27 }
 0xc0a   :  { %882 = vrot.lane.b32.xlu1 %v797_v57, %s3202_s4 }
 0xc2f   :  { %v878_v35 = vpop.permute.xlu0 %877 }
 0xc30   :  { %v880_v59 = vmul.f32 %v878_v35, %v861_v43 }
 0xc32   :  { %951 = vrot.lane.b32.xlu2 %v880_v59, %s3202_s4 }
 0xc7c   :  { %v883_v60 = vpop.permute.xlu1 %882 }
 0xc7d   :  { %2867 = vmatmul.msk.f32.vlgmr.msrb.gmra.mxu3 %vm84_vm0, %v883_v60  ;;  %2870 = vmatmul.msk.f32.vlgmr.msra.gmra.mxu1 %vm84_vm0, %v883_v60 }
 0xc7e   :  { %1293 = vmatpush.msrb.mxu3 %v3476_v8  ;;  %1382 = vmatpush.msra.mxu1 %v3476_v8 }
 0xc80   :  { %1294 = vmatpush.msrb.mxu3 %v3481_v9  ;;  %1383 = vmatpush.msra.mxu1 %v3481_v9 }
 0xc82   :  { %1295 = vmatpush.msrb.mxu3 %v3487_v10  ;;  %1384 = vmatpush.msra.mxu1 %v3487_v10 }
 0xc84   :  { %1296 = vmatpush.msrb.mxu3 %v3493_v11  ;;  %1385 = vmatpush.msra.mxu1 %v3493_v11 }
 0xc8c   :  { %v952_v50 = vpop.permute.xlu2 %951 }
 0xc8d   :  { %2869 = vmatmul.msk.f32.vlgmr.msrb.gmra.mxu0 %vm84_vm0, %v952_v50 }
 0xc8e   :  { %1356 = vmatpush.msrb.mxu0 %v3505_v14 }
 0xc90   :  { %1357 = vmatpush.msrb.mxu0 %v3510_v15 }
 0xc92   :  { %1358 = vmatpush.msrb.mxu0 %v3517_v16 }
 0xc94   :  { %1359 = vmatpush.msrb.mxu0 %v3525_v17 }
 0xcfa   :  { %v992_v10 = vpop.f32.mrf.mxu1 }
 0xd00   :  { %v903_v8 = vpop.f32.mrf.mxu3 }
 0xd01   :  { %v907_v9 = vrot.slane %v903_v8, 6 }
 0xd03   :  { %v909_v61 = vadd.f32 %v907_v9, %v3664_v58 }
 0xd05   :  { %3014 = vtanh.f32 %v909_v61  ;;  %v2868_v15 = vmul.f32 -1.442695, %v909_v61 }
 0xd0a   :  { %v972_v48 = vpop.f32.mrf.mxu0 }
 0xd0b   :  { %v3015_v62 = vpop.eup %3014  ;;  %v993_v11 = vadd.f32 %v992_v10, %v972_v48 }
 0xd0c   :  { %935 = vrot.lane.b32.xlu0 %v3015_v62, %s3201_s0 }
 0xd0d   :  { %v995_v23 = vadd.f32 %v3561_v22, %v993_v11 }
 0xd0f   :  { %3016 = vtanh.f32 %v995_v23  ;;  %v2871_v17 = vmul.f32 -1.442695, %v995_v23 }
 0xd10   :  { %3018 = vpow2.f32 %v2868_v15 }
 0xd11   :  { %3020 = vpow2.f32 %v2871_v17 }
 0xd15   :  { %v3017_v14 = vpop.eup %3016 }
 0xd16   :  { %1018 = vrot.lane.b32.xlu1 %v3017_v14, %s3201_s0  ;;  %v3019_v16 = vpop.eup %3018 }
 0xd17   :  { %v913_v25 = vadd.f32 1.0, %v3019_v16  ;;  %v3021_v36 = vpop.eup %3020 }
 0xd18   :  { %v999_v45 = vadd.f32 1.0, %v3021_v36 }
 0xd19   :  { %3022 = vrcp.f32 %v913_v25  ;;  %v925_v4 = vand.u32 2147483648, %v913_v25  ;;  %vm919_vm11 = vweird.f32 %v913_v25  ;;  %v923_v5 = vand.u32 2147483647, %v913_v25 }
 0xd1a   :  { %3024 = vrcp.f32 %v999_v45  ;;  %v1011_v27 = vand.u32 2147483648, %v999_v45  ;;  %vm1005_vm15 = vweird.f32 %v999_v45  ;;  %v1009_v28 = vand.u32 2147483647, %v999_v45 }
 0xd1b   :  { %v926_v18 = vor.u32 1.1754944e-38, %v925_v4  ;;  %vm924_vm13 = vcmp.eq.f32.partialorder %v923_v5, 8.507059e+37 }
 0xd1c   :  { %v1012_v31 = vor.u32 1.1754944e-38, %v1011_v27  ;;  %vm1010_vm3 = vcmp.eq.f32.partialorder %v1009_v28, 8.507059e+37 }
 0xd1f   :  { %v3023_v37 = vpop.eup %3022 }
 0xd20   :  { %v915_v34 = vmul.f32 %v3023_v37, %v913_v25  ;;  %v3025_v0 = vpop.eup %3024  ;;  %vm920_vm10 = vweird.f32 %v3023_v37 }
 0xd21   :  { %v1001_v2 = vmul.f32 %v3025_v0, %v999_v45  ;;  %vm921_vm12 = vmor %vm919_vm11, %vm920_vm10  ;;  %vm1006_vm14 = vweird.f32 %v3025_v0 }
 0xd22   :  { %v916_v63 = vsub.f32 1.0, %v915_v34  ;;  %vm1007_vm2 = vmor %vm1005_vm15, %vm1006_vm14 }
 0xd23   :  { %v1002_v7 = vsub.f32 1.0, %v1001_v2 }
 0xd24   :  { %v917_v1 = vmul.f32 %v3023_v37, %v916_v63 }
 0xd25   :  { %v1003_v19 = vmul.f32 %v3025_v0, %v1002_v7 }
 0xd26   :  { %v918_v3 = vadd.f32 %v3023_v37, %v917_v1 }
 0xd27   :  { %v1004_v26 = vadd.f32 %v3025_v0, %v1003_v19 }
 0xd28   :  { %v922_v13 = vsel %vm921_vm12, %v3023_v37, %v918_v3 }
 0xd29   :  { %v927_v24 = vsel %vm924_vm13, %v926_v18, %v922_v13  ;;  %v1008_v29 = vsel %vm1007_vm2, %v3025_v0, %v1004_v26 }
 0xd2a   :  { %v1013_v33 = vsel %vm1010_vm3, %v1012_v31, %v1008_v29  ;;  %v933_v40 = vmul.f32 %v931_v12, %v927_v24 }
 0xd2b   :  { %v1016_v20 = vmul.f32 %v1013_v33, %v3678_v55 }
 0xd7e   :  { %v936_v21 = vpop.permute.xlu0 %935 }
 0xd7f   :  { %v938_v6 = vmul.f32 %v936_v21, %v927_v24 }
 0xd81   :  { %940 = vrot.lane.b32.xlu2 %v938_v6, %s3202_s4 }
 0xd88   :  { %v1019_v32 = vpop.permute.xlu1 %1018 }
 0xd89   :  { %v1021_v39 = vmul.f32 %v1019_v32, %v1013_v33 }
 0xd8b   :  { %1023 = vrot.lane.b32.xlu0 %v1021_v39, %s3202_s4 }
 0xddb   :  { %v941_v42 = vpop.permute.xlu2 %940 }
 0xddc   :  { %v3706_v43 = vadd.f32 %v941_v42, %v933_v40 }
 0xdde   :  { %3026 = vtanh.f32 %v3706_v43  ;;  %v1084_v29 = vrot.slane %v3706_v43, 6 }
 0xde4   :  { %v3027_v44 = vpop.eup %3026 }
 0xde5   :  { %946 = vrot.lane.b32.xlu1 %v3027_v44, %s3201_s0 }
 0xdfd   :  { %v1024_v47 = vpop.permute.xlu0 %1023 }
 0xdfe   :  { %v3711_v49 = vadd.f32 %v1024_v47, %v1016_v20 }
 0xe00   :  { %3028 = vtanh.f32 %v3711_v49 }
 0xe06   :  { %v3029_v30 = vpop.eup %3028 }
 0xe07   :  { %1029 = vrot.lane.b32.xlu2 %v3029_v30, %s3201_s0 }
 0xe57   :  { %v947_v51 = vpop.permute.xlu1 %946 }
 0xe58   :  { %v949_v52 = vmul.f32 %v947_v51, %v927_v24 }
 0xe5a   :  { %v1034_v53 = vrot.slane %v949_v52, 2  ;;  %v1448_v52 = vld [vmem:[%s4253_s11 + $0x30] sm:$0xff] }
 0xe5c   :  { %1035 = vrot.lane.b32.xlu0 %v1034_v53, %s3202_s4  ;;  %v1447_v53 = vld [vmem:[%s4253_s11 + $0x28] sm:$0xff] }
 0xe61   :  { %v1030_v56 = vpop.permute.xlu2 %1029 }
 0xe62   :  { %v1032_v46 = vmul.f32 %v1030_v56, %v1013_v33  ;;  %v1446_v56 = vld [vmem:[%s4253_s11 + $0x20] sm:$0xff] }
 0xe64   :  { %1104 = vrot.lane.b32.xlu1 %v1032_v46, %s3202_s4  ;;  %v1445_v46 = vld [vmem:[%s4253_s11 + $0x18] sm:$0xff] }
 0xece   :  { %v1036_v57 = vpop.permute.xlu0 %1035 }
 0xecf   :  { %2872 = vmatmul.msk.f32.vlgmr.msra.gmra.mxu2 %vm84_vm0, %v1036_v57  ;;  %2875 = vmatmul.msk.f32.vlgmr.msra.gmra.mxu0 %vm84_vm0, %v1036_v57  ;;  %v1444_v57 = vld [vmem:[%s4253_s11 + $0x10] sm:$0xff] }
 0xed6   :  { %v1105_v55 = vpop.permute.xlu1 %1104 }
 0xed7   :  { %2874 = vmatmul.msk.f32.vlgmr.msra.gmra.mxu3 %vm84_vm0, %v1105_v55 }
 0xf4c   :  { %v1145_v50 = vpop.f32.mrf.mxu0 }
 0xf52   :  { %v1056_v35 = vpop.f32.mrf.mxu2 }
 0xf53   :  { %v1060_v59 = vrot.slane %v1056_v35, 4  ;;  %v1443_v35 = vld [vmem:[%s4253_s11 + $0x8] sm:$0xff] }
 0xf55   :  { %v1062_v60 = vadd.f32 %v1060_v59, %v3664_v58  ;;  %v1442_v59 = vld [vmem:[%s4253_s11] sm:$0xff] }
 0xf57   :  { %3030 = vtanh.f32 %v1062_v60  ;;  %v2873_v62 = vmul.f32 -1.442695, %v1062_v60 }
 0xf5a   :  { %v1125_v8 = vpop.f32.mrf.mxu3 }
 0xf5b   :  { %v1146_v9 = vadd.f32 %v1145_v50, %v1125_v8 }
 0xf5d   :  { %v3031_v61 = vpop.eup %3030  ;;  %v1148_v10 = vadd.f32 %v3561_v22, %v1146_v9 }
 0xf5e   :  { %1088 = vrot.lane.b32.xlu2 %v3031_v61, %s3201_s0 }
 0xf5f   :  { %3032 = vtanh.f32 %v1148_v10  ;;  %v2876_v17 = vmul.f32 -1.442695, %v1148_v10 }
 0xf60   :  { %3034 = vpow2.f32 %v2873_v62 }
 0xf65   :  { %v3033_v48 = vpop.eup %3032 }
 0xf66   :  { %1171 = vrot.lane.b32.xlu0 %v3033_v48, %s3201_s0  ;;  %v3035_v11 = vpop.eup %3034 }
 0xf67   :  { %v1066_v23 = vadd.f32 1.0, %v3035_v11  ;;  %v3774_v11 = vld [vmem:[%s4252_s10] ss:$0 sm:$0xff] }
 0xf69   :  { %3036 = vrcp.f32 %v1066_v23  ;;  %v1078_v22 = vand.u32 2147483648, %v1066_v23  ;;  %vm1072_vm5 = vweird.f32 %v1066_v23  ;;  %v1076_v37 = vand.u32 2147483647, %v1066_v23 }
 0xf6a   :  { %3038 = vpow2.f32 %v2876_v17 }
 0xf6b   :  { %v1079_v63 = vor.u32 1.1754944e-38, %v1078_v22  ;;  %vm1077_vm7 = vcmp.eq.f32.partialorder %v1076_v37, 8.507059e+37 }
 0xf6f   :  { %v3037_v14 = vpop.eup %3036 }
 0xf70   :  { %v1068_v15 = vmul.f32 %v3037_v14, %v1066_v23  ;;  %vm1073_vm4 = vweird.f32 %v3037_v14  ;;  %v3039_v45 = vpop.eup %3038 }
 0xf71   :  { %vm1074_vm6 = vmor %vm1072_vm5, %vm1073_vm4  ;;  %v1152_v0 = vadd.f32 1.0, %v3039_v45 }
 0xf72   :  { %v1069_v16 = vsub.f32 1.0, %v1068_v15 }
 0xf73   :  { %3040 = vrcp.f32 %v1152_v0  ;;  %v1164_v19 = vand.u32 2147483648, %v1152_v0  ;;  %vm1158_vm9 = vweird.f32 %v1152_v0  ;;  %v1162_v21 = vand.u32 2147483647, %v1152_v0 }
 0xf74   :  { %v1070_v25 = vmul.f32 %v3037_v14, %v1069_v16 }
 0xf75   :  { %v1165_v6 = vor.u32 1.1754944e-38, %v1164_v19  ;;  %vm1163_vm11 = vcmp.eq.f32.partialorder %v1162_v21, 8.507059e+37 }
 0xf76   :  { %v1071_v36 = vadd.f32 %v3037_v14, %v1070_v25 }
 0xf78   :  { %v1075_v34 = vsel %vm1074_vm6, %v3037_v14, %v1071_v36 }
 0xf79   :  { %v1080_v1 = vsel %vm1077_vm7, %v1079_v63, %v1075_v34  ;;  %v3041_v4 = vpop.eup %3040 }
 0xf7a   :  { %v1154_v5 = vmul.f32 %v3041_v4, %v1152_v0  ;;  %vm1159_vm8 = vweird.f32 %v3041_v4  ;;  %v1086_v31 = vmul.f32 %v1084_v29, %v1080_v1 }
 0xf7b   :  { %vm1160_vm10 = vmor %vm1158_vm9, %vm1159_vm8 }
 0xf7c   :  { %v1155_v7 = vsub.f32 1.0, %v1154_v5 }
 0xf7e   :  { %v1156_v13 = vmul.f32 %v3041_v4, %v1155_v7 }
 0xf80   :  { %v1157_v18 = vadd.f32 %v3041_v4, %v1156_v13 }
 0xf82   :  { %v1161_v24 = vsel %vm1160_vm10, %v3041_v4, %v1157_v18 }
 0xf83   :  { %v1166_v27 = vsel %vm1163_vm11, %v1165_v6, %v1161_v24 }
 0xf84   :  { %v1169_v39 = vmul.f32 %v1166_v27, %v3711_v49  ;;  %v1449_v49 = vld [vmem:[%s4253_s11 + $0x38] sm:$0xff] }
 0xf85   :  { %1461 = vmatpush.msra.mxu2 %v1449_v49 }
 0xf87   :  { %1462 = vmatpush.msra.mxu2 %v1448_v52 }
 0xf89   :  { %1463 = vmatpush.msra.mxu2 %v1447_v53 }
 0xf8b   :  { %1464 = vmatpush.msra.mxu2 %v1446_v56 }
 0xf8d   :  { %1465 = vmatpush.msra.mxu2 %v1445_v46 }
 0xf8f   :  { %1466 = vmatpush.msra.mxu2 %v1444_v57 }
 0xf91   :  { %1467 = vmatpush.msra.mxu2 %v1443_v35 }
 0xf93   :  { %1468 = vmatpush.msra.mxu2 %v1442_v59 }
 0xfb8   :  { %v1089_v2 = vpop.permute.xlu2 %1088 }
 0xfb9   :  { %v1091_v3 = vmul.f32 %v1089_v2, %v1080_v1 }
 0xfbb   :  { %1093 = vrot.lane.b32.xlu1 %v1091_v3, %s3202_s4 }
 0xfd8   :  { %v1172_v26 = vpop.permute.xlu0 %1171 }
 0xfd9   :  { %v1174_v28 = vmul.f32 %v1172_v26, %v1166_v27 }
 0xfdb   :  { %1176 = vrot.lane.b32.xlu2 %v1174_v28, %s3202_s4 }
0x102d   :  { %v1094_v32 = vpop.permute.xlu1 %1093 }
0x102e   :  { %v3727_v33 = vadd.f32 %v1094_v32, %v1086_v31 }
0x1030   :  { %3042 = vtanh.f32 %v3727_v33  ;;  %v1237_v31 = vrot.slane %v3727_v33, 6 }
0x1035   :  { %v1177_v12 = vpop.permute.xlu2 %1176 }
0x1036   :  { %v3043_v40 = vpop.eup %3042  ;;  %v3731_v42 = vadd.f32 %v1177_v12, %v1169_v39 }
0x1037   :  { %1099 = vrot.lane.b32.xlu0 %v3043_v40, %s3201_s0 }
0x1038   :  { %3044 = vtanh.f32 %v3731_v42 }
0x103e   :  { %v3045_v44 = vpop.eup %3044 }
0x103f   :  { %1182 = vrot.lane.b32.xlu1 %v3045_v44, %s3201_s0 }
0x10a9   :  { %v1100_v43 = vpop.permute.xlu0 %1099 }
0x10aa   :  { %v1102_v20 = vmul.f32 %v1100_v43, %v1080_v1 }
0x10ac   :  { %v1187_v47 = vrot.slane %v1102_v20, 4 }
0x10ae   :  { %1188 = vrot.lane.b32.xlu2 %v1187_v47, %s3202_s4 }
0x10b1   :  { %v1183_v30 = vpop.permute.xlu1 %1182 }
0x10b2   :  { %v1185_v51 = vmul.f32 %v1183_v30, %v1166_v27 }
0x10b4   :  { %1257 = vrot.lane.b32.xlu0 %v1185_v51, %s3202_s4 }
0x1108   :  { %v1189_v55 = vpop.permute.xlu2 %1188 }
0x1109   :  { %2877 = vmatmul.msk.f32.vlgmr.msrb.gmra.mxu1 %vm84_vm0, %v1189_v55  ;;  %2880 = vmatmul.msk.f32.vlgmr.msrb.gmra.mxu3 %vm84_vm0, %v1189_v55 }
0x1126   :  { %v1258_v60 = vpop.permute.xlu0 %1257 }
0x1127   :  { %2879 = vmatmul.msk.f32.vlgmr.msrb.gmra.mxu2 %vm84_vm0, %v1258_v60 }
0x112f   :  { %2885 = vmatmul.msk.f32.vlgmr.msra.gmra.mxu2 %vm184_vm1, %v3450_v41 }
0x1137   :  { %2886 = vmatmul.msk.f32.gmra.mxu2 %vm184_vm1, %v3464_v54 }
0x1186   :  { %v1209_v50 = vpop.f32.mrf.mxu1 }
0x1187   :  { %v1213_v8 = vrot.slane %v1209_v50, 2 }
0x1189   :  { %v1215_v9 = vadd.f32 %v1213_v8, %v3664_v58 }
0x118b   :  { %3046 = vtanh.f32 %v1215_v9  ;;  %v2878_v23 = vmul.f32 -1.442695, %v1215_v9 }
0x118c   :  { %v1298_v10 = vpop.f32.mrf.mxu3 }
0x1191   :  { %v3047_v61 = vpop.eup %3046 }
0x1192   :  { %1241 = vrot.lane.b32.xlu1 %v3047_v61, %s3201_s0 }
0x11aa   :  { %v1278_v48 = vpop.f32.mrf.mxu2 }
0x11ab   :  { %v1299_v62 = vadd.f32 %v1298_v10, %v1278_v48 }
0x11ad   :  { %v1301_v41 = vadd.f32 %v3774_v11, %v1299_v62 }
0x11af   :  { %3048 = vtanh.f32 %v1301_v41  ;;  %v2881_v14 = vmul.f32 -1.442695, %v1301_v41 }
0x11b0   :  { %3050 = vpow2.f32 %v2878_v23 }
0x11b1   :  { %3052 = vpow2.f32 %v2881_v14 }
0x11b5   :  { %v3049_v54 = vpop.eup %3048 }
0x11b6   :  { %1324 = vrot.lane.b32.xlu2 %v3049_v54, %s3201_s0  ;;  %v3051_v58 = vpop.eup %3050 }
0x11b7   :  { %v1219_v15 = vadd.f32 1.0, %v3051_v58  ;;  %v3053_v16 = vpop.eup %3052 }
0x11b8   :  { %v1305_v25 = vadd.f32 1.0, %v3053_v16 }
0x11b9   :  { %3054 = vrcp.f32 %v1219_v15  ;;  %v1231_v0 = vand.u32 2147483648, %v1219_v15  ;;  %vm1225_vm13 = vweird.f32 %v1219_v15  ;;  %v1229_v1 = vand.u32 2147483647, %v1219_v15 }
0x11ba   :  { %3056 = vrcp.f32 %v1305_v25  ;;  %v1317_v21 = vand.u32 2147483648, %v1305_v25  ;;  %vm1311_vm3 = vweird.f32 %v1305_v25  ;;  %v1315_v24 = vand.u32 2147483647, %v1305_v25 }
0x11bb   :  { %v1232_v4 = vor.u32 1.1754944e-38, %v1231_v0  ;;  %vm1230_vm15 = vcmp.eq.f32.partialorder %v1229_v1, 8.507059e+37  ;;  %v3829_v1 = vld [vmem:[%s4254_s13] ss:$0 sm:$0xff] }
0x11bc   :  { %v1318_v26 = vor.u32 1.1754944e-38, %v1317_v21  ;;  %vm1316_vm5 = vcmp.eq.f32.partialorder %v1315_v24, 8.507059e+37 }
0x11bf   :  { %v3055_v17 = vpop.eup %3054 }
0x11c0   :  { %v1221_v36 = vmul.f32 %v3055_v17, %v1219_v15  ;;  %v3057_v45 = vpop.eup %3056  ;;  %vm1226_vm12 = vweird.f32 %v3055_v17 }
0x11c1   :  { %v1307_v63 = vmul.f32 %v3057_v45, %v1305_v25  ;;  %vm1227_vm14 = vmor %vm1225_vm13, %vm1226_vm12  ;;  %vm1312_vm2 = vweird.f32 %v3057_v45 }
0x11c2   :  { %v1222_v22 = vsub.f32 1.0, %v1221_v36  ;;  %vm1313_vm4 = vmor %vm1311_vm3, %vm1312_vm2  ;;  %v3795_v36 = vld [vmem:[%s4255_s12 + $0x18] sm:$0xff] }
0x11c3   :  { %v1308_v3 = vsub.f32 1.0, %v1307_v63  ;;  %1493 = vmatpush.msra.mxu3 %v3795_v36  ;;  %1556 = vmatpush.msra.mxu0 %v3795_v36 }
0x11c4   :  { %v1223_v37 = vmul.f32 %v3055_v17, %v1222_v22  ;;  %v3800_v22 = vld [vmem:[%s4255_s12 + $0x10] sm:$0xff] }
0x11c5   :  { %v1309_v18 = vmul.f32 %v3057_v45, %v1308_v3  ;;  %1494 = vmatpush.msra.mxu3 %v3800_v22  ;;  %1557 = vmatpush.msra.mxu0 %v3800_v22 }
0x11c6   :  { %v1224_v34 = vadd.f32 %v3055_v17, %v1223_v37  ;;  %v3807_v37 = vld [vmem:[%s4255_s12 + $0x8] sm:$0xff] }
0x11c7   :  { %v1310_v19 = vadd.f32 %v3057_v45, %v1309_v18  ;;  %1495 = vmatpush.msra.mxu3 %v3807_v37  ;;  %1558 = vmatpush.msra.mxu0 %v3807_v37 }
0x11c8   :  { %v1228_v2 = vsel %vm1227_vm14, %v3055_v17, %v1224_v34 }
0x11c9   :  { %v1233_v7 = vsel %vm1230_vm15, %v1232_v4, %v1228_v2  ;;  %v1314_v6 = vsel %vm1313_vm4, %v3057_v45, %v1310_v19  ;;  %v3814_v45 = vld [vmem:[%s4255_s12] sm:$0xff] }
0x11ca   :  { %v1319_v28 = vsel %vm1316_vm5, %v1318_v26, %v1314_v6  ;;  %v1239_v32 = vmul.f32 %v1237_v31, %v1233_v7  ;;  %1496 = vmatpush.msra.mxu3 %v3814_v45  ;;  %1559 = vmatpush.msra.mxu0 %v3814_v45 }
0x11cb   :  { %v1322_v44 = vmul.f32 %v1319_v28, %v3731_v42 }
0x1204   :  { %v1242_v5 = vpop.permute.xlu1 %1241 }
0x1205   :  { %v1244_v13 = vmul.f32 %v1242_v5, %v1233_v7 }
0x1207   :  { %1246 = vrot.lane.b32.xlu0 %v1244_v13, %s3202_s4 }
0x1210   :  { %v1325_v27 = vpop.permute.xlu2 %1324 }
0x1211   :  { %v1327_v29 = vmul.f32 %v1325_v27, %v1319_v28 }
0x1213   :  { %1329 = vrot.lane.b32.xlu1 %v1327_v29, %s3202_s4 }
0x1279   :  { %v1247_v39 = vpop.permute.xlu0 %1246 }
0x127a   :  { %v1249_v12 = vadd.f32 %v1247_v39, %v1239_v32 }
0x127c   :  { %3058 = vtanh.f32 %v1249_v12 }
0x1282   :  { %v3059_v40 = vpop.eup %3058 }
0x1283   :  { %1252 = vrot.lane.b32.xlu2 %v3059_v40, %s3201_s0 }
0x1285   :  { %v1330_v43 = vpop.permute.xlu1 %1329 }
0x1286   :  { %v1332_v20 = vadd.f32 %v1330_v43, %v1322_v44 }
0x1288   :  { %3060 = vtanh.f32 %v1332_v20 }
0x128e   :  { %v3061_v47 = vpop.eup %3060 }
0x128f   :  { %1335 = vrot.lane.b32.xlu0 %v3061_v47, %s3201_s0  ;;  %v3846_v47 = vld [vmem:[%s4256_s14 + $0x10] sm:$0xff] }
0x12dd   :  { %v1253_v30 = vpop.permute.xlu2 %1252 }
0x12de   :  { %v1255_v51 = vmul.f32 %v1253_v30, %v1233_v7  ;;  %v3852_v30 = vld [vmem:[%s4257_s15 + $0x18] sm:$0xff] }
0x12df   :  { %1620 = vmatpush.msrb.mxu1 %v3852_v30 }
0x12e0   :  { %v1365_v49 = vrot.slane %v1255_v51, 6  ;;  %v3858_v51 = vld [vmem:[%s4256_s14 + $0x8] sm:$0xff] }
0x12e2   :  { %1366 = vrot.lane.b32.xlu2 %v1365_v49, %s3202_s4  ;;  %v3866_v49 = vld [vmem:[%s4256_s14] sm:$0xff] }
0x1301   :  { %v1336_v33 = vpop.permute.xlu0 %1335 }
0x1302   :  { %v1338_v52 = vmul.f32 %v1336_v33, %v1319_v28 }
0x1304   :  { %1340 = vrot.lane.b32.xlu1 %v1338_v52, %s3202_s4 }
0x133c   :  { %v1367_v53 = vpop.permute.xlu2 %1366 }
0x133d   :  { %2883 = vmatmul.msk.f32.vlgmr.msra.gmra.mxu1 %vm84_vm0, %v1367_v53  ;;  %v3884_v53 = vld [vmem:[%s4257_s15 + $0x10] sm:$0xff] }
0x133e   :  { %1621 = vmatpush.msrb.mxu1 %v3884_v53 }
0x1376   :  { %v1341_v56 = vpop.permute.xlu1 %1340 }
0x1377   :  { %2882 = vmatmul.msk.f32.vlgmr.msrb.gmra.mxu0 %vm84_vm0, %v1341_v56  ;;  %v3889_v56 = vld [vmem:[%s4257_s15 + $0x8] sm:$0xff] }
0x1378   :  { %1713 = vmatpush.msrb.mxu0 %v3795_v36  ;;  %1622 = vmatpush.msrb.mxu1 %v3889_v56 }
0x137a   :  { %1714 = vmatpush.msrb.mxu0 %v3800_v22 }
0x137c   :  { %1715 = vmatpush.msrb.mxu0 %v3807_v37 }
0x137e   :  { %1716 = vmatpush.msrb.mxu0 %v3814_v45 }
0x13ba   :  { %v1387_v42 = vpop.f32.mrf.mxu1 }
0x13f4   :  { %v1361_v46 = vpop.f32.mrf.mxu0 }
0x13f5   :  { %v1388_v57 = vadd.f32 %v1387_v42, %v1361_v46  ;;  %v3895_v42 = vld [vmem:[%s4257_s15] sm:$0xff] }
0x13f6   :  { %1623 = vmatpush.msrb.mxu1 %v3895_v42 }
0x13f7   :  { %v1390_v55 = vadd.f32 %v3774_v11, %v1388_v57  ;;  %1624 = vmatmul.f32.vlgmr.msrb.gmra.mxu1 %v3200_v38  ;;  %v3918_v38 = vpop.f32.mrf.mxu2 }
0x13f8   :  { %1779 = vmatpush.msra.mxu1 %v3852_v30 }
0x13f9   :  { %3062 = vtanh.f32 %v1390_v55  ;;  %v2884_v59 = vmul.f32 -1.442695, %v1390_v55 }
0x13fa   :  { %1780 = vmatpush.msra.mxu1 %v3884_v53 }
0x13fb   :  { %3064 = vpow2.f32 %v2884_v59 }
0x13fc   :  { %1781 = vmatpush.msra.mxu1 %v3889_v56 }
0x13fe   :  { %1782 = vmatpush.msra.mxu1 %v3895_v42 }
0x13ff   :  { %v3063_v35 = vpop.eup %3062  ;;  %v1473_v57 = vpop.f32.mrf.mxu2 }
0x1400   :  { %1413 = vrot.lane.b32.xlu0 %v3063_v35, %s3201_s0  ;;  %1934 = vmatpush.msrb.mxu1 %v3852_v30  ;;  %v3921_v35 = vadd.f32 %v3829_v1, %v1473_v57 }
0x1401   :  { %v3065_v60 = vpop.eup %3064 }
0x1402   :  { %v1394_v50 = vadd.f32 1.0, %v3065_v60  ;;  %1935 = vmatpush.msrb.mxu1 %v3884_v53 }
0x1404   :  { %3066 = vrcp.f32 %v1394_v50  ;;  %v1406_v62 = vand.u32 2147483648, %v1394_v50  ;;  %vm1400_vm7 = vweird.f32 %v1394_v50  ;;  %v1404_v41 = vand.u32 2147483647, %v1394_v50  ;;  %1936 = vmatpush.msrb.mxu1 %v3889_v56 }
0x1406   :  { %v1407_v54 = vor.u32 1.1754944e-38, %v1406_v62  ;;  %vm1405_vm9 = vcmp.eq.f32.partialorder %v1404_v41, 8.507059e+37  ;;  %1937 = vmatpush.msrb.mxu1 %v3895_v42 }
0x140a   :  { %v3067_v8 = vpop.eup %3066 }
0x140b   :  { %v1396_v9 = vmul.f32 %v3067_v8, %v1394_v50  ;;  %vm1401_vm6 = vweird.f32 %v3067_v8 }
0x140c   :  { %vm1402_vm8 = vmor %vm1400_vm7, %vm1401_vm6 }
0x140d   :  { %v1397_v61 = vsub.f32 1.0, %v1396_v9 }
0x140f   :  { %v1398_v10 = vmul.f32 %v3067_v8, %v1397_v61 }
0x1411   :  { %v1399_v48 = vadd.f32 %v3067_v8, %v1398_v10 }
0x1413   :  { %v1403_v11 = vsel %vm1402_vm8, %v3067_v8, %v1399_v48  ;;  %v3927_v8 = vld [vmem:[%s4258_s16] ss:$0 sm:$0xff]  ;;  %vm1693_vm8 = vcmask 254976  }
0x1414   :  { %v1408_v58 = vsel %vm1405_vm9, %v1407_v54, %v1403_v11 }
0x1415   :  { %v1411_v15 = vmul.f32 %v1408_v58, %v1332_v20  ;;  %v3841_v20 = vld [vmem:[%s4256_s14 + $0x18] sm:$0xff] }
0x1416   :  { %1640 = vmatpush.msrb.mxu3 %v3841_v20  ;;  %1954 = vmatpush.msrb.mxu2 %v3841_v20 }
0x1418   :  { %1641 = vmatpush.msrb.mxu3 %v3846_v47  ;;  %1955 = vmatpush.msrb.mxu2 %v3846_v47 }
0x141a   :  { %1642 = vmatpush.msrb.mxu3 %v3858_v51  ;;  %1956 = vmatpush.msrb.mxu2 %v3858_v51 }
0x141c   :  { %1643 = vmatpush.msrb.mxu3 %v3866_v49  ;;  %1957 = vmatpush.msrb.mxu2 %v3866_v49 }
0x141e   :  { %2174 = vmatpush.msra.mxu2 %v3795_v36 }
0x1420   :  { %2175 = vmatpush.msra.mxu2 %v3800_v22 }
0x1422   :  { %2176 = vmatpush.msra.mxu2 %v3807_v37 }
0x1424   :  { %2177 = vmatpush.msra.mxu2 %v3814_v45 }
0x1472   :  { %v1414_v23 = vpop.permute.xlu0 %1413 }
0x1473   :  { %v1416_v14 = vmul.f32 %v1414_v23, %v1408_v58 }
0x1474   :  { %v1625_v50 = vpop.f32.mrf.mxu1 }
0x1475   :  { %1418 = vrot.lane.b32.xlu1 %v1416_v14, %s3202_s4 }
0x14e7   :  { %v1419_v16 = vpop.permute.xlu1 %1418 }
0x14e8   :  { %v1421_v17 = vadd.f32 %v1419_v16, %v1411_v15 }
0x14ea   :  { %3068 = vtanh.f32 %v1421_v17 }
0x14f0   :  { %v3069_v25 = vpop.eup %3068 }
0x14f1   :  { %1424 = vrot.lane.b32.xlu2 %v3069_v25, %s3201_s0 }
0x154b   :  { %v1425_v34 = vpop.permute.xlu2 %1424 }
0x154c   :  { %v1427_v63 = vmul.f32 %v1425_v34, %v1408_v58 }
0x154e   :  { %1477 = vrot.lane.b32.xlu0 %v1427_v63, %s3202_s4 }
0x15c0   :  { %v1478_v0 = vpop.permute.xlu0 %1477 }
0x15c1   :  { %2887 = vmatmul.msk.f32.vlgmr.msra.gmra.mxu3 %vm84_vm0, %v1478_v0 }
0x15c2   :  { %1799 = vmatpush.msra.mxu3 %v3841_v20 }
0x15c4   :  { %1800 = vmatpush.msra.mxu3 %v3846_v47 }
0x15c6   :  { %1801 = vmatpush.msra.mxu3 %v3858_v51 }
0x15c8   :  { %1802 = vmatpush.msra.mxu3 %v3866_v49 }
0x1644   :  { %v1498_v2 = vpop.f32.mrf.mxu3 }
0x1645   :  { %v1501_v3 = vadd.f32 %v3829_v1, %v1498_v2 }
0x1647   :  { %3070 = vtanh.f32 %v1501_v3  ;;  %v2888_v5 = vmul.f32 -1.442695, %v1501_v3 }
0x1649   :  { %3072 = vpow2.f32 %v2888_v5 }
0x164d   :  { %v3071_v4 = vpop.eup %3070 }
0x164e   :  { %1524 = vrot.lane.b32.xlu1 %v3071_v4, %s3201_s0 }
0x164f   :  { %v3073_v7 = vpop.eup %3072 }
0x1650   :  { %v1505_v13 = vadd.f32 1.0, %v3073_v7 }
0x1652   :  { %3074 = vrcp.f32 %v1505_v13  ;;  %v1517_v26 = vand.u32 2147483648, %v1505_v13  ;;  %vm1511_vm11 = vweird.f32 %v1505_v13  ;;  %v1515_v27 = vand.u32 2147483647, %v1505_v13 }
0x1654   :  { %v1518_v29 = vor.u32 1.1754944e-38, %v1517_v26  ;;  %vm1516_vm13 = vcmp.eq.f32.partialorder %v1515_v27, 8.507059e+37 }
0x1658   :  { %v3075_v18 = vpop.eup %3074 }
0x1659   :  { %v1507_v19 = vmul.f32 %v3075_v18, %v1505_v13  ;;  %vm1512_vm10 = vweird.f32 %v3075_v18 }
0x165a   :  { %vm1513_vm12 = vmor %vm1511_vm11, %vm1512_vm10 }
0x165b   :  { %v1508_v21 = vsub.f32 1.0, %v1507_v19 }
0x165d   :  { %v1509_v24 = vmul.f32 %v3075_v18, %v1508_v21 }
0x165f   :  { %v1510_v6 = vadd.f32 %v3075_v18, %v1509_v24 }
0x1661   :  { %v1514_v28 = vsel %vm1513_vm12, %v3075_v18, %v1510_v6 }
0x1662   :  { %v1519_v32 = vsel %vm1516_vm13, %v1518_v29, %v1514_v28 }
0x1663   :  { %v1522_v12 = vmul.f32 0.0, %v1519_v32 }
0x16c0   :  { %v1525_v31 = vpop.permute.xlu1 %1524 }
0x16c1   :  { %v1527_v39 = vmul.f32 %v1525_v31, %v1519_v32 }
0x16c3   :  { %1529 = vrot.lane.b32.xlu2 %v1527_v39, %s3202_s4 }
0x171d   :  { %v1530_v40 = vpop.permute.xlu2 %1529 }
0x171e   :  { %v3834_v44 = vadd.f32 %v1530_v40, %v1522_v12 }
0x1720   :  { %3076 = vtanh.f32 %v3834_v44  ;;  %v1589_v39 = vrot.slane %v3834_v44, 2 }
0x1726   :  { %v3077_v43 = vpop.eup %3076 }
0x1727   :  { %1535 = vrot.lane.b32.xlu0 %v3077_v43, %s3201_s0 }
0x1799   :  { %v1536_v33 = vpop.permute.xlu0 %1535 }
0x179a   :  { %v1538_v52 = vmul.f32 %v1536_v33, %v1519_v32 }
0x179c   :  { %1540 = vrot.lane.b32.xlu1 %v1538_v52, %s3202_s4 }
0x180e   :  { %v1541_v46 = vpop.permute.xlu1 %1540 }
0x180f   :  { %2889 = vmatmul.msk.f32.vlgmr.msra.gmra.mxu0 %vm84_vm0, %v1541_v46  ;;  %2891 = vmatmul.msk.f32.vlgmr.msrb.gmra.mxu3 %vm84_vm0, %v1541_v46 }
0x1810   :  { %1868 = vmatpush.msra.mxu0 %v3795_v36  ;;  %2023 = vmatpush.msrb.mxu3 %v3795_v36 }
0x1812   :  { %1869 = vmatpush.msra.mxu0 %v3800_v22  ;;  %2024 = vmatpush.msrb.mxu3 %v3800_v22 }
0x1814   :  { %1870 = vmatpush.msra.mxu0 %v3807_v37  ;;  %2025 = vmatpush.msrb.mxu3 %v3807_v37 }
0x1816   :  { %1871 = vmatpush.msra.mxu0 %v3814_v45  ;;  %2026 = vmatpush.msrb.mxu3 %v3814_v45 }
0x188c   :  { %v1561_v55 = vpop.f32.mrf.mxu0 }
0x188d   :  { %v1565_v59 = vrot.slane %v1561_v55, 2 }
0x188f   :  { %v1567_v60 = vadd.f32 %v1565_v59, %v3921_v35 }
0x1891   :  { %3078 = vtanh.f32 %v1567_v60  ;;  %v2890_v41 = vmul.f32 -1.442695, %v1567_v60 }
0x1892   :  { %v1645_v9 = vpop.f32.mrf.mxu3 }
0x1893   :  { %v1646_v61 = vadd.f32 %v1645_v9, %v1625_v50 }
0x1895   :  { %v1651_v10 = vadd.f32 %v3927_v8, %v1646_v61 }
0x1897   :  { %v3079_v48 = vpop.eup %3078  ;;  %3080 = vtanh.f32 %v1651_v10  ;;  %v2892_v14 = vmul.f32 -1.442695, %v1651_v10 }
0x1898   :  { %1593 = vrot.lane.b32.xlu2 %v3079_v48, %s3201_s0  ;;  %3082 = vpow2.f32 %v2890_v41 }
0x189d   :  { %v3081_v62 = vpop.eup %3080 }
0x189e   :  { %1674 = vrot.lane.b32.xlu0 %v3081_v62, %s3201_s0  ;;  %v3083_v11 = vpop.eup %3082 }
0x189f   :  { %v1571_v54 = vadd.f32 1.0, %v3083_v11 }
0x18a1   :  { %3084 = vrcp.f32 %v1571_v54  ;;  %v1583_v25 = vand.u32 2147483648, %v1571_v54  ;;  %vm1577_vm15 = vweird.f32 %v1571_v54  ;;  %v1581_v63 = vand.u32 2147483647, %v1571_v54 }
0x18a2   :  { %3086 = vpow2.f32 %v2892_v14 }
0x18a3   :  { %v1584_v3 = vor.u32 1.1754944e-38, %v1583_v25  ;;  %vm1582_vm3 = vcmp.eq.f32.partialorder %v1581_v63, 8.507059e+37 }
0x18a7   :  { %v3085_v23 = vpop.eup %3084 }
0x18a8   :  { %v1573_v58 = vmul.f32 %v3085_v23, %v1571_v54  ;;  %vm1578_vm14 = vweird.f32 %v3085_v23  ;;  %v3087_v34 = vpop.eup %3086 }
0x18a9   :  { %vm1579_vm2 = vmor %vm1577_vm15, %vm1578_vm14  ;;  %v1655_v2 = vadd.f32 1.0, %v3087_v34 }
0x18aa   :  { %v1574_v15 = vsub.f32 1.0, %v1573_v58 }
0x18ab   :  { %3088 = vrcp.f32 %v1655_v2  ;;  %v1667_v6 = vand.u32 2147483648, %v1655_v2  ;;  %vm1661_vm5 = vweird.f32 %v1655_v2  ;;  %v1665_v26 = vand.u32 2147483647, %v1655_v2 }
0x18ac   :  { %v1575_v16 = vmul.f32 %v3085_v23, %v1574_v15 }
0x18ad   :  { %v1668_v28 = vor.u32 1.1754944e-38, %v1667_v6  ;;  %vm1666_vm7 = vcmp.eq.f32.partialorder %v1665_v26, 8.507059e+37 }
0x18ae   :  { %v1576_v17 = vadd.f32 %v3085_v23, %v1575_v16 }
0x18b0   :  { %v1580_v0 = vsel %vm1579_vm2, %v3085_v23, %v1576_v17 }
0x18b1   :  { %v1585_v5 = vsel %vm1582_vm3, %v1584_v3, %v1580_v0  ;;  %v3089_v13 = vpop.eup %3088 }
0x18b2   :  { %v1657_v18 = vmul.f32 %v3089_v13, %v1655_v2  ;;  %vm1662_vm4 = vweird.f32 %v3089_v13  ;;  %v1591_v12 = vmul.f32 %v1589_v39, %v1585_v5 }
0x18b3   :  { %vm1663_vm6 = vmor %vm1661_vm5, %vm1662_vm4 }
0x18b4   :  { %v1658_v19 = vsub.f32 1.0, %v1657_v18 }
0x18b6   :  { %v1659_v21 = vmul.f32 %v3089_v13, %v1658_v19 }
0x18b8   :  { %v1660_v24 = vadd.f32 %v3089_v13, %v1659_v21 }
0x18ba   :  { %v1664_v27 = vsel %vm1663_vm6, %v3089_v13, %v1660_v24 }
0x18bb   :  { %v1669_v31 = vsel %vm1666_vm7, %v1668_v28, %v1664_v27 }
0x18bc   :  { %v1672_v33 = vmul.f32 0.0, %v1669_v31 }
0x18f2   :  { %v1594_v4 = vpop.permute.xlu2 %1593 }
0x18f3   :  { %v1596_v7 = vmul.f32 %v1594_v4, %v1585_v5 }
0x18f5   :  { %1598 = vrot.lane.b32.xlu1 %v1596_v7, %s3202_s4 }
0x1910   :  { %v1675_v29 = vpop.permute.xlu0 %1674 }
0x1911   :  { %v1677_v32 = vmul.f32 %v1675_v29, %v1669_v31 }
0x1913   :  { %1679 = vrot.lane.b32.xlu2 %v1677_v32, %s3202_s4 }
0x1967   :  { %v1599_v40 = vpop.permute.xlu1 %1598 }
0x1968   :  { %v3935_v43 = vadd.f32 %v1599_v40, %v1591_v12 }
0x196a   :  { %3090 = vtanh.f32 %v3935_v43 }
0x196d   :  { %v1680_v52 = vpop.permute.xlu2 %1679 }
0x196e   :  { %v3938_v46 = vadd.f32 %v1680_v52, %v1672_v33 }
0x1970   :  { %v3091_v57 = vpop.eup %3090  ;;  %3092 = vtanh.f32 %v3938_v46 }
0x1971   :  { %1604 = vrot.lane.b32.xlu0 %v3091_v57, %s3201_s0 }
0x1976   :  { %v3093_v55 = vpop.eup %3092 }
0x1977   :  { %1685 = vrot.lane.b32.xlu1 %v3093_v55, %s3201_s0 }
0x19e3   :  { %v1605_v59 = vpop.permute.xlu0 %1604 }
0x19e4   :  { %v1607_v44 = vmul.f32 %v1605_v59, %v1585_v5  ;;  %v1746_v59 = vrot.slane %v3935_v43, 2 }
0x19e6   :  { %v1696_v60 = vrot.slane %v1607_v44, 6 }
0x19e8   :  { %1697 = vrot.lane.b32.xlu2 %v1696_v60, %s3202_s4 }
0x19e9   :  { %v1686_v50 = vpop.permute.xlu1 %1685 }
0x19ea   :  { %v1688_v9 = vmul.f32 %v1686_v50, %v1669_v31 }
0x19ec   :  { %1690 = vrot.lane.b32.xlu0 %v1688_v9, %s3202_s4 }
0x1a42   :  { %v1698_v61 = vpop.permute.xlu2 %1697 }
0x1a43   :  { %2893 = vmatmul.msk.f32.vlgmr.msrb.gmra.mxu0 %vm84_vm0, %v1698_v61  ;;  %2896 = vmatmul.msk.f32.vlgmr.msra.gmra.mxu3 %vm84_vm0, %v1698_v61 }
0x1a44   :  { %2086 = vmatpush.msrb.mxu0 %v3852_v30  ;;  %2240 = vmatpush.msra.mxu3 %v3852_v30 }
0x1a46   :  { %2087 = vmatpush.msrb.mxu0 %v3884_v53  ;;  %2241 = vmatpush.msra.mxu3 %v3884_v53 }
0x1a48   :  { %2088 = vmatpush.msrb.mxu0 %v3889_v56  ;;  %2242 = vmatpush.msra.mxu3 %v3889_v56 }
0x1a4a   :  { %2089 = vmatpush.msrb.mxu0 %v3895_v42  ;;  %2243 = vmatpush.msra.mxu3 %v3895_v42 }
0x1a5e   :  { %v1691_v10 = vpop.permute.xlu0 %1690 }
0x1a5f   :  { %1694 = vst.msk [vmem:[#allocation2 + $0xe] sm:$0x3] %vm1693_vm8, %v1691_v10  ;;  %2895 = vmatmul.msk.f32.vlgmr.msra.gmra.mxu1 %vm84_vm0, %v1691_v10 }
0x1a60   :  { %2106 = vmatpush.msra.mxu1 %v3841_v20 }
0x1a62   :  { %2107 = vmatpush.msra.mxu1 %v3846_v47 }
0x1a64   :  { %2108 = vmatpush.msra.mxu1 %v3858_v51 }
0x1a66   :  { %2109 = vmatpush.msra.mxu1 %v3866_v49 }
0x1ac0   :  { %v1718_v48 = vpop.f32.mrf.mxu0 }
0x1ac1   :  { %v1722_v62 = vrot.slane %v1718_v48, 4 }
0x1ac3   :  { %v1724_v41 = vadd.f32 %v1722_v62, %v3921_v35 }
0x1ac5   :  { %3094 = vtanh.f32 %v1724_v41  ;;  %v2894_v16 = vmul.f32 -1.442695, %v1724_v41 }
0x1ac6   :  { %v1804_v54 = vpop.f32.mrf.mxu3 }
0x1acb   :  { %v3095_v11 = vpop.eup %3094 }
0x1acc   :  { %1750 = vrot.lane.b32.xlu1 %v3095_v11, %s3201_s0 }
0x1adc   :  { %v1784_v23 = vpop.f32.mrf.mxu1 }
0x1add   :  { %v1805_v58 = vadd.f32 %v1804_v54, %v1784_v23 }
0x1adf   :  { %v1807_v14 = vadd.f32 %v3927_v8, %v1805_v58 }
0x1ae1   :  { %3096 = vtanh.f32 %v1807_v14  ;;  %v2897_v17 = vmul.f32 -1.442695, %v1807_v14 }
0x1ae2   :  { %3098 = vpow2.f32 %v2894_v16 }
0x1ae3   :  { %3100 = vpow2.f32 %v2897_v17 }
0x1ae7   :  { %v3097_v15 = vpop.eup %3096 }
0x1ae8   :  { %1830 = vrot.lane.b32.xlu2 %v3097_v15, %s3201_s0  ;;  %v3099_v25 = vpop.eup %3098 }
0x1ae9   :  { %v1728_v34 = vadd.f32 1.0, %v3099_v25  ;;  %v3101_v63 = vpop.eup %3100 }
0x1aea   :  { %v1811_v0 = vadd.f32 1.0, %v3101_v63 }
0x1aeb   :  { %3102 = vrcp.f32 %v1728_v34  ;;  %v1740_v24 = vand.u32 2147483648, %v1728_v34  ;;  %vm1734_vm10 = vweird.f32 %v1728_v34  ;;  %v1738_v6 = vand.u32 2147483647, %v1728_v34 }
0x1aec   :  { %3104 = vrcp.f32 %v1811_v0  ;;  %v1823_v29 = vand.u32 2147483648, %v1811_v0  ;;  %vm1817_vm14 = vweird.f32 %v1811_v0  ;;  %v1821_v31 = vand.u32 2147483647, %v1811_v0 }
0x1aed   :  { %v1741_v28 = vor.u32 1.1754944e-38, %v1740_v24  ;;  %vm1739_vm13 = vcmp.eq.f32.partialorder %v1738_v6, 8.507059e+37 }
0x1aee   :  { %v1824_v33 = vor.u32 1.1754944e-38, %v1823_v29  ;;  %vm1822_vm2 = vcmp.eq.f32.partialorder %v1821_v31, 8.507059e+37 }
0x1af1   :  { %v3103_v2 = vpop.eup %3102 }
0x1af2   :  { %v1730_v3 = vmul.f32 %v3103_v2, %v1728_v34  ;;  %v3105_v4 = vpop.eup %3104  ;;  %vm1735_vm9 = vweird.f32 %v3103_v2 }
0x1af3   :  { %v1813_v7 = vmul.f32 %v3105_v4, %v1811_v0  ;;  %vm1736_vm11 = vmor %vm1734_vm10, %vm1735_vm9  ;;  %vm1818_vm12 = vweird.f32 %v3105_v4 }
0x1af4   :  { %v1731_v5 = vsub.f32 1.0, %v1730_v3  ;;  %vm1819_vm15 = vmor %vm1817_vm14, %vm1818_vm12 }
0x1af5   :  { %v1814_v18 = vsub.f32 1.0, %v1813_v7 }
0x1af6   :  { %v1732_v13 = vmul.f32 %v3103_v2, %v1731_v5 }
0x1af7   :  { %v1815_v21 = vmul.f32 %v3105_v4, %v1814_v18 }
0x1af8   :  { %v1733_v19 = vadd.f32 %v3103_v2, %v1732_v13 }
0x1af9   :  { %v1816_v27 = vadd.f32 %v3105_v4, %v1815_v21 }
0x1afa   :  { %v1737_v26 = vsel %vm1736_vm11, %v3103_v2, %v1733_v19 }
0x1afb   :  { %v1742_v39 = vsel %vm1739_vm13, %v1741_v28, %v1737_v26  ;;  %v1820_v40 = vsel %vm1819_vm15, %v3105_v4, %v1816_v27 }
0x1afc   :  { %v1825_v57 = vsel %vm1822_vm2, %v1824_v33, %v1820_v40  ;;  %v1748_v44 = vmul.f32 %v1746_v59, %v1742_v39 }
0x1afd   :  { %v1828_v9 = vmul.f32 %v1825_v57, %v3938_v46 }
0x1b3e   :  { %v1751_v32 = vpop.permute.xlu1 %1750 }
0x1b3f   :  { %v1753_v12 = vmul.f32 %v1751_v32, %v1742_v39 }
0x1b41   :  { %1755 = vrot.lane.b32.xlu0 %v1753_v12, %s3202_s4 }
0x1b42   :  { %v1831_v52 = vpop.permute.xlu2 %1830 }
0x1b43   :  { %v1833_v55 = vmul.f32 %v1831_v52, %v1825_v57 }
0x1b45   :  { %1835 = vrot.lane.b32.xlu1 %v1833_v55, %s3202_s4 }
0x1bb3   :  { %v1756_v60 = vpop.permute.xlu0 %1755 }
0x1bb4   :  { %v3968_v50 = vadd.f32 %v1756_v60, %v1748_v44 }
0x1bb6   :  { %3106 = vtanh.f32 %v3968_v50 }
0x1bb7   :  { %v1836_v61 = vpop.permute.xlu1 %1835 }
0x1bb8   :  { %v3972_v10 = vadd.f32 %v1836_v61, %v1828_v9 }
0x1bba   :  { %3108 = vtanh.f32 %v3972_v10 }
0x1bbc   :  { %v3107_v48 = vpop.eup %3106 }
0x1bbd   :  { %1761 = vrot.lane.b32.xlu2 %v3107_v48, %s3201_s0 }
0x1bc0   :  { %v3109_v62 = vpop.eup %3108 }
0x1bc1   :  { %1841 = vrot.lane.b32.xlu0 %v3109_v62, %s3201_s0 }
0x1c17   :  { %v1762_v43 = vpop.permute.xlu2 %1761 }
0x1c18   :  { %v1764_v41 = vmul.f32 %v1762_v43, %v1742_v39  ;;  %v1901_v43 = vrot.slane %v3968_v50, 2 }
0x1c1a   :  { %v1851_v11 = vrot.slane %v1764_v41, 4 }
0x1c1c   :  { %1852 = vrot.lane.b32.xlu1 %v1851_v11, %s3202_s4 }
0x1c33   :  { %v1842_v54 = vpop.permute.xlu0 %1841 }
0x1c34   :  { %v1844_v23 = vmul.f32 %v1842_v54, %v1825_v57 }
0x1c36   :  { %1846 = vrot.lane.b32.xlu2 %v1844_v23, %s3202_s4 }
0x1c8e   :  { %v1853_v46 = vpop.permute.xlu1 %1852 }
0x1c8f   :  { %2898 = vmatmul.msk.f32.vlgmr.msra.gmra.mxu0 %vm84_vm0, %v1853_v46  ;;  %2901 = vmatmul.msk.f32.vlgmr.msrb.gmra.mxu2 %vm84_vm0, %v1853_v46 }
0x1c90   :  { %v1847_v58 = vpop.permute.xlu2 %1846  ;;  %2260 = vmatpush.msra.mxu0 %v3841_v20  ;;  %2395 = vmatpush.msrb.mxu2 %v3852_v30 }
0x1c91   :  { %1849 = vst.msk [vmem:[#allocation2 + $0xc] sm:$0x3] %vm1693_vm8, %v1847_v58  ;;  %2900 = vmatmul.msk.f32.vlgmr.msrb.gmra.mxu1 %vm84_vm0, %v1847_v58 }
0x1c92   :  { %2261 = vmatpush.msra.mxu0 %v3846_v47  ;;  %2329 = vmatpush.msrb.mxu1 %v3795_v36 }
0x1c93   :  { %2396 = vmatpush.msrb.mxu2 %v3884_v53 }
0x1c94   :  { %2262 = vmatpush.msra.mxu0 %v3858_v51  ;;  %2330 = vmatpush.msrb.mxu1 %v3800_v22 }
0x1c95   :  { %2397 = vmatpush.msrb.mxu2 %v3889_v56 }
0x1c96   :  { %2263 = vmatpush.msra.mxu0 %v3866_v49  ;;  %2331 = vmatpush.msrb.mxu1 %v3807_v37 }
0x1c97   :  { %2398 = vmatpush.msrb.mxu2 %v3895_v42 }
0x1c98   :  { %2332 = vmatpush.msrb.mxu1 %v3814_v45 }
0x1d0c   :  { %v1873_v14 = vpop.f32.mrf.mxu0 }
0x1d0d   :  { %v1877_v15 = vrot.slane %v1873_v14, 6 }
0x1d0e   :  { %v1939_v17 = vpop.f32.mrf.mxu1 }
0x1d0f   :  { %v1879_v16 = vadd.f32 %v1877_v15, %v3921_v35 }
0x1d11   :  { %3110 = vtanh.f32 %v1879_v16  ;;  %v2899_v3 = vmul.f32 -1.442695, %v1879_v16 }
0x1d12   :  { %v1959_v25 = vpop.f32.mrf.mxu2 }
0x1d13   :  { %v1960_v34 = vadd.f32 %v1959_v25, %v1939_v17 }
0x1d15   :  { %v1962_v63 = vadd.f32 %v3927_v8, %v1960_v34 }
0x1d17   :  { %v3111_v0 = vpop.eup %3110  ;;  %3112 = vtanh.f32 %v1962_v63  ;;  %v2902_v4 = vmul.f32 -1.442695, %v1962_v63 }
0x1d18   :  { %1905 = vrot.lane.b32.xlu0 %v3111_v0, %s3201_s0  ;;  %3114 = vpow2.f32 %v2899_v3 }
0x1d19   :  { %3116 = vpow2.f32 %v2902_v4 }
0x1d1d   :  { %v3113_v2 = vpop.eup %3112 }
0x1d1e   :  { %1985 = vrot.lane.b32.xlu1 %v3113_v2, %s3201_s0  ;;  %v3115_v5 = vpop.eup %3114 }
0x1d1f   :  { %v1883_v7 = vadd.f32 1.0, %v3115_v5  ;;  %v3117_v13 = vpop.eup %3116 }
0x1d20   :  { %v1966_v18 = vadd.f32 1.0, %v3117_v13 }
0x1d21   :  { %3118 = vrcp.f32 %v1883_v7  ;;  %v1895_v31 = vand.u32 2147483648, %v1883_v7  ;;  %vm1889_vm4 = vweird.f32 %v1883_v7  ;;  %v1893_v32 = vand.u32 2147483647, %v1883_v7 }
0x1d22   :  { %3120 = vrcp.f32 %v1966_v18  ;;  %v1978_v55 = vand.u32 2147483648, %v1966_v18  ;;  %vm1972_vm9 = vweird.f32 %v1966_v18  ;;  %v1976_v44 = vand.u32 2147483647, %v1966_v18 }
0x1d23   :  { %v1896_v40 = vor.u32 1.1754944e-38, %v1895_v31  ;;  %vm1894_vm6 = vcmp.eq.f32.partialorder %v1893_v32, 8.507059e+37 }
0x1d24   :  { %v1979_v9 = vor.u32 1.1754944e-38, %v1978_v55  ;;  %vm1977_vm11 = vcmp.eq.f32.partialorder %v1976_v44, 8.507059e+37 }
0x1d27   :  { %v3119_v19 = vpop.eup %3118 }
0x1d28   :  { %v1885_v21 = vmul.f32 %v3119_v19, %v1883_v7  ;;  %v3121_v24 = vpop.eup %3120  ;;  %vm1890_vm3 = vweird.f32 %v3119_v19 }
0x1d29   :  { %v1968_v26 = vmul.f32 %v3121_v24, %v1966_v18  ;;  %vm1891_vm5 = vmor %vm1889_vm4, %vm1890_vm3  ;;  %vm1973_vm7 = vweird.f32 %v3121_v24 }
0x1d2a   :  { %v1886_v6 = vsub.f32 1.0, %v1885_v21  ;;  %vm1974_vm10 = vmor %vm1972_vm9, %vm1973_vm7 }
0x1d2b   :  { %v1969_v28 = vsub.f32 1.0, %v1968_v26 }
0x1d2c   :  { %v1887_v27 = vmul.f32 %v3119_v19, %v1886_v6 }
0x1d2d   :  { %v1970_v39 = vmul.f32 %v3121_v24, %v1969_v28 }
0x1d2e   :  { %v1888_v29 = vadd.f32 %v3119_v19, %v1887_v27 }
0x1d2f   :  { %v1971_v33 = vadd.f32 %v3121_v24, %v1970_v39 }
0x1d30   :  { %v1892_v12 = vsel %vm1891_vm5, %v3119_v19, %v1888_v29 }
0x1d31   :  { %v1897_v52 = vsel %vm1894_vm6, %v1896_v40, %v1892_v12  ;;  %v1975_v60 = vsel %vm1974_vm10, %v3121_v24, %v1971_v33 }
0x1d32   :  { %v1980_v48 = vsel %vm1977_vm11, %v1979_v9, %v1975_v60  ;;  %v1903_v41 = vmul.f32 %v1901_v43, %v1897_v52 }
0x1d33   :  { %v1983_v46 = vmul.f32 %v1980_v48, %v3972_v10 }
0x1d8a   :  { %v1906_v57 = vpop.permute.xlu0 %1905 }
0x1d8b   :  { %v1908_v59 = vmul.f32 %v1906_v57, %v1897_v52 }
0x1d8d   :  { %1910 = vrot.lane.b32.xlu2 %v1908_v59, %s3202_s4 }
0x1d90   :  { %v1986_v61 = vpop.permute.xlu1 %1985 }
0x1d91   :  { %v1988_v62 = vmul.f32 %v1986_v61, %v1980_v48 }
0x1d93   :  { %1990 = vrot.lane.b32.xlu0 %v1988_v62, %s3202_s4 }
0x1de7   :  { %v1911_v11 = vpop.permute.xlu2 %1910 }
0x1de8   :  { %v4002_v54 = vadd.f32 %v1911_v11, %v1903_v41 }
0x1dea   :  { %3122 = vtanh.f32 %v4002_v54  ;;  %v2053_v41 = vrot.slane %v4002_v54, 2 }
0x1df0   :  { %v3123_v23 = vpop.eup %3122 }
0x1df1   :  { %1916 = vrot.lane.b32.xlu1 %v3123_v23, %s3201_s0 }
0x1e05   :  { %v1991_v58 = vpop.permute.xlu0 %1990 }
0x1e06   :  { %v4007_v14 = vadd.f32 %v1991_v58, %v1983_v46 }
0x1e08   :  { %3124 = vtanh.f32 %v4007_v14 }
0x1e0e   :  { %v3125_v15 = vpop.eup %3124 }
0x1e0f   :  { %1996 = vrot.lane.b32.xlu2 %v3125_v15, %s3201_s0 }
0x1e63   :  { %v1917_v50 = vpop.permute.xlu1 %1916 }
0x1e64   :  { %v1919_v16 = vmul.f32 %v1917_v50, %v1897_v52 }
0x1e66   :  { %v2006_v17 = vrot.slane %v1919_v16, 2 }
0x1e68   :  { %2007 = vrot.lane.b32.xlu0 %v2006_v17, %s3202_s4 }
0x1e69   :  { %v1997_v25 = vpop.permute.xlu2 %1996 }
0x1e6a   :  { %v1999_v34 = vmul.f32 %v1997_v25, %v1980_v48 }
0x1e6c   :  { %2001 = vrot.lane.b32.xlu1 %v1999_v34, %s3202_s4 }
0x1eda   :  { %v2008_v63 = vpop.permute.xlu0 %2007 }
0x1edb   :  { %2903 = vmatmul.msk.f32.vlgmr.msrb.gmra.mxu3 %vm84_vm0, %v2008_v63  ;;  %2906 = vmatmul.msk.f32.vlgmr.msra.gmra.mxu1 %vm84_vm0, %v2008_v63 }
0x1edc   :  { %2415 = vmatpush.msrb.mxu3 %v3841_v20  ;;  %2550 = vmatpush.msra.mxu1 %v3852_v30 }
0x1ede   :  { %v2002_v10 = vpop.permute.xlu1 %2001  ;;  %2416 = vmatpush.msrb.mxu3 %v3846_v47  ;;  %2551 = vmatpush.msra.mxu1 %v3884_v53 }
0x1edf   :  { %2004 = vst.msk [vmem:[#allocation2 + $0xa] sm:$0x3] %vm1693_vm8, %v2002_v10  ;;  %2905 = vmatmul.msk.f32.vlgmr.msrb.gmra.mxu0 %vm84_vm0, %v2002_v10 }
0x1ee0   :  { %2417 = vmatpush.msrb.mxu3 %v3858_v51  ;;  %2484 = vmatpush.msrb.mxu0 %v3795_v36 }
0x1ee1   :  { %2552 = vmatpush.msra.mxu1 %v3889_v56 }
0x1ee2   :  { %2418 = vmatpush.msrb.mxu3 %v3866_v49  ;;  %2485 = vmatpush.msrb.mxu0 %v3800_v22 }
0x1ee3   :  { %2553 = vmatpush.msra.mxu1 %v3895_v42 }
0x1ee4   :  { %2486 = vmatpush.msrb.mxu0 %v3807_v37 }
0x1ee6   :  { %2487 = vmatpush.msrb.mxu0 %v3814_v45 }
0x1f58   :  { %v2111_v0 = vpop.f32.mrf.mxu1 }
0x1f5c   :  { %v2091_v2 = vpop.f32.mrf.mxu0 }
0x1f5d   :  { %v2112_v3 = vadd.f32 %v2111_v0, %v2091_v2 }
0x1f5e   :  { %v2028_v4 = vpop.f32.mrf.mxu3 }
0x1f5f   :  { %v2114_v5 = vadd.f32 %v3927_v8, %v2112_v3  ;;  %v2031_v36 = vadd.f32 %v2028_v4, %v3921_v35 }
0x1f61   :  { %3126 = vtanh.f32 %v2114_v5  ;;  %v2904_v22 = vmul.f32 -1.442695, %v2031_v36  ;;  %v2907_v19 = vmul.f32 -1.442695, %v2114_v5 }
0x1f62   :  { %3128 = vtanh.f32 %v2031_v36 }
0x1f63   :  { %3130 = vpow2.f32 %v2904_v22 }
0x1f67   :  { %v3127_v7 = vpop.eup %3126 }
0x1f68   :  { %v3129_v13 = vpop.eup %3128  ;;  %2137 = vrot.lane.b32.xlu0 %v3127_v7, %s3201_s0 }
0x1f69   :  { %2057 = vrot.lane.b32.xlu2 %v3129_v13, %s3201_s0  ;;  %v3131_v37 = vpop.eup %3130 }
0x1f6a   :  { %v2035_v45 = vadd.f32 1.0, %v3131_v37 }
0x1f6c   :  { %3132 = vrcp.f32 %v2035_v45  ;;  %v2047_v28 = vand.u32 2147483648, %v2035_v45  ;;  %vm2041_vm13 = vweird.f32 %v2035_v45  ;;  %v2045_v29 = vand.u32 2147483647, %v2035_v45 }
0x1f6d   :  { %3134 = vpow2.f32 %v2907_v19 }
0x1f6e   :  { %v2048_v32 = vor.u32 1.1754944e-38, %v2047_v28  ;;  %vm2046_vm15 = vcmp.eq.f32.partialorder %v2045_v29, 8.507059e+37 }
0x1f72   :  { %v3133_v18 = vpop.eup %3132 }
0x1f73   :  { %v2037_v21 = vmul.f32 %v3133_v18, %v2035_v45  ;;  %v3135_v6 = vpop.eup %3134  ;;  %vm2042_vm12 = vweird.f32 %v3133_v18 }
0x1f74   :  { %v2118_v26 = vadd.f32 1.0, %v3135_v6  ;;  %vm2043_vm14 = vmor %vm2041_vm13, %vm2042_vm12 }
0x1f75   :  { %v2038_v24 = vsub.f32 1.0, %v2037_v21 }
0x1f76   :  { %3136 = vrcp.f32 %v2118_v26  ;;  %v2130_v44 = vand.u32 2147483648, %v2118_v26  ;;  %vm2124_vm3 = vweird.f32 %v2118_v26  ;;  %v2128_v60 = vand.u32 2147483647, %v2118_v26 }
0x1f77   :  { %v2039_v35 = vmul.f32 %v3133_v18, %v2038_v24 }
0x1f78   :  { %v2131_v61 = vor.u32 1.1754944e-38, %v2130_v44  ;;  %vm2129_vm5 = vcmp.eq.f32.partialorder %v2128_v60, 8.507059e+37 }
0x1f79   :  { %v2040_v27 = vadd.f32 %v3133_v18, %v2039_v35 }
0x1f7b   :  { %v2044_v31 = vsel %vm2043_vm14, %v3133_v18, %v2040_v27 }
0x1f7c   :  { %v2049_v12 = vsel %vm2046_vm15, %v2048_v32, %v2044_v31  ;;  %v3137_v40 = vpop.eup %3136 }
0x1f7d   :  { %v2120_v52 = vmul.f32 %v3137_v40, %v2118_v26  ;;  %vm2125_vm2 = vweird.f32 %v3137_v40  ;;  %v2055_v46 = vmul.f32 %v2053_v41, %v2049_v12 }
0x1f7e   :  { %vm2126_vm4 = vmor %vm2124_vm3, %vm2125_vm2 }
0x1f7f   :  { %v2121_v57 = vsub.f32 1.0, %v2120_v52 }
0x1f81   :  { %v2122_v55 = vmul.f32 %v3137_v40, %v2121_v57 }
0x1f83   :  { %v2123_v59 = vadd.f32 %v3137_v40, %v2122_v55 }
0x1f85   :  { %v2127_v9 = vsel %vm2126_vm4, %v3137_v40, %v2123_v59 }
0x1f86   :  { %v2132_v62 = vsel %vm2129_vm5, %v2131_v61, %v2127_v9 }
0x1f87   :  { %v2135_v11 = vmul.f32 %v2132_v62, %v4007_v14 }
0x1fc3   :  { %v2058_v39 = vpop.permute.xlu2 %2057 }
0x1fc4   :  { %v2060_v33 = vmul.f32 %v2058_v39, %v2049_v12 }
0x1fc6   :  { %2062 = vrot.lane.b32.xlu1 %v2060_v33, %s3202_s4 }
0x1fda   :  { %v2138_v48 = vpop.permute.xlu0 %2137 }
0x1fdb   :  { %v2140_v43 = vmul.f32 %v2138_v48, %v2132_v62 }
0x1fdd   :  { %2142 = vrot.lane.b32.xlu2 %v2140_v43, %s3202_s4 }
0x2037   :  { %v2143_v23 = vpop.permute.xlu2 %2142 }
0x2038   :  { %v4037_v58 = vadd.f32 %v2143_v23, %v2135_v11  ;;  %v2063_v15 = vpop.permute.xlu1 %2062 }
0x2039   :  { %v4039_v50 = vadd.f32 %v2063_v15, %v2055_v46 }
0x203a   :  { %3138 = vtanh.f32 %v4037_v58 }
0x203b   :  { %3140 = vtanh.f32 %v4039_v50  ;;  %v2207_v59 = vrot.slane %v4039_v50, 2 }
0x2040   :  { %v3139_v16 = vpop.eup %3138 }
0x2041   :  { %v3141_v17 = vpop.eup %3140  ;;  %2148 = vrot.lane.b32.xlu1 %v3139_v16, %s3201_s0 }
0x2042   :  { %2068 = vrot.lane.b32.xlu0 %v3141_v17, %s3201_s0 }
0x20b3   :  { %v2149_v54 = vpop.permute.xlu1 %2148 }
0x20b4   :  { %v2151_v25 = vmul.f32 %v2149_v54, %v2132_v62  ;;  %v2069_v14 = vpop.permute.xlu0 %2068 }
0x20b5   :  { %v2071_v34 = vmul.f32 %v2069_v14, %v2049_v12 }
0x20b6   :  { %2153 = vrot.lane.b32.xlu0 %v2151_v25, %s3202_s4 }
0x20b7   :  { %2158 = vrot.lane.b32.xlu2 %v2071_v34, %s3202_s4 }
0x2111   :  { %v2159_v63 = vpop.permute.xlu2 %2158 }
0x2112   :  { %2908 = vmatmul.msk.f32.vlgmr.msra.gmra.mxu2 %vm84_vm0, %v2159_v63  ;;  %2911 = vmatmul.msk.f32.vlgmr.msra.gmra.mxu0 %vm84_vm0, %v2159_v63 }
0x2113   :  { %2570 = vmatpush.msra.mxu2 %v3841_v20  ;;  %2661 = vmatpush.msra.mxu0 %v3841_v20 }
0x2115   :  { %2571 = vmatpush.msra.mxu2 %v3846_v47  ;;  %2662 = vmatpush.msra.mxu0 %v3846_v47  ;;  %v4065_v47 = vadd.f32 %v3829_v1, %v3918_v38 }
0x2117   :  { %2572 = vmatpush.msra.mxu2 %v3858_v51  ;;  %2663 = vmatpush.msra.mxu0 %v3858_v51 }
0x2119   :  { %2573 = vmatpush.msra.mxu2 %v3866_v49  ;;  %2664 = vmatpush.msra.mxu0 %v3866_v49 }
0x2128   :  { %v2154_v10 = vpop.permute.xlu0 %2153 }
0x2129   :  { %2156 = vst.msk [vmem:[#allocation2 + $0x8] sm:$0x3] %vm1693_vm8, %v2154_v10  ;;  %2910 = vmatmul.msk.f32.vlgmr.msra.gmra.mxu3 %vm84_vm0, %v2154_v10 }
0x212a   :  { %2635 = vmatpush.msra.mxu3 %v3852_v30 }
0x212c   :  { %2636 = vmatpush.msra.mxu3 %v3884_v53 }
0x212e   :  { %2637 = vmatpush.msra.mxu3 %v3889_v56 }
0x2130   :  { %2638 = vmatpush.msra.mxu3 %v3895_v42 }
0x218f   :  { %v2265_v2 = vpop.f32.mrf.mxu0 }
0x2195   :  { %v2179_v20 = vpop.f32.mrf.mxu2 }
0x2196   :  { %v2183_v51 = vrot.slane %v2179_v20, 2 }
0x2198   :  { %v2185_v49 = vadd.f32 %v2183_v51, %v4065_v47 }
0x219a   :  { %3142 = vtanh.f32 %v2185_v49  ;;  %v2909_v4 = vmul.f32 -1.442695, %v2185_v49 }
0x21a0   :  { %v3143_v0 = vpop.eup %3142 }
0x21a1   :  { %2211 = vrot.lane.b32.xlu1 %v3143_v0, %s3201_s0 }
0x21ac   :  { %v2245_v30 = vpop.f32.mrf.mxu3 }
0x21ad   :  { %v2266_v3 = vadd.f32 %v2265_v2, %v2245_v30 }
0x21af   :  { %v2268_v53 = vadd.f32 %v3927_v8, %v2266_v3 }
0x21b1   :  { %3144 = vtanh.f32 %v2268_v53  ;;  %v2912_v42 = vmul.f32 -1.442695, %v2268_v53 }
0x21b3   :  { %3146 = vpow2.f32 %v2912_v42 }
0x21b4   :  { %3148 = vpow2.f32 %v2909_v4 }
0x21b7   :  { %v3145_v56 = vpop.eup %3144 }
0x21b8   :  { %2291 = vrot.lane.b32.xlu2 %v3145_v56, %s3201_s0 }
0x21b9   :  { %v3147_v1 = vpop.eup %3146 }
0x21ba   :  { %v3149_v38 = vpop.eup %3148  ;;  %v2272_v5 = vadd.f32 1.0, %v3147_v1 }
0x21bb   :  { %v2189_v36 = vadd.f32 1.0, %v3149_v38 }
0x21bc   :  { %3150 = vrcp.f32 %v2272_v5  ;;  %v2284_v35 = vand.u32 2147483648, %v2272_v5  ;;  %vm2278_vm9 = vweird.f32 %v2272_v5  ;;  %v2282_v27 = vand.u32 2147483647, %v2272_v5 }
0x21bd   :  { %3152 = vrcp.f32 %v2189_v36  ;;  %v2201_v26 = vand.u32 2147483648, %v2189_v36  ;;  %vm2195_vm10 = vweird.f32 %v2189_v36  ;;  %v2199_v28 = vand.u32 2147483647, %v2189_v36 }
0x21be   :  { %v2285_v32 = vor.u32 1.1754944e-38, %v2284_v35  ;;  %vm2283_vm13 = vcmp.eq.f32.partialorder %v2282_v27, 8.507059e+37 }
0x21bf   :  { %v2202_v39 = vor.u32 1.1754944e-38, %v2201_v26  ;;  %vm2200_vm14 = vcmp.eq.f32.partialorder %v2199_v28, 8.507059e+37 }
0x21c2   :  { %v3151_v7 = vpop.eup %3150 }
0x21c3   :  { %v3153_v13 = vpop.eup %3152  ;;  %v2274_v22 = vmul.f32 %v3151_v7, %v2272_v5  ;;  %vm2279_vm6 = vweird.f32 %v3151_v7 }
0x21c4   :  { %v2191_v37 = vmul.f32 %v3153_v13, %v2189_v36  ;;  %vm2196_vm7 = vweird.f32 %v3153_v13  ;;  %vm2280_vm11 = vmor %vm2278_vm9, %vm2279_vm6 }
0x21c5   :  { %v2275_v45 = vsub.f32 1.0, %v2274_v22  ;;  %vm2197_vm12 = vmor %vm2195_vm10, %vm2196_vm7 }
0x21c6   :  { %v2192_v18 = vsub.f32 1.0, %v2191_v37 }
0x21c7   :  { %v2276_v19 = vmul.f32 %v3151_v7, %v2275_v45 }
0x21c8   :  { %v2193_v21 = vmul.f32 %v3153_v13, %v2192_v18 }
0x21c9   :  { %v2277_v24 = vadd.f32 %v3151_v7, %v2276_v19 }
0x21ca   :  { %v2194_v6 = vadd.f32 %v3153_v13, %v2193_v21 }
0x21cb   :  { %v2281_v29 = vsel %vm2280_vm11, %v3151_v7, %v2277_v24 }
0x21cc   :  { %v2198_v31 = vsel %vm2197_vm12, %v3153_v13, %v2194_v6  ;;  %v2286_v40 = vsel %vm2283_vm13, %v2285_v32, %v2281_v29 }
0x21cd   :  { %v2203_v52 = vsel %vm2200_vm14, %v2202_v39, %v2198_v31  ;;  %v2289_v44 = vmul.f32 %v2286_v40, %v4037_v58 }
0x21ce   :  { %v2209_v9 = vmul.f32 %v2207_v59, %v2203_v52 }
0x2212   :  { %v2292_v12 = vpop.permute.xlu2 %2291 }
0x2213   :  { %v2212_v33 = vpop.permute.xlu1 %2211  ;;  %v2294_v57 = vmul.f32 %v2292_v12, %v2286_v40 }
0x2214   :  { %v2214_v55 = vmul.f32 %v2212_v33, %v2203_v52 }
0x2215   :  { %2296 = vrot.lane.b32.xlu1 %v2294_v57, %s3202_s4 }
0x2216   :  { %2216 = vrot.lane.b32.xlu0 %v2214_v55, %s3202_s4 }
0x2287   :  { %v2297_v60 = vpop.permute.xlu1 %2296 }
0x2288   :  { %v4075_v61 = vadd.f32 %v2297_v60, %v2289_v44  ;;  %v2217_v48 = vpop.permute.xlu0 %2216 }
0x2289   :  { %v4077_v62 = vadd.f32 %v2217_v48, %v2209_v9 }
0x228a   :  { %3154 = vtanh.f32 %v4075_v61 }
0x228b   :  { %3156 = vtanh.f32 %v4077_v62  ;;  %v2362_v32 = vrot.slane %v4077_v62, 2 }
0x2290   :  { %v3155_v43 = vpop.eup %3154 }
0x2291   :  { %v3157_v41 = vpop.eup %3156  ;;  %2302 = vrot.lane.b32.xlu0 %v3155_v43, %s3201_s0 }
0x2292   :  { %2222 = vrot.lane.b32.xlu2 %v3157_v41, %s3201_s0 }
0x22ec   :  { %v2223_v11 = vpop.permute.xlu2 %2222 }
0x22ed   :  { %v2225_v23 = vmul.f32 %v2223_v11, %v2203_v52 }
0x22ef   :  { %v2312_v46 = vrot.slane %v2225_v23, 6 }
0x22f1   :  { %2313 = vrot.lane.b32.xlu1 %v2312_v46, %s3202_s4 }
0x2303   :  { %v2303_v58 = vpop.permute.xlu0 %2302 }
0x2304   :  { %v2305_v15 = vmul.f32 %v2303_v58, %v2286_v40 }
0x2306   :  { %2307 = vrot.lane.b32.xlu2 %v2305_v15, %s3202_s4 }
0x2360   :  { %v2308_v50 = vpop.permute.xlu2 %2307 }
0x2361   :  { %2310 = vst.msk [vmem:[#allocation2 + $0x6] sm:$0x3] %vm1693_vm8, %v2308_v50  ;;  %2915 = vmatmul.msk.f32.vlgmr.msrb.gmra.mxu2 %vm84_vm0, %v2308_v50  ;;  %v4115_v50 = vld [vmem:[%s4258_s16] ss:$0 sm:$0xff] }
0x2363   :  { %v2314_v16 = vpop.permute.xlu1 %2313 }
0x2364   :  { %2913 = vmatmul.msk.f32.vlgmr.msrb.gmra.mxu1 %vm84_vm0, %v2314_v16  ;;  %2916 = vmatmul.msk.f32.vlgmr.msrb.gmra.mxu3 %vm84_vm0, %v2314_v16 }
0x23e1   :  { %v2334_v17 = vpop.f32.mrf.mxu1 }
0x23e2   :  { %v2338_v54 = vrot.slane %v2334_v17, 4 }
0x23e4   :  { %v2340_v25 = vadd.f32 %v2338_v54, %v4065_v47  ;;  %v2400_v14 = vpop.f32.mrf.mxu2 }
0x23e6   :  { %3158 = vtanh.f32 %v2340_v25  ;;  %v2914_v49 = vmul.f32 -1.442695, %v2340_v25 }
0x23e7   :  { %v2420_v34 = vpop.f32.mrf.mxu3 }
0x23e8   :  { %v2421_v63 = vadd.f32 %v2420_v34, %v2400_v14 }
0x23ea   :  { %v2423_v10 = vadd.f32 %v3927_v8, %v2421_v63 }
0x23ec   :  { %v3159_v20 = vpop.eup %3158  ;;  %3160 = vtanh.f32 %v2423_v10  ;;  %v2917_v0 = vmul.f32 -1.442695, %v2423_v10 }
0x23ed   :  { %2366 = vrot.lane.b32.xlu0 %v3159_v20, %s3201_s0  ;;  %3162 = vpow2.f32 %v2914_v49 }
0x23ee   :  { %3164 = vpow2.f32 %v2917_v0 }
0x23f2   :  { %v3161_v51 = vpop.eup %3160 }
0x23f3   :  { %2446 = vrot.lane.b32.xlu1 %v3161_v51, %s3201_s0  ;;  %v3163_v2 = vpop.eup %3162 }
0x23f4   :  { %v2344_v30 = vadd.f32 1.0, %v3163_v2  ;;  %v3165_v3 = vpop.eup %3164 }
0x23f5   :  { %v2427_v53 = vadd.f32 1.0, %v3165_v3 }
0x23f6   :  { %3166 = vrcp.f32 %v2344_v30  ;;  %v2356_v7 = vand.u32 2147483648, %v2344_v30  ;;  %vm2350_vm2 = vweird.f32 %v2344_v30  ;;  %v2354_v13 = vand.u32 2147483647, %v2344_v30 }
0x23f7   :  { %3168 = vrcp.f32 %v2427_v53  ;;  %v2439_v24 = vand.u32 2147483648, %v2427_v53  ;;  %vm2433_vm6 = vweird.f32 %v2427_v53  ;;  %v2437_v35 = vand.u32 2147483647, %v2427_v53 }
0x23f8   :  { %v2357_v45 = vor.u32 1.1754944e-38, %v2356_v7  ;;  %vm2355_vm4 = vcmp.eq.f32.partialorder %v2354_v13, 8.507059e+37 }
0x23f9   :  { %v2440_v27 = vor.u32 1.1754944e-38, %v2439_v24  ;;  %vm2438_vm9 = vcmp.eq.f32.partialorder %v2437_v35, 8.507059e+37 }
0x23fc   :  { %v3167_v56 = vpop.eup %3166 }
0x23fd   :  { %v2346_v42 = vmul.f32 %v3167_v56, %v2344_v30  ;;  %v3169_v8 = vpop.eup %3168  ;;  %vm2351_vm15 = vweird.f32 %v3167_v56 }
0x23fe   :  { %v2429_v1 = vmul.f32 %v3169_v8, %v2427_v53  ;;  %vm2352_vm3 = vmor %vm2350_vm2, %vm2351_vm15  ;;  %vm2434_vm5 = vweird.f32 %v3169_v8 }
0x23ff   :  { %v2347_v4 = vsub.f32 1.0, %v2346_v42  ;;  %vm2435_vm7 = vmor %vm2433_vm6, %vm2434_vm5 }
0x2400   :  { %v2430_v5 = vsub.f32 1.0, %v2429_v1 }
0x2401   :  { %v2348_v38 = vmul.f32 %v3167_v56, %v2347_v4 }
0x2402   :  { %v2431_v22 = vmul.f32 %v3169_v8, %v2430_v5 }
0x2403   :  { %v2349_v36 = vadd.f32 %v3167_v56, %v2348_v38 }
0x2404   :  { %v2432_v18 = vadd.f32 %v3169_v8, %v2431_v22 }
0x2405   :  { %v2353_v37 = vsel %vm2352_vm3, %v3167_v56, %v2349_v36 }
0x2406   :  { %v2358_v19 = vsel %vm2355_vm4, %v2357_v45, %v2353_v37  ;;  %v2436_v26 = vsel %vm2435_vm7, %v3169_v8, %v2432_v18 }
0x2407   :  { %v2441_v29 = vsel %vm2438_vm9, %v2440_v27, %v2436_v26  ;;  %v2364_v39 = vmul.f32 %v2362_v32, %v2358_v19 }
0x2408   :  { %v2444_v52 = vmul.f32 %v2441_v29, %v4075_v61 }
0x245f   :  { %v2367_v21 = vpop.permute.xlu0 %2366 }
0x2460   :  { %v2369_v6 = vmul.f32 %v2367_v21, %v2358_v19 }
0x2462   :  { %2371 = vrot.lane.b32.xlu2 %v2369_v6, %s3202_s4 }
0x2465   :  { %v2447_v28 = vpop.permute.xlu1 %2446 }
0x2466   :  { %v2449_v31 = vmul.f32 %v2447_v28, %v2441_v29 }
0x2468   :  { %2451 = vrot.lane.b32.xlu0 %v2449_v31, %s3202_s4 }
0x24bc   :  { %v2372_v12 = vpop.permute.xlu2 %2371 }
0x24bd   :  { %v4096_v40 = vadd.f32 %v2372_v12, %v2364_v39 }
0x24bf   :  { %3170 = vtanh.f32 %v4096_v40  ;;  %v2517_v24 = vrot.slane %v4096_v40, 2 }
0x24c5   :  { %v3171_v33 = vpop.eup %3170 }
0x24c6   :  { %2377 = vrot.lane.b32.xlu1 %v3171_v33, %s3201_s0 }
0x24da   :  { %v2452_v57 = vpop.permute.xlu0 %2451 }
0x24db   :  { %v4101_v55 = vadd.f32 %v2452_v57, %v2444_v52 }
0x24dd   :  { %3172 = vtanh.f32 %v4101_v55 }
0x24e3   :  { %v3173_v59 = vpop.eup %3172 }
0x24e4   :  { %2457 = vrot.lane.b32.xlu2 %v3173_v59, %s3201_s0 }
0x2538   :  { %v2378_v44 = vpop.permute.xlu1 %2377 }
0x2539   :  { %v2380_v60 = vmul.f32 %v2378_v44, %v2358_v19 }
0x253b   :  { %v2467_v9 = vrot.slane %v2380_v60, 4 }
0x253d   :  { %2468 = vrot.lane.b32.xlu0 %v2467_v9, %s3202_s4 }
0x253e   :  { %v2458_v48 = vpop.permute.xlu2 %2457 }
0x253f   :  { %v2460_v62 = vmul.f32 %v2458_v48, %v2441_v29 }
0x2541   :  { %2462 = vrot.lane.b32.xlu1 %v2460_v62, %s3202_s4 }
0x25af   :  { %v2469_v43 = vpop.permute.xlu0 %2468 }
0x25b0   :  { %2918 = vmatmul.msk.f32.vlgmr.msrb.gmra.mxu0 %vm84_vm0, %v2469_v43  ;;  %2921 = vmatmul.msk.f32.vlgmr.msra.gmra.mxu2 %vm84_vm0, %v2469_v43 }
0x25b3   :  { %v2463_v61 = vpop.permute.xlu1 %2462 }
0x25b4   :  { %2465 = vst.msk [vmem:[#allocation2 + $0x4] sm:$0x3] %vm1693_vm8, %v2463_v61  ;;  %2920 = vmatmul.msk.f32.vlgmr.msra.gmra.mxu1 %vm84_vm0, %v2463_v61 }
0x262d   :  { %v2489_v41 = vpop.f32.mrf.mxu0 }
0x262e   :  { %v2493_v11 = vrot.slane %v2489_v41, 6 }
0x2630   :  { %v2495_v23 = vadd.f32 %v2493_v11, %v4065_v47 }
0x2631   :  { %v2555_v46 = vpop.f32.mrf.mxu1 }
0x2632   :  { %3174 = vtanh.f32 %v2495_v23  ;;  %v2919_v34 = vmul.f32 -1.442695, %v2495_v23 }
0x2633   :  { %v2575_v58 = vpop.f32.mrf.mxu2 }
0x2634   :  { %v2576_v15 = vadd.f32 %v2575_v58, %v2555_v46 }
0x2636   :  { %v2578_v16 = vadd.f32 %v4115_v50, %v2576_v15 }
0x2638   :  { %v3175_v17 = vpop.eup %3174  ;;  %3176 = vtanh.f32 %v2578_v16  ;;  %v2922_v25 = vmul.f32 -1.442695, %v2578_v16 }
0x2639   :  { %2521 = vrot.lane.b32.xlu0 %v3175_v17, %s3201_s0 }
0x263a   :  { %3178 = vpow2.f32 %v2922_v25 }
0x263e   :  { %v3177_v54 = vpop.eup %3176 }
0x263f   :  { %2601 = vrot.lane.b32.xlu2 %v3177_v54, %s3201_s0 }
0x2640   :  { %v3179_v47 = vpop.eup %3178 }
0x2641   :  { %v2582_v14 = vadd.f32 1.0, %v3179_v47 }
0x2643   :  { %3180 = vrcp.f32 %v2582_v14  ;;  %v2594_v30 = vand.u32 2147483648, %v2582_v14  ;;  %vm2588_vm11 = vweird.f32 %v2582_v14  ;;  %v2592_v3 = vand.u32 2147483647, %v2582_v14 }
0x2644   :  { %3182 = vpow2.f32 %v2919_v34 }
0x2645   :  { %v2595_v42 = vor.u32 1.1754944e-38, %v2594_v30  ;;  %vm2593_vm13 = vcmp.eq.f32.partialorder %v2592_v3, 8.507059e+37  ;;  %v2714_v30 = vld [vmem:[%s4260_s17] sm:$0xff]  ;;  %v2758_v3 = vld [vmem:[%s4261_s19 + $0x38] sm:$0xff] }
0x2646   :  { %2777 = vmatpush.msrb.mxu2 %v2758_v3 }
0x2649   :  { %v3181_v63 = vpop.eup %3180 }
0x264a   :  { %v2584_v10 = vmul.f32 %v3181_v63, %v2582_v14  ;;  %v3183_v20 = vpop.eup %3182  ;;  %vm2589_vm10 = vweird.f32 %v3181_v63 }
0x264b   :  { %v2499_v49 = vadd.f32 1.0, %v3183_v20  ;;  %vm2590_vm12 = vmor %vm2588_vm11, %vm2589_vm10 }
0x264c   :  { %v2585_v51 = vsub.f32 1.0, %v2584_v10 }
0x264d   :  { %3184 = vrcp.f32 %v2499_v49  ;;  %v2511_v13 = vand.u32 2147483648, %v2499_v49  ;;  %vm2505_vm15 = vweird.f32 %v2499_v49  ;;  %v2509_v22 = vand.u32 2147483647, %v2499_v49 }
0x264e   :  { %v2586_v0 = vmul.f32 %v3181_v63, %v2585_v51 }
0x264f   :  { %v2512_v45 = vor.u32 1.1754944e-38, %v2511_v13  ;;  %vm2510_vm3 = vcmp.eq.f32.partialorder %v2509_v22, 8.507059e+37  ;;  %v2809_v13 = vld [vmem:[%s4263_s21 + $0x78] sm:$0xff]  ;;  %v2808_v22 = vld [vmem:[%s4263_s21 + $0x70] sm:$0xff] }
0x2650   :  { %v2587_v2 = vadd.f32 %v3181_v63, %v2586_v0  ;;  %v2716_v0 = vld [vmem:[%s4260_s17 + $0x10] sm:$0xff]  ;;  %2814 = vmatpush.msrb.mxu3 %v2809_v13 }
0x2652   :  { %v2591_v56 = vsel %vm2590_vm12, %v3181_v63, %v2587_v2  ;;  %v2715_v2 = vld [vmem:[%s4260_s17 + $0x8] sm:$0xff]  ;;  %2815 = vmatpush.msrb.mxu3 %v2808_v22 }
0x2653   :  { %v3185_v53 = vpop.eup %3184  ;;  %v2596_v1 = vsel %vm2593_vm13, %v2595_v42, %v2591_v56  ;;  %v2756_v56 = vld [vmem:[%s4261_s19 + $0x28] sm:$0xff]  ;;  %v2755_v42 = vld [vmem:[%s4261_s19 + $0x20] sm:$0xff] }
0x2654   :  { %v2501_v8 = vmul.f32 %v3185_v53, %v2499_v49  ;;  %vm2506_vm14 = vweird.f32 %v3185_v53  ;;  %v2599_v27 = vmul.f32 %v2596_v1, %v4101_v55  ;;  %v2717_v49 = vld [vmem:[%s4260_s17 + $0x18] sm:$0xff] }
0x2655   :  { %vm2507_vm2 = vmor %vm2505_vm15, %vm2506_vm14  ;;  %2740 = vmatpush.msrb.mxu1 %v2717_v49 }
0x2656   :  { %v2502_v5 = vsub.f32 1.0, %v2501_v8  ;;  %v2754_v8 = vld [vmem:[%s4261_s19 + $0x18] sm:$0xff] }
0x2657   :  { %2741 = vmatpush.msrb.mxu1 %v2716_v0 }
0x2658   :  { %v2503_v36 = vmul.f32 %v3185_v53, %v2502_v5  ;;  %v2713_v5 = vld [vmem:[#allocation2 + $0x8] sm:$0xff] }
0x2659   :  { %2742 = vmatpush.msrb.mxu1 %v2715_v2 }
0x265a   :  { %v2504_v7 = vadd.f32 %v3185_v53, %v2503_v36  ;;  %v2752_v36 = vld [vmem:[%s4261_s19 + $0x8] sm:$0xff] }
0x265b   :  { %2743 = vmatpush.msrb.mxu1 %v2714_v30 }
0x265c   :  { %v2508_v37 = vsel %vm2507_vm2, %v3185_v53, %v2504_v7  ;;  %v2757_v53 = vld [vmem:[%s4261_s19 + $0x30] sm:$0xff]  ;;  %v2751_v7 = vld [vmem:[%s4261_s19] sm:$0xff] }
0x265d   :  { %v2513_v19 = vsel %vm2510_vm3, %v2512_v45, %v2508_v37  ;;  %2778 = vmatpush.msrb.mxu2 %v2757_v53  ;;  %v2807_v37 = vld [vmem:[%s4263_s21 + $0x68] sm:$0xff]  ;;  %v2806_v45 = vld [vmem:[%s4263_s21 + $0x60] sm:$0xff] }
0x265e   :  { %v2519_v6 = vmul.f32 %v2517_v24, %v2513_v19  ;;  %2816 = vmatpush.msrb.mxu3 %v2807_v37  ;;  %v2802_v24 = vld [vmem:[%s4263_s21 + $0x40] sm:$0xff] }
0x265f   :  { %2779 = vmatpush.msrb.mxu2 %v2756_v56 }
0x2660   :  { %2817 = vmatpush.msrb.mxu3 %v2806_v45 }
0x2661   :  { %2780 = vmatpush.msrb.mxu2 %v2755_v42 }
0x2663   :  { %2781 = vmatpush.msrb.mxu2 %v2754_v8 }
0x2699   :  { %v2602_v4 = vpop.permute.xlu2 %2601 }
0x269a   :  { %v2604_v38 = vmul.f32 %v2602_v4, %v2596_v1  ;;  %v2753_v4 = vld [vmem:[%s4261_s19 + $0x10] sm:$0xff] }
0x269b   :  { %2782 = vmatpush.msrb.mxu2 %v2753_v4 }
0x269c   :  { %2606 = vrot.lane.b32.xlu1 %v2604_v38, %s3202_s4 }
0x269d   :  { %2783 = vmatpush.msrb.mxu2 %v2752_v36 }
0x269f   :  { %2784 = vmatpush.msrb.mxu2 %v2751_v7 }
0x26ab   :  { %v2522_v18 = vpop.permute.xlu0 %2521 }
0x26ac   :  { %v2524_v21 = vmul.f32 %v2522_v18, %v2513_v19  ;;  %v2805_v18 = vld [vmem:[%s4263_s21 + $0x58] sm:$0xff] }
0x26ad   :  { %2818 = vmatpush.msrb.mxu3 %v2805_v18 }
0x26ae   :  { %2526 = vrot.lane.b32.xlu2 %v2524_v21, %s3202_s4  ;;  %v2803_v21 = vld [vmem:[%s4263_s21 + $0x48] sm:$0xff] }
0x2708   :  { %v2527_v35 = vpop.permute.xlu2 %2526 }
0x2709   :  { %v2529_v26 = vadd.f32 %v2527_v35, %v2519_v6  ;;  %v2801_v6 = vld [vmem:[%s4263_s21 + $0x38] sm:$0xff]  ;;  %v2800_v35 = vld [vmem:[%s4263_s21 + $0x30] sm:$0xff] }
0x270b   :  { %3186 = vtanh.f32 %v2529_v26  ;;  %v2939_v26 = vld [vmem:[%s4259_s18] ss:$0 sm:$0xff] }
0x270e   :  { %v2607_v28 = vpop.permute.xlu1 %2606 }
0x270f   :  { %v2609_v29 = vadd.f32 %v2607_v28, %v2599_v27  ;;  %v2799_v27 = vld [vmem:[%s4263_s21 + $0x28] sm:$0xff]  ;;  %v2798_v28 = vld [vmem:[%s4263_s21 + $0x20] sm:$0xff] }
0x2711   :  { %v3187_v31 = vpop.eup %3186  ;;  %3188 = vtanh.f32 %v2609_v29 }
0x2712   :  { %2532 = vrot.lane.b32.xlu1 %v3187_v31, %s3201_s0 }
0x2717   :  { %v3189_v32 = vpop.eup %3188 }
0x2718   :  { %2612 = vrot.lane.b32.xlu0 %v3189_v32, %s3201_s0  ;;  %v2797_v32 = vld [vmem:[%s4263_s21 + $0x18] sm:$0xff] }
0x2784   :  { %v2533_v39 = vpop.permute.xlu1 %2532 }
0x2785   :  { %v2535_v12 = vmul.f32 %v2533_v39, %v2513_v19  ;;  %v2804_v19 = vld [vmem:[%s4263_s21 + $0x50] sm:$0xff] }
0x2786   :  { %2819 = vmatpush.msrb.mxu3 %v2804_v19 }
0x2787   :  { %v2644_v33 = vrot.slane %v2535_v12, 2 }
0x2788   :  { %2820 = vmatpush.msrb.mxu3 %v2803_v21 }
0x2789   :  { %2645 = vrot.lane.b32.xlu0 %v2644_v33, %s3202_s4  ;;  %v2796_v33 = vld [vmem:[%s4263_s21 + $0x10] sm:$0xff] }
0x278a   :  { %v2613_v40 = vpop.permute.xlu0 %2612  ;;  %2821 = vmatpush.msrb.mxu3 %v2802_v24 }
0x278b   :  { %v2615_v52 = vmul.f32 %v2613_v40, %v2596_v1  ;;  %v2795_v40 = vld [vmem:[%s4263_s21 + $0x8] sm:$0xff] }
0x278c   :  { %2822 = vmatpush.msrb.mxu3 %v2801_v6 }
0x278d   :  { %2617 = vrot.lane.b32.xlu2 %v2615_v52, %s3202_s4  ;;  %v2794_v52 = vld [vmem:[%s4263_s21] sm:$0xff] }
0x278e   :  { %2823 = vmatpush.msrb.mxu3 %v2800_v35 }
0x2790   :  { %2824 = vmatpush.msrb.mxu3 %v2799_v27 }
0x2792   :  { %2825 = vmatpush.msrb.mxu3 %v2798_v28 }
0x2794   :  { %2826 = vmatpush.msrb.mxu3 %v2797_v32 }
0x2796   :  { %2827 = vmatpush.msrb.mxu3 %v2796_v33 }
0x2798   :  { %2828 = vmatpush.msrb.mxu3 %v2795_v40 }
0x279a   :  { %2829 = vmatpush.msrb.mxu3 %v2794_v52 }
0x27e7   :  { %v2618_v57 = vpop.permute.xlu2 %2617 }
0x27e8   :  { %2620 = vst.msk [vmem:[#allocation2 + $0x2] sm:$0x3] %vm1693_vm8, %v2618_v57  ;;  %2923 = vmatmul.msk.f32.vlgmr.msra.gmra.mxu3 %vm84_vm0, %v2618_v57  ;;  %v2940_v57 = vld [vmem:[%s4262_s20] ss:$0 sm:$0xff] }
0x27fb   :  { %v2646_v55 = vpop.permute.xlu0 %2645 }
0x27fc   :  { %2924 = vmatmul.msk.f32.vlgmr.msra.gmra.mxu0 %vm84_vm0, %v2646_v55 }
0x286b   :  { %v2640_v59 = vpop.f32.mrf.mxu3 }
0x2879   :  { %v2666_v44 = vpop.f32.mrf.mxu0 }
0x287a   :  { %v2667_v60 = vadd.f32 %v2666_v44, %v2640_v59 }
0x287c   :  { %v2669_v9 = vadd.f32 %v4115_v50, %v2667_v60 }
0x287e   :  { %3190 = vtanh.f32 %v2669_v9  ;;  %v2925_v62 = vmul.f32 -1.442695, %v2669_v9 }
0x2880   :  { %3192 = vpow2.f32 %v2925_v62  ;;  %v2941_v62 = vld [vmem:[%s4264_s22] ss:$0 sm:$0xff] }
0x2884   :  { %v3191_v48 = vpop.eup %3190 }
0x2885   :  { %2692 = vrot.lane.b32.xlu1 %v3191_v48, %s3201_s0 }
0x2886   :  { %v3193_v43 = vpop.eup %3192 }
0x2887   :  { %v2673_v61 = vadd.f32 1.0, %v3193_v43 }
0x2889   :  { %3194 = vrcp.f32 %v2673_v61  ;;  %v2685_v15 = vand.u32 2147483648, %v2673_v61  ;;  %vm2679_vm5 = vweird.f32 %v2673_v61  ;;  %v2683_v16 = vand.u32 2147483647, %v2673_v61 }
0x288b   :  { %v2686_v17 = vor.u32 1.1754944e-38, %v2685_v15  ;;  %vm2684_vm7 = vcmp.eq.f32.partialorder %v2683_v16, 8.507059e+37 }
0x288f   :  { %v3195_v41 = vpop.eup %3194 }
0x2890   :  { %v2675_v11 = vmul.f32 %v3195_v41, %v2673_v61  ;;  %vm2680_vm4 = vweird.f32 %v3195_v41 }
0x2891   :  { %vm2681_vm6 = vmor %vm2679_vm5, %vm2680_vm4 }
0x2892   :  { %v2676_v23 = vsub.f32 1.0, %v2675_v11 }
0x2894   :  { %v2677_v46 = vmul.f32 %v3195_v41, %v2676_v23 }
0x2896   :  { %v2678_v58 = vadd.f32 %v3195_v41, %v2677_v46 }
0x2898   :  { %v2682_v50 = vsel %vm2681_vm6, %v3195_v41, %v2678_v58 }
0x2899   :  { %v2687_v25 = vsel %vm2684_vm7, %v2686_v17, %v2682_v50 }
0x289a   :  { %v2690_v14 = vmul.f32 %v2687_v25, %v2609_v29 }
0x28f7   :  { %v2693_v54 = vpop.permute.xlu1 %2692 }
0x28f8   :  { %v2695_v47 = vmul.f32 %v2693_v54, %v2687_v25 }
0x28fa   :  { %2697 = vrot.lane.b32.xlu2 %v2695_v47, %s3202_s4 }
0x2954   :  { %v2698_v34 = vpop.permute.xlu2 %2697 }
0x2955   :  { %v2700_v63 = vadd.f32 %v2698_v34, %v2690_v14 }
0x2957   :  { %3196 = vtanh.f32 %v2700_v63 }
0x295d   :  { %v3197_v10 = vpop.eup %3196 }
0x295e   :  { %2703 = vrot.lane.b32.xlu0 %v3197_v10, %s3201_s0 }
0x29d0   :  { %v2704_v20 = vpop.permute.xlu0 %2703 }
0x29d1   :  { %v2706_v51 = vmul.f32 %v2704_v20, %v2687_v25 }
0x29d3   :  { %2708 = vrot.lane.b32.xlu1 %v2706_v51, %s3202_s4 }
0x2a45   :  { %v2709_v1 = vpop.permute.xlu1 %2708 }
0x2a46   :  { %2711 = vst.msk [vmem:[#allocation2] sm:$0x3] %vm1693_vm8, %v2709_v1 }
0x2a4d   :  { %v2712_v38 = vld [vmem:[#allocation2] sm:$0xff] }
0x2a4e   :  { %2926 = vmatmul.msk.f32.vlgmr.msrb.gmra.mxu1 %vm84_vm0, %v2712_v38 }
0x2a56   :  { %2927 = vmatmul.msk.f32.gmra.mxu1 %vm84_vm0, %v2713_v5 }
0x2acb   :  { %v2745_v29 = vpop.f32.mrf.mxu1 }
0x2acc   :  { %v2746_v31 = vadd.f32 %v2939_v26, %v2745_v29 }
0x2ace   :  { %2928 = vmatmul.msk.f32.vlgmr.msrb.gmra.mxu2 %vm184_vm1, %v2746_v31 }
0x2ad3   :  { %v2748_v39 = vpop.f32.mrf.mxu1 }
0x2ad4   :  { %v2749_v12 = vadd.f32 %v2939_v26, %v2748_v39 }
0x2ad6   :  { %2929 = vmatmul.msk.f32.gmra.mxu2 %vm184_vm1, %v2749_v12 }
0x2b51   :  { %v2786_v55 = vpop.f32.mrf.mxu2 }
0x2b52   :  { %v2787_v59 = vadd.f32 %v2940_v57, %v2786_v55 }
0x2b54   :  { %v2792_v44 = vmax.f32 %v2787_v59, 0.0 }
0x2b56   :  { %2830 = vmatmul.f32.vlgmr.msrb.gmra.mxu3 %v2792_v44 }
0x2b59   :  { %v2789_v60 = vpop.f32.mrf.mxu2 }
0x2b5a   :  { %v2790_v9 = vadd.f32 %v2940_v57, %v2789_v60 }
0x2b5c   :  { %v2793_v48 = vmax.f32 %v2790_v9, 0.0 }
0x2b5e   :  { %2833 = vmatmul.f32.gmra.mxu3 %v2793_v48 }
0x2bd9   :  { %v2831_v43 = vpop.f32.mrf.mxu3 }
0x2bda   :  { %v2832_v61 = vadd.f32 %v2941_v62, %v2831_v43 }
0x2bdc   :  { %2837 = vst.msk [vmem:[%s4265_s23] sm:$0xff] %vm84_vm0, %v2832_v61 }
0x2be1   :  { %v2834_v41 = vpop.f32.mrf.mxu3 }
0x2be2   :  { %v2835_v11 = vadd.f32 %v2941_v62, %v2834_v41 }
0x2be4   :  { %2838 = vst.msk [vmem:[%s4265_s23 + $0x8] sm:$0xff] %vm84_vm0, %v2835_v11 }

</bundles_post_ra>
